<compile_context>
chip_gen: v6e
topology: v6e:2x2x1
jax: 0.10.0
libtpu: 0.0.40
codegen_flags: <defaults>
</compile_context>

<pallas_src>
import re

import jax
import jax.numpy as jnp
from jax.experimental import pallas as pl
from jax.experimental.pallas import tpu as pltpu

IN_DIM = 28 * 28          # 784
IN_PAD = 896              # 7 * 128  (lane-aligned K for the first matmul)
H1 = 512
H2 = 256
OUT_DIM = 10
OUT_PAD = 128             # lane-dense output block


def _round_up(x, m):
    return (x + m - 1) // m * m


def _tpu_generation():
    """Best-effort TPU generation from device_kind ('TPU v5 lite' -> 5); 0 if unknown."""
    try:
        kind = jax.devices()[0].device_kind.lower()
    except Exception:
        return 0
    m = re.search(r"(\d+)", kind)
    return int(m.group(1)) if m else 0


def _make_kernel(bf16_elementwise):
    def _mlp_kernel(x_ref, w1_ref, b1_ref, w2_ref, b2_ref, w3_ref, b3_ref, o_ref):
        # fc1: bf16 operands into the MXU, f32 accumulation.
        h1 = jnp.dot(x_ref[...], w1_ref[...], preferred_element_type=jnp.float32)
        if bf16_elementwise:
            # v6e/v7x: bf16 VPU -> bias add + ReLU + downcast in bf16 (halves temporaries).
            h1 = jnp.maximum(h1.astype(jnp.bfloat16) + b1_ref[...].astype(jnp.bfloat16), 0.0)
        else:
            # v5e: no bf16 VPU -> elementwise in f32, cast only at the MXU boundary.
            h1 = jnp.maximum(h1 + b1_ref[...], 0.0).astype(jnp.bfloat16)
        # dropout(p=0.2) -> identity in eval mode
        # fc2 + ReLU
        h2 = jnp.dot(h1, w2_ref[...], preferred_element_type=jnp.float32)
        if bf16_elementwise:
            h2 = jnp.maximum(h2.astype(jnp.bfloat16) + b2_ref[...].astype(jnp.bfloat16), 0.0)
        else:
            h2 = jnp.maximum(h2 + b2_ref[...], 0.0).astype(jnp.bfloat16)
        # dropout(p=0.2) -> identity in eval mode
        # fc3 (logits): f32 accumulate + f32 bias, cast to the output dtype at the store.
        logits = jnp.dot(h2, w3_ref[...], preferred_element_type=jnp.float32) + b3_ref[...]
        o_ref[...] = logits.astype(o_ref.dtype)

    return _mlp_kernel


def prepare_params(params):
    """Pad / cast torch-layout (in, out) f32 params into the kernel's layout."""
    w1, b1, w2, b2, w3, b3 = params
    w1p = jnp.pad(w1, ((0, IN_PAD - IN_DIM), (0, 0))).astype(jnp.bfloat16)    # (896, 512)
    w2p = w2.astype(jnp.bfloat16)                                             # (512, 256)
    w3p = jnp.pad(w3, ((0, 0), (0, OUT_PAD - OUT_DIM))).astype(jnp.bfloat16)  # (256, 128)
    b3p = jnp.pad(b3, ((0, 0), (0, OUT_PAD - OUT_DIM))).astype(jnp.float32)   # (1, 128)
    return (w1p, b1.astype(jnp.float32), w2p, b2.astype(jnp.float32), w3p, b3p)


def mlp_net_forward(x, prepared_params, *, tm=None, out_dtype=jnp.bfloat16,
                    return_padded=False):
    """x: any shape with 784 trailing elements per sample (e.g. (N,1,28,28))."""
    w1, b1, w2, b2, w3, b3 = prepared_params
    gen = _tpu_generation()

    # One fused HBM pass over x: cast to bf16 first, then a single pad (rows + K cols).
    x2d = x.reshape(-1, IN_DIM).astype(jnp.bfloat16)
    n = x2d.shape[0]

    if tm is None:
        tm = 2048 if gen >= 6 else 1024

    out_bytes = jnp.dtype(out_dtype).itemsize
    # Conservative per-row VMEM footprint: double-buffered x/out tiles + intermediates.
    per_row = (2 * IN_PAD * 2 + 2 * OUT_PAD * out_bytes
               + (H1 + H2 + OUT_PAD) * 4 + (H1 + H2) * 2)
    weight_bytes = (IN_PAD * H1 + H1 * H2 + H2 * OUT_PAD) * 2 + (H1 + H2 + OUT_PAD) * 4

    # Per-generation VMEM budget with headroom below physical (v7x 64 MiB, v5e/v6e 128 MiB).
    if gen >= 7:
        vmem_cap = 56 << 20
    elif gen >= 5:
        vmem_cap = 100 << 20
    else:
        vmem_cap = 24 << 20
    max_tm = max(16, ((vmem_cap - 2 * weight_bytes - (4 << 20)) // per_row) // 16 * 16)

    # Batch tile: multiple of 16 (bf16 sublane packing), capped by batch and VMEM budget.
    n16 = _round_up(max(n, 1), 16)
    tm_eff = min(tm, n16, max_tm)
    if gen >= 7 and n16 >= 32:
        # Keep grid >= 2 so both v7x TensorCores get work on the parallel batch axis.
        tm_eff = min(tm_eff, _round_up(pl.cdiv(n16, 2), 16))
    tm_eff = _round_up(tm_eff, 16)
    n_pad = _round_up(max(n, 1), tm_eff)
    grid = (n_pad // tm_eff,)

    # Zero rows / zero K-tail are matched by zero weight rows -> no numerical change.
    x_bf = jnp.pad(x2d, ((0, n_pad - n), (0, IN_PAD - IN_DIM)))

    vmem_limit = int(min(max(tm_eff * per_row + 2 * weight_bytes + (4 << 20), 16 << 20),
                         vmem_cap))

    flops = 2 * n_pad * (IN_PAD * H1 + H1 * H2 + H2 * OUT_PAD)
    bytes_accessed = n_pad * IN_PAD * 2 + weight_bytes + n_pad * OUT_PAD * out_bytes

    kernel = _make_kernel(bf16_elementwise=(gen >= 6))

    def _build(single_buffer_weights):
        act_spec = lambda cols: pl.BlockSpec((tm_eff, cols), lambda i: (i, 0))
        if single_buffer_weights:
            const_spec = lambda shape: pl.BlockSpec(
                shape, lambda i: (0, 0), pipeline_mode=pl.Buffered(1))
        else:
            const_spec = lambda shape: pl.BlockSpec(shape, lambda i: (0, 0))
        return pl.pallas_call(
            kernel,
            out_shape=jax.ShapeDtypeStruct((n_pad, OUT_PAD), out_dtype),
            grid_spec=pltpu.PrefetchScalarGridSpec(
                num_scalar_prefetch=0,
                grid=grid,
                in_specs=[
                    act_spec(IN_PAD),             # x tile (pipelined over batch)
                    const_spec((IN_PAD, H1)),     # w1 (VMEM-resident)
                    const_spec((1, H1)),          # b1
                    const_spec((H1, H2)),         # w2
                    const_spec((1, H2)),          # b2
                    const_spec((H2, OUT_PAD)),    # w3
                    const_spec((1, OUT_PAD)),     # b3
                ],
                out_specs=act_spec(OUT_PAD),
            ),
            compiler_params=pltpu.CompilerParams(
                dimension_semantics=("parallel",),   # megacore sharding on v7x
                vmem_limit_bytes=vmem_limit,
            ),
            cost_estimate=pl.CostEstimate(
                flops=flops, transcendentals=0, bytes_accessed=bytes_accessed),
        )

    try:
        out = _build(True)(x_bf, w1, b1, w2, b2, w3, b3)
    except Exception:
        # pl.Buffered(1) rejected by this jax/Mosaic version -> fall back to default
        # double-buffered resident weights (~1.25 MB extra VMEM, still correct).
        out = _build(False)(x_bf, w1, b1, w2, b2, w3, b3)

    if return_padded:
        return out                 # (n_pad, 128) lane-dense slab; consumer slices/fuses.
    return out[:n, :OUT_DIM]


def init_params(key):
    """Deterministic init matching nn.Linear shapes (stored as (in, out)), f32."""
    ks = jax.random.split(key, 6)

    def linear(kw, kb, fan_in, fan_out):
        bound = 1.0 / jnp.sqrt(fan_in)
        w = jax.random.uniform(kw, (fan_in, fan_out), jnp.float32, -bound, bound)
        b = jax.random.uniform(kb, (1, fan_out), jnp.float32, -bound, bound)
        return w, b

    w1, b1 = linear(ks[0], ks[1], IN_DIM, H1)
    w2, b2 = linear(ks[2], ks[3], H1, H2)
    w3, b3 = linear(ks[4], ks[5], H2, OUT_DIM)
    return (w1, b1, w2, b2, w3, b3)


def reference_forward(x, params):
    """Pure-f32 reference (kernel runs bf16 matmuls with f32 accumulation)."""
    w1, b1, w2, b2, w3, b3 = params
    h = x.reshape(-1, IN_DIM).astype(jnp.float32)
    h = jnp.maximum(h @ w1 + b1, 0.0)
    h = jnp.maximum(h @ w2 + b2, 0.0)
    return h @ w3 + b3


if __name__ == "__main__":
    key = jax.random.PRNGKey(0)
    k_x, k_p = jax.random.split(key)

    params = init_params(k_p)
    prepped = prepare_params(params)

    # MNIST-style small batch: (2, 1, 28, 28).
    x_small = jax.random.normal(k_x, (2, 1, 28, 28), dtype=jnp.float32)
    out_small = jax.block_until_ready(mlp_net_forward(x_small, prepped))
    ref_small = reference_forward(x_small, params)
    assert out_small.shape == (2, OUT_DIM)
    # bf16 MXU inputs / bf16 logits vs f32 reference -> bf16-scale tolerance.
    assert jnp.allclose(out_small.astype(jnp.float32), ref_small,
                        atol=5e-2, rtol=5e-2), "mismatch vs reference (small batch)"

    # Larger batch with a small explicit tile: exercises the multi-step grid with
    # VMEM-resident weights reused across steps, plus row padding.
    x_multi = jax.random.normal(k_x, (160, 1, 28, 28), dtype=jnp.float32)
    out_multi = jax.block_until_ready(mlp_net_forward(x_multi, prepped, tm=64))
    ref_multi = reference_forward(x_multi, params)
    assert out_multi.shape == (160, OUT_DIM)
    assert jnp.allclose(out_multi.astype(jnp.float32), ref_multi,
                        atol=5e-2, rtol=5e-2), "mismatch vs reference (multi-tile)"

    print("KERNEL_OK")
</pallas_src>

<mosaic_0001>
module attributes {stable_mosaic.version = 11 : i64} {
  func.func @_mlp_kernel(%arg0: i32, %arg1: memref<16x896xbf16, #tpu.memory_space<vmem>>, %arg2: memref<896x512xbf16, #tpu.memory_space<vmem>>, %arg3: memref<1x512xf32, #tpu.memory_space<vmem>>, %arg4: memref<512x256xbf16, #tpu.memory_space<vmem>>, %arg5: memref<1x256xf32, #tpu.memory_space<vmem>>, %arg6: memref<256x128xbf16, #tpu.memory_space<vmem>>, %arg7: memref<1x128xf32, #tpu.memory_space<vmem>>, %arg8: memref<16x128xbf16, #tpu.memory_space<vmem>>) attributes {dimension_semantics = [#tpu.dimension_semantics<parallel>], iteration_bounds = array<i64: 1>, scalar_prefetch = 0 : i64, scratch_operands = 0 : i64, tpu.core_type = #tpu.core_type<tc>, window_params = [{transform_indices = @transform_0, window_bounds = array<i64: 16, 896>}, {pipeline_mode = #tpu.pipeline_mode<synchronous>, transform_indices = @transform_1, window_bounds = array<i64: 896, 512>}, {pipeline_mode = #tpu.pipeline_mode<synchronous>, transform_indices = @transform_2, window_bounds = array<i64: 1, 512>}, {pipeline_mode = #tpu.pipeline_mode<synchronous>, transform_indices = @transform_3, window_bounds = array<i64: 512, 256>}, {pipeline_mode = #tpu.pipeline_mode<synchronous>, transform_indices = @transform_4, window_bounds = array<i64: 1, 256>}, {pipeline_mode = #tpu.pipeline_mode<synchronous>, transform_indices = @transform_5, window_bounds = array<i64: 256, 128>}, {pipeline_mode = #tpu.pipeline_mode<synchronous>, transform_indices = @transform_6, window_bounds = array<i64: 1, 128>}, {transform_indices = @transform_7, window_bounds = array<i64: 16, 128>}]} {
    %c0 = arith.constant 0 : index
    %c0_0 = arith.constant 0 : index
    %0 = vector.load %arg1[%c0, %c0_0] : memref<16x896xbf16, #tpu.memory_space<vmem>>, vector<16x896xbf16>
    %c0_1 = arith.constant 0 : index
    %c0_2 = arith.constant 0 : index
    %1 = vector.load %arg2[%c0_1, %c0_2] : memref<896x512xbf16, #tpu.memory_space<vmem>>, vector<896x512xbf16>
    %cst = arith.constant dense<0.000000e+00> : vector<16x512xf32>
    %2 = tpu.matmul %0, %1, %cst {dimension_numbers = #tpu.dot_dimension_numbers<[1], [0], [0], [1], [0, 0, 1, 1], [], []>} : vector<16x896xbf16>, vector<896x512xbf16>, vector<16x512xf32> -> vector<16x512xf32>
    %c0_3 = arith.constant 0 : index
    %c0_4 = arith.constant 0 : index
    %3 = vector.load %arg3[%c0_3, %c0_4] : memref<1x512xf32, #tpu.memory_space<vmem>>, vector<1x512xf32>
    %4 = vector.broadcast %3 : vector<1x512xf32> to vector<16x512xf32>
    %5 = arith.addf %2, %4 : vector<16x512xf32>
    %cst_5 = arith.constant 0.000000e+00 : f32
    %6 = vector.broadcast %cst_5 : f32 to vector<16x512xf32>
    %7 = arith.maximumf %5, %6 : vector<16x512xf32>
    %8 = arith.truncf %7 : vector<16x512xf32> to vector<16x512xbf16>
    %c0_6 = arith.constant 0 : index
    %c0_7 = arith.constant 0 : index
    %9 = vector.load %arg4[%c0_6, %c0_7] : memref<512x256xbf16, #tpu.memory_space<vmem>>, vector<512x256xbf16>
    %cst_8 = arith.constant dense<0.000000e+00> : vector<16x256xf32>
    %10 = tpu.matmul %8, %9, %cst_8 {dimension_numbers = #tpu.dot_dimension_numbers<[1], [0], [0], [1], [0, 0, 1, 1], [], []>} : vector<16x512xbf16>, vector<512x256xbf16>, vector<16x256xf32> -> vector<16x256xf32>
    %c0_9 = arith.constant 0 : index
    %c0_10 = arith.constant 0 : index
    %11 = vector.load %arg5[%c0_9, %c0_10] : memref<1x256xf32, #tpu.memory_space<vmem>>, vector<1x256xf32>
    %12 = vector.broadcast %11 : vector<1x256xf32> to vector<16x256xf32>
    %13 = arith.addf %10, %12 : vector<16x256xf32>
    %cst_11 = arith.constant 0.000000e+00 : f32
    %14 = vector.broadcast %cst_11 : f32 to vector<16x256xf32>
    %15 = arith.maximumf %13, %14 : vector<16x256xf32>
    %16 = arith.truncf %15 : vector<16x256xf32> to vector<16x256xbf16>
    %c0_12 = arith.constant 0 : index
    %c0_13 = arith.constant 0 : index
    %17 = vector.load %arg6[%c0_12, %c0_13] : memref<256x128xbf16, #tpu.memory_space<vmem>>, vector<256x128xbf16>
    %cst_14 = arith.constant dense<0.000000e+00> : vector<16x128xf32>
    %18 = tpu.matmul %16, %17, %cst_14 {dimension_numbers = #tpu.dot_dimension_numbers<[1], [0], [0], [1], [0, 0, 1, 1], [], []>} : vector<16x256xbf16>, vector<256x128xbf16>, vector<16x128xf32> -> vector<16x128xf32>
    %c0_15 = arith.constant 0 : index
    %c0_16 = arith.constant 0 : index
    %19 = vector.load %arg7[%c0_15, %c0_16] : memref<1x128xf32, #tpu.memory_space<vmem>>, vector<1x128xf32>
    %20 = vector.broadcast %19 : vector<1x128xf32> to vector<16x128xf32>
    %21 = arith.addf %18, %20 : vector<16x128xf32>
    %22 = arith.truncf %21 : vector<16x128xf32> to vector<16x128xbf16>
    %c0_17 = arith.constant 0 : index
    %c0_18 = arith.constant 0 : index
    %23 = vector.load %arg8[%c0_17, %c0_18] : memref<16x128xbf16, #tpu.memory_space<vmem>>, vector<16x128xbf16>
    tpu.vector_store %arg8[%c0_17, %c0_18], %22 {strides = array<i32>} : memref<16x128xbf16, #tpu.memory_space<vmem>>, vector<16x128xbf16>,
    return
  }
  func.func @transform_0(%arg0: i32) -> (i32, i32) {
    %c0_i32 = arith.constant 0 : i32
    %c0_i32_0 = arith.constant 0 : i32
    return %arg0, %c0_i32 : i32, i32
  }
  func.func @transform_1(%arg0: i32) -> (i32, i32) {
    %c0_i32 = arith.constant 0 : i32
    %c0_i32_0 = arith.constant 0 : i32
    %c0_i32_1 = arith.constant 0 : i32
    return %c0_i32, %c0_i32_0 : i32, i32
  }
  func.func @transform_2(%arg0: i32) -> (i32, i32) {
    %c0_i32 = arith.constant 0 : i32
    %c0_i32_0 = arith.constant 0 : i32
    %c0_i32_1 = arith.constant 0 : i32
    return %c0_i32, %c0_i32_0 : i32, i32
  }
  func.func @transform_3(%arg0: i32) -> (i32, i32) {
    %c0_i32 = arith.constant 0 : i32
    %c0_i32_0 = arith.constant 0 : i32
    %c0_i32_1 = arith.constant 0 : i32
    return %c0_i32, %c0_i32_0 : i32, i32
  }
  func.func @transform_4(%arg0: i32) -> (i32, i32) {
    %c0_i32 = arith.constant 0 : i32
    %c0_i32_0 = arith.constant 0 : i32
    %c0_i32_1 = arith.constant 0 : i32
    return %c0_i32, %c0_i32_0 : i32, i32
  }
  func.func @transform_5(%arg0: i32) -> (i32, i32) {
    %c0_i32 = arith.constant 0 : i32
    %c0_i32_0 = arith.constant 0 : i32
    %c0_i32_1 = arith.constant 0 : i32
    return %c0_i32, %c0_i32_0 : i32, i32
  }
  func.func @transform_6(%arg0: i32) -> (i32, i32) {
    %c0_i32 = arith.constant 0 : i32
    %c0_i32_0 = arith.constant 0 : i32
    %c0_i32_1 = arith.constant 0 : i32
    return %c0_i32, %c0_i32_0 : i32, i32
  }
  func.func @transform_7(%arg0: i32) -> (i32, i32) {
    %c0_i32 = arith.constant 0 : i32
    %c0_i32_0 = arith.constant 0 : i32
    return %arg0, %c0_i32 : i32, i32
  }
}

module attributes {stable_mosaic.version = 11 : i64} {
  func.func @_mlp_kernel(%arg0: i32, %arg1: memref<16x896xbf16, #tpu.memory_space<vmem>>, %arg2: memref<896x512xbf16, #tpu.memory_space<vmem>>, %arg3: memref<1x512xf32, #tpu.memory_space<vmem>>, %arg4: memref<512x256xbf16, #tpu.memory_space<vmem>>, %arg5: memref<1x256xf32, #tpu.memory_space<vmem>>, %arg6: memref<256x128xbf16, #tpu.memory_space<vmem>>, %arg7: memref<1x128xf32, #tpu.memory_space<vmem>>, %arg8: memref<16x128xbf16, #tpu.memory_space<vmem>>) attributes {dimension_semantics = [#tpu.dimension_semantics<parallel>], iteration_bounds = array<i64: 1>, scalar_prefetch = 0 : i64, scratch_operands = 0 : i64, tpu.core_type = #tpu.core_type<tc>, window_params = [{transform_indices = @transform_0, window_bounds = array<i64: 16, 896>}, {pipeline_mode = #tpu.pipeline_mode<synchronous>, transform_indices = @transform_1, window_bounds = array<i64: 896, 512>}, {pipeline_mode = #tpu.pipeline_mode<synchronous>, transform_indices = @transform_2, window_bounds = array<i64: 1, 512>}, {pipeline_mode = #tpu.pipeline_mode<synchronous>, transform_indices = @transform_3, window_bounds = array<i64: 512, 256>}, {pipeline_mode = #tpu.pipeline_mode<synchronous>, transform_indices = @transform_4, window_bounds = array<i64: 1, 256>}, {pipeline_mode = #tpu.pipeline_mode<synchronous>, transform_indices = @transform_5, window_bounds = array<i64: 256, 128>}, {pipeline_mode = #tpu.pipeline_mode<synchronous>, transform_indices = @transform_6, window_bounds = array<i64: 1, 128>}, {transform_indices = @transform_7, window_bounds = array<i64: 16, 128>}]} {
    %c0 = arith.constant 0 : index
    %c0_0 = arith.constant 0 : index
    %0 = vector.load %arg1[%c0, %c0_0] : memref<16x896xbf16, #tpu.memory_space<vmem>>, vector<16x896xbf16>
    %c0_1 = arith.constant 0 : index
    %c0_2 = arith.constant 0 : index
    %1 = vector.load %arg2[%c0_1, %c0_2] : memref<896x512xbf16, #tpu.memory_space<vmem>>, vector<896x512xbf16>
    %cst = arith.constant dense<0.000000e+00> : vector<16x512xf32>
    %2 = tpu.matmul %0, %1, %cst {dimension_numbers = #tpu.dot_dimension_numbers<[1], [0], [0], [1], [0, 0, 1, 1], [], []>} : vector<16x896xbf16>, vector<896x512xbf16>, vector<16x512xf32> -> vector<16x512xf32>
    %c0_3 = arith.constant 0 : index
    %c0_4 = arith.constant 0 : index
    %3 = vector.load %arg3[%c0_3, %c0_4] : memref<1x512xf32, #tpu.memory_space<vmem>>, vector<1x512xf32>
    %4 = vector.broadcast %3 : vector<1x512xf32> to vector<16x512xf32>
    %5 = arith.addf %2, %4 : vector<16x512xf32>
    %cst_5 = arith.constant 0.000000e+00 : f32
    %6 = vector.broadcast %cst_5 : f32 to vector<16x512xf32>
    %7 = arith.maximumf %5, %6 : vector<16x512xf32>
    %8 = arith.truncf %7 : vector<16x512xf32> to vector<16x512xbf16>
    %c0_6 = arith.constant 0 : index
    %c0_7 = arith.constant 0 : index
    %9 = vector.load %arg4[%c0_6, %c0_7] : memref<512x256xbf16, #tpu.memory_space<vmem>>, vector<512x256xbf16>
    %cst_8 = arith.constant dense<0.000000e+00> : vector<16x256xf32>
    %10 = tpu.matmul %8, %9, %cst_8 {dimension_numbers = #tpu.dot_dimension_numbers<[1], [0], [0], [1], [0, 0, 1, 1], [], []>} : vector<16x512xbf16>, vector<512x256xbf16>, vector<16x256xf32> -> vector<16x256xf32>
    %c0_9 = arith.constant 0 : index
    %c0_10 = arith.constant 0 : index
    %11 = vector.load %arg5[%c0_9, %c0_10] : memref<1x256xf32, #tpu.memory_space<vmem>>, vector<1x256xf32>
    %12 = vector.broadcast %11 : vector<1x256xf32> to vector<16x256xf32>
    %13 = arith.addf %10, %12 : vector<16x256xf32>
    %cst_11 = arith.constant 0.000000e+00 : f32
    %14 = vector.broadcast %cst_11 : f32 to vector<16x256xf32>
    %15 = arith.maximumf %13, %14 : vector<16x256xf32>
    %16 = arith.truncf %15 : vector<16x256xf32> to vector<16x256xbf16>
    %c0_12 = arith.constant 0 : index
    %c0_13 = arith.constant 0 : index
    %17 = vector.load %arg6[%c0_12, %c0_13] : memref<256x128xbf16, #tpu.memory_space<vmem>>, vector<256x128xbf16>
    %cst_14 = arith.constant dense<0.000000e+00> : vector<16x128xf32>
    %18 = tpu.matmul %16, %17, %cst_14 {dimension_numbers = #tpu.dot_dimension_numbers<[1], [0], [0], [1], [0, 0, 1, 1], [], []>} : vector<16x256xbf16>, vector<256x128xbf16>, vector<16x128xf32> -> vector<16x128xf32>
    %c0_15 = arith.constant 0 : index
    %c0_16 = arith.constant 0 : index
    %19 = vector.load %arg7[%c0_15, %c0_16] : memref<1x128xf32, #tpu.memory_space<vmem>>, vector<1x128xf32>
    %20 = vector.broadcast %19 : vector<1x128xf32> to vector<16x128xf32>
    %21 = arith.addf %18, %20 : vector<16x128xf32>
    %22 = arith.truncf %21 : vector<16x128xf32> to vector<16x128xbf16>
    %c0_17 = arith.constant 0 : index
    %c0_18 = arith.constant 0 : index
    %23 = vector.load %arg8[%c0_17, %c0_18] : memref<16x128xbf16, #tpu.memory_space<vmem>>, vector<16x128xbf16>
    tpu.vector_store %arg8[%c0_17, %c0_18], %22 {strides = array<i32>} : memref<16x128xbf16, #tpu.memory_space<vmem>>, vector<16x128xbf16>,
    return
  }
  func.func @transform_0(%arg0: i32) -> (i32, i32) {
    %c0_i32 = arith.constant 0 : i32
    %c0_i32_0 = arith.constant 0 : i32
    return %arg0, %c0_i32 : i32, i32
  }
  func.func @transform_1(%arg0: i32) -> (i32, i32) {
    %c0_i32 = arith.constant 0 : i32
    %c0_i32_0 = arith.constant 0 : i32
    %c0_i32_1 = arith.constant 0 : i32
    return %c0_i32, %c0_i32_0 : i32, i32
  }
  func.func @transform_2(%arg0: i32) -> (i32, i32) {
    %c0_i32 = arith.constant 0 : i32
    %c0_i32_0 = arith.constant 0 : i32
    %c0_i32_1 = arith.constant 0 : i32
    return %c0_i32, %c0_i32_0 : i32, i32
  }
  func.func @transform_3(%arg0: i32) -> (i32, i32) {
    %c0_i32 = arith.constant 0 : i32
    %c0_i32_0 = arith.constant 0 : i32
    %c0_i32_1 = arith.constant 0 : i32
    return %c0_i32, %c0_i32_0 : i32, i32
  }
  func.func @transform_4(%arg0: i32) -> (i32, i32) {
    %c0_i32 = arith.constant 0 : i32
    %c0_i32_0 = arith.constant 0 : i32
    %c0_i32_1 = arith.constant 0 : i32
    return %c0_i32, %c0_i32_0 : i32, i32
  }
  func.func @transform_5(%arg0: i32) -> (i32, i32) {
    %c0_i32 = arith.constant 0 : i32
    %c0_i32_0 = arith.constant 0 : i32
    %c0_i32_1 = arith.constant 0 : i32
    return %c0_i32, %c0_i32_0 : i32, i32
  }
  func.func @transform_6(%arg0: i32) -> (i32, i32) {
    %c0_i32 = arith.constant 0 : i32
    %c0_i32_0 = arith.constant 0 : i32
    %c0_i32_1 = arith.constant 0 : i32
    return %c0_i32, %c0_i32_0 : i32, i32
  }
  func.func @transform_7(%arg0: i32) -> (i32, i32) {
    %c0_i32 = arith.constant 0 : i32
    %c0_i32_0 = arith.constant 0 : i32
    return %arg0, %c0_i32 : i32, i32
  }
}

</mosaic_0001>

<bundles_post_ra>
// kernel: tpu_custom_call.1
= control target key start
LH: loop header
LB: loop body
LE: loop exit
PB: predicated region body
PF: predicated region fallthrough
CT: control target
= control target key end

     0   :  { %12 = vsyncpa [#allocation3], 0  ;;  %s3623_s0 = inlined_call_operand.hbm [shape: bf16[16,896], index: 0, kind: input, shape index: {}]   ;;  %s3624_s1 = inlined_call_operand.hbm [shape: bf16[896,512], index: 1, kind: input, shape index: {}]   ;;  %s3625_s2 = inlined_call_operand.hbm [shape: f32[1,512], index: 2, kind: input, shape index: {}]   ;;  %s3626_s3 = inlined_call_operand.hbm [shape: bf16[512,256], index: 3, kind: input, shape index: {}]   ;;  %s3627_s4 = inlined_call_operand.vmem [shape: f32[1,256], index: 4, kind: input, shape index: {}]   ;;  %s3628_s5 = inlined_call_operand.hbm [shape: bf16[256,128], index: 5, kind: input, shape index: {}]   ;;  %s3629_s6 = inlined_call_operand.vmem [shape: f32[1,128], index: 6, kind: input, shape index: {}]   ;;  %s3630_s7 = inlined_call_operand.hbm [shape: bf16[16,128], index: 7, kind: output, shape index: {}]  }
   0x1   :  { %13 = vsyncpa [#allocation6], 0 }
   0x2   :  { %14 = vsyncpa [#allocation9], 0 }
   0x3   :  { %15 = vsyncpa [#allocation4], 0  ;;  %s3498_s24 = smov [#allocation5]  }
   0x4   :  { %s33_s25 = sshll.u32 %s3498_s24, 4  ;;  %s34_s25 = int_to_ptr.vmem [resolvable:$true] %s33_s25 }
   0x5   :  { %s3378_s26 = scalar_lea.vmem %s34_s25, 28672  ;;  %p3383_p1 = scmp.lt.s32.totalorder %s34_s25, %s34_s25 }
   0x6   :  { %p3379_p0 = scmp.ne.s32.totalorder %s34_s25, %s3378_s26  ;;  %p3384_p2 = scmp.lt.s32.totalorder %s3378_s26, %s3378_s26 }
   0x8   :  { %p3385_p3 = por %p3384_p2, %p3383_p1 }
   0xa   :  { %p3386_p4 = pnand %p3385_p3, %p3379_p0 }
   0xc   :  { %3389 = shalt.err (!%p3386_p4)
}
   0xd   :  { %s3499_s27 = smov 256   ;;  %s3500_s28 = smov 16  }
   0xe   :  { %39 = dma.hbm_to_vmem [thread:$0]  %s3624_s1, 28672, %s34_s25, [#allocation6], %s3499_s27, %s3499_s27, %s3500_s28  }
   0xf   :  { %s3501_s8 = smov [#allocation8]  }
  0x10   :  { %s55_s9 = sshll.u32 %s3501_s8, 4  ;;  %s56_s9 = int_to_ptr.vmem [resolvable:$true] %s55_s9 }
  0x11   :  { %s3398_s10 = scalar_lea.vmem %s56_s9, 8192  ;;  %p3403_p6 = scmp.lt.s32.totalorder %s56_s9, %s56_s9 }
  0x12   :  { %p3399_p5 = scmp.ne.s32.totalorder %s56_s9, %s3398_s10  ;;  %p3404_p7 = scmp.lt.s32.totalorder %s3398_s10, %s3398_s10 }
  0x14   :  { %p3405_p8 = por %p3404_p7, %p3403_p6 }
  0x16   :  { %p3406_p9 = pnand %p3405_p8, %p3399_p5 }
  0x18   :  { %3409 = shalt.err (!%p3406_p9)
}
  0x19   :  { %s3502_s11 = smov 128   ;;  %s3503_s12 = smov 8  }
  0x1a   :  { %61 = dma.hbm_to_vmem [thread:$0]  %s3626_s3, 8192, %s56_s9, [#allocation9], %s3502_s11, %s3502_s11, %s3503_s12  }
  0x1b   :  { %s3504_s15 = smov [#allocation2]  }
  0x1c   :  { %s21_s16 = sshll.u32 %s3504_s15, 4  ;;  %s22_s16 = int_to_ptr.vmem [resolvable:$true] %s21_s16 }
  0x1d   :  { %s3418_s1 = scalar_lea.vmem %s22_s16, 896  ;;  %p3423_p11 = scmp.lt.s32.totalorder %s22_s16, %s22_s16 }
  0x1e   :  { %p3419_p10 = scmp.ne.s32.totalorder %s22_s16, %s3418_s1  ;;  %p3424_p12 = scmp.lt.s32.totalorder %s3418_s1, %s3418_s1 }
  0x20   :  { %p3425_p13 = por %p3424_p12, %p3423_p11 }
  0x22   :  { %p3426_p0 = pnand %p3425_p13, %p3419_p10 }
  0x24   :  { %3429 = shalt.err (!%p3426_p0)
}
  0x25   :  { %s3505_s17 = smov 448   ;;  %s3506_s18 = smov 28  }
  0x26   :  { %27 = dma.hbm_to_vmem [thread:$0]  %s3623_s0, 896, %s22_s16, [#allocation3], %s3505_s17, %s3505_s17, %s3506_s18  }
  0x27   :  { %s3507_s21 = smov [#allocation7]   ;;  %s3508_s3 = smov [#allocation10]  }
  0x28   :  { %s46_s22 = sshll.u32 %s3507_s21, 4  ;;  %s69_s23 = sshll.u32 %s3508_s3, 4  ;;  %s47_s22 = int_to_ptr.vmem [resolvable:$true] %s46_s22  ;;  %s70_s23 = int_to_ptr.vmem [resolvable:$true] %s69_s23 }
  0x29   :  { %s3438_s24 = scalar_lea.vmem %s47_s22, 64  ;;  %p3443_p2 = scmp.lt.s32.totalorder %s47_s22, %s47_s22 }
  0x2a   :  { %p3439_p1 = scmp.ne.s32.totalorder %s47_s22, %s3438_s24  ;;  %p3444_p3 = scmp.lt.s32.totalorder %s3438_s24, %s3438_s24 }
  0x2c   :  { %p3445_p4 = por %p3444_p3, %p3443_p2 }
  0x2e   :  { %p3446_p5 = pnand %p3445_p4, %p3439_p1 }
  0x30   :  { %3449 = shalt.err (!%p3446_p5)
}
  0x31   :  { %49 = dma.hbm_to_vmem [thread:$0]  %s3625_s2, 64, %s47_s22, [#allocation6]  }
  0x32   :  { %s3458_s27 = scalar_lea.vmem %s70_s23, 2048  ;;  %p3463_p7 = scmp.lt.s32.totalorder %s70_s23, %s70_s23 }
  0x33   :  { %p3459_p6 = scmp.ne.s32.totalorder %s70_s23, %s3458_s27  ;;  %p3464_p8 = scmp.lt.s32.totalorder %s3458_s27, %s3458_s27 }
  0x35   :  { %p3465_p9 = por %p3464_p8, %p3463_p7 }
  0x37   :  { %p3466_p10 = pnand %p3465_p9, %p3459_p6 }
  0x39   :  { %3469 = shalt.err (!%p3466_p10)
}
  0x3a   :  { %s3509_s0 = smov 64   ;;  %s3510_s28 = smov 4  }
  0x3b   :  { %75 = dma.hbm_to_vmem [thread:$0]  %s3628_s5, 2048, %s70_s23, [#allocation9], %s3509_s0, %s3509_s0, %s3510_s28  }
  0x3c   :  { %3490 = dma.done.wait [#allocation3], 896  }
  0x3d   :  { %3491 = vsyncadd [#allocation3], 4294966400 }
  0x3e   :  { %3492 = dma.done.wait [#allocation6], 28736  }
  0x3f   :  { %3493 = vsyncadd [#allocation6], 4294938560 }
  0x40   :  { %3494 = dma.done.wait [#allocation9], 10240  }
  0x41   :  { %3495 = vsyncadd [#allocation9], 4294957056  ;;  %v2911_v0 = vld [vmem:[#allocation5 + $0xe4] ss:$16 sps:$4 sm:$0xff]   ;;  %v2915_v2 = vld [vmem:[#allocation5 + $0xe0] ss:$16 sps:$4 sm:$0xff]  }
  0x42   :  { %v2913_v1 = vld [vmem:[#allocation5 + $0x2e4] ss:$16 sps:$4 sm:$0xff]   ;;  %1504 = vmatprep.subr.bf16.mxu0 %v2911_v0  ;;  %v2916_v3 = vld [vmem:[#allocation5 + $0x2e0] ss:$16 sps:$4 sm:$0xff]   ;;  %v3571_v49 = vld [vmem:[#allocation2 + $0x4] ss:$28 sps:$4 sm:$0xff]  }
  0x43   :  { %1547 = vmatprep.subr.bf16.mxu1 %v2913_v1  ;;  %v2917_v4 = vld [vmem:[#allocation5 + $0xc4] ss:$16 sps:$4 sm:$0xff]   ;;  %1505 = vmatpush1.bf16.msra.mxu0 %v2915_v2  ;;  %v2921_v6 = vld [vmem:[#allocation5 + $0xc0] ss:$16 sps:$4 sm:$0xff]   ;;  %s3512_s9 = smov [#allocation11]  }
  0x44   :  { %1548 = vmatpush1.bf16.msra.mxu1 %v2916_v3  ;;  %v2919_v5 = vld [vmem:[#allocation5 + $0x2c4] ss:$16 sps:$4 sm:$0xff]   ;;  %1506 = vmatprep.subr.bf16.mxu0 %v2917_v4  ;;  %v2922_v7 = vld [vmem:[#allocation5 + $0x2c0] ss:$16 sps:$4 sm:$0xff]   ;;  %s2539_s10 = sshll.u32 %s3512_s9, 4  ;;  %s2540_s10 = int_to_ptr.vmem [resolvable:$true] %s2539_s10 }
  0x45   :  { %1549 = vmatprep.subr.bf16.mxu1 %v2919_v5  ;;  %v2923_v8 = vld [vmem:[#allocation5 + $0xa4] ss:$16 sps:$4 sm:$0xff]   ;;  %v2927_v10 = vld [vmem:[#allocation5 + $0xa0] ss:$16 sps:$4 sm:$0xff]   ;;  %1536 = vmatprep.mubr.bf16.mxu0 %v3571_v49  ;;  %s3470_s11 = scalar_lea.vmem %s2540_s10, 128  ;;  %p3475_p12 = scmp.lt.s32.totalorder %s2540_s10, %s2540_s10 }
  0x46   :  { %v2925_v9 = vld [vmem:[#allocation5 + $0x2a4] ss:$16 sps:$4 sm:$0xff]   ;;  %v2928_v11 = vld [vmem:[#allocation5 + $0x2a0] ss:$16 sps:$4 sm:$0xff]   ;;  %p3471_p11 = scmp.ne.s32.totalorder %s2540_s10, %s3470_s11  ;;  %p3476_p13 = scmp.lt.s32.totalorder %s3470_s11, %s3470_s11 }
  0x47   :  { %1507 = vmatpush1.bf16.msra.mxu0 %v2921_v6  ;;  %v2929_v12 = vld [vmem:[#allocation5 + $0x84] ss:$16 sps:$4 sm:$0xff]   ;;  %v2933_v14 = vld [vmem:[#allocation5 + $0x80] ss:$16 sps:$4 sm:$0xff]  }
  0x48   :  { %1550 = vmatpush1.bf16.msra.mxu1 %v2922_v7  ;;  %1508 = vmatprep.subr.bf16.mxu0 %v2923_v8  ;;  %v2931_v13 = vld [vmem:[#allocation5 + $0x284] ss:$16 sps:$4 sm:$0xff]   ;;  %v2934_v15 = vld [vmem:[#allocation5 + $0x280] ss:$16 sps:$4 sm:$0xff]   ;;  %p3477_p0 = por %p3476_p13, %p3475_p12 }
  0x49   :  { %1551 = vmatprep.subr.bf16.mxu1 %v2925_v9  ;;  %v2935_v16 = vld [vmem:[#allocation5 + $0x64] ss:$16 sps:$4 sm:$0xff]   ;;  %v2939_v18 = vld [vmem:[#allocation5 + $0x60] ss:$16 sps:$4 sm:$0xff]  }
  0x4a   :  { %v2937_v17 = vld [vmem:[#allocation5 + $0x264] ss:$16 sps:$4 sm:$0xff]   ;;  %v2940_v19 = vld [vmem:[#allocation5 + $0x260] ss:$16 sps:$4 sm:$0xff]   ;;  %p3478_p1 = pnand %p3477_p0, %p3471_p11 }
  0x4b   :  { %1509 = vmatpush1.bf16.msra.mxu0 %v2927_v10  ;;  %v2941_v20 = vld [vmem:[#allocation5 + $0x44] ss:$16 sps:$4 sm:$0xff]   ;;  %v2945_v22 = vld [vmem:[#allocation5 + $0x40] ss:$16 sps:$4 sm:$0xff]  }
  0x4c   :  { %1552 = vmatpush1.bf16.msra.mxu1 %v2928_v11  ;;  %1510 = vmatprep.subr.bf16.mxu0 %v2929_v12  ;;  %v2943_v21 = vld [vmem:[#allocation5 + $0x244] ss:$16 sps:$4 sm:$0xff]   ;;  %v2946_v23 = vld [vmem:[#allocation5 + $0x240] ss:$16 sps:$4 sm:$0xff]  }
  0x4d   :  { %1553 = vmatprep.subr.bf16.mxu1 %v2931_v13  ;;  %v2947_v24 = vld [vmem:[#allocation5 + $0x24] ss:$16 sps:$4 sm:$0xff]   ;;  %v2951_v26 = vld [vmem:[#allocation5 + $0x20] ss:$16 sps:$4 sm:$0xff]  }
  0x4e   :  { %v2949_v25 = vld [vmem:[#allocation5 + $0x224] ss:$16 sps:$4 sm:$0xff]   ;;  %v2952_v27 = vld [vmem:[#allocation5 + $0x220] ss:$16 sps:$4 sm:$0xff]  }
  0x4f   :  { %1511 = vmatpush1.bf16.msra.mxu0 %v2933_v14  ;;  %v2953_v28 = vld [vmem:[#allocation5 + $0x4] ss:$16 sps:$4 sm:$0xff]   ;;  %v2957_v30 = vld [vmem:[#allocation5] ss:$16 sps:$4 sm:$0xff]   ;;  %v3511_v14 = vmov 0  }
  0x50   :  { %1554 = vmatpush1.bf16.msra.mxu1 %v2934_v15  ;;  %1512 = vmatprep.subr.bf16.mxu0 %v2935_v16  ;;  %v2955_v29 = vld [vmem:[#allocation5 + $0x204] ss:$16 sps:$4 sm:$0xff]   ;;  %v2958_v31 = vld [vmem:[#allocation5 + $0x200] ss:$16 sps:$4 sm:$0xff]  }
  0x51   :  { %1555 = vmatprep.subr.bf16.mxu1 %v2937_v17  ;;  %v2959_v32 = vld [vmem:[#allocation5 + $0x1e4] ss:$16 sps:$4 sm:$0xff]   ;;  %v2963_v34 = vld [vmem:[#allocation5 + $0x1e0] ss:$16 sps:$4 sm:$0xff]  }
  0x52   :  { %v2961_v33 = vld [vmem:[#allocation5 + $0x3e4] ss:$16 sps:$4 sm:$0xff]   ;;  %v2964_v35 = vld [vmem:[#allocation5 + $0x3e0] ss:$16 sps:$4 sm:$0xff]  }
  0x53   :  { %1513 = vmatpush1.bf16.msra.mxu0 %v2939_v18  ;;  %v2965_v36 = vld [vmem:[#allocation5 + $0x1c4] ss:$16 sps:$4 sm:$0xff]   ;;  %v2969_v38 = vld [vmem:[#allocation5 + $0x1c0] ss:$16 sps:$4 sm:$0xff]  }
  0x54   :  { %1556 = vmatpush1.bf16.msra.mxu1 %v2940_v19  ;;  %1514 = vmatprep.subr.bf16.mxu0 %v2941_v20  ;;  %v2967_v37 = vld [vmem:[#allocation5 + $0x3c4] ss:$16 sps:$4 sm:$0xff]   ;;  %v2970_v39 = vld [vmem:[#allocation5 + $0x3c0] ss:$16 sps:$4 sm:$0xff]  }
  0x55   :  { %1557 = vmatprep.subr.bf16.mxu1 %v2943_v21  ;;  %v2971_v40 = vld [vmem:[#allocation5 + $0x1a4] ss:$16 sps:$4 sm:$0xff]   ;;  %v2975_v42 = vld [vmem:[#allocation5 + $0x1a0] ss:$16 sps:$4 sm:$0xff]  }
  0x56   :  { %v2973_v41 = vld [vmem:[#allocation5 + $0x3a4] ss:$16 sps:$4 sm:$0xff]   ;;  %v2976_v43 = vld [vmem:[#allocation5 + $0x3a0] ss:$16 sps:$4 sm:$0xff]  }
  0x57   :  { %1515 = vmatpush1.bf16.msra.mxu0 %v2945_v22  ;;  %v2977_v44 = vld [vmem:[#allocation5 + $0x184] ss:$16 sps:$4 sm:$0xff]   ;;  %v2981_v46 = vld [vmem:[#allocation5 + $0x180] ss:$16 sps:$4 sm:$0xff]  }
  0x58   :  { %1558 = vmatpush1.bf16.msra.mxu1 %v2946_v23  ;;  %1516 = vmatprep.subr.bf16.mxu0 %v2947_v24  ;;  %v2979_v45 = vld [vmem:[#allocation5 + $0x384] ss:$16 sps:$4 sm:$0xff]   ;;  %v2982_v47 = vld [vmem:[#allocation5 + $0x380] ss:$16 sps:$4 sm:$0xff]  }
  0x59   :  { %1559 = vmatprep.subr.bf16.mxu1 %v2949_v25  ;;  %v2983_v48 = vld [vmem:[#allocation5 + $0x164] ss:$16 sps:$4 sm:$0xff]   ;;  %v2987_v52 = vld [vmem:[#allocation5 + $0x160] ss:$16 sps:$4 sm:$0xff]  }
  0x5a   :  { %v2985_v50 = vld [vmem:[#allocation5 + $0x364] ss:$16 sps:$4 sm:$0xff]   ;;  %v2988_v53 = vld [vmem:[#allocation5 + $0x360] ss:$16 sps:$4 sm:$0xff]  }
  0x5b   :  { %1517 = vmatpush1.bf16.msra.mxu0 %v2951_v26  ;;  %v3573_v51 = vld [vmem:[#allocation2 + $0xc] ss:$28 sps:$4 sm:$0xff]   ;;  %v3577_v4 = vld [vmem:[#allocation2] ss:$28 sps:$4 sm:$0xff]  }
  0x5c   :  { %1560 = vmatpush1.bf16.msra.mxu1 %v2952_v27  ;;  %1518 = vmatprep.subr.bf16.mxu0 %v2953_v28  ;;  %v2989_v54 = vld [vmem:[#allocation5 + $0x144] ss:$16 sps:$4 sm:$0xff]   ;;  %v2993_v56 = vld [vmem:[#allocation5 + $0x140] ss:$16 sps:$4 sm:$0xff]  }
  0x5d   :  { %1561 = vmatprep.subr.bf16.mxu1 %v2955_v29  ;;  %1579 = vmatprep.mubr.bf16.mxu1 %v3573_v51  ;;  %v2991_v55 = vld [vmem:[#allocation5 + $0x344] ss:$16 sps:$4 sm:$0xff]   ;;  %v2994_v57 = vld [vmem:[#allocation5 + $0x340] ss:$16 sps:$4 sm:$0xff]  }
  0x5e   :  { %v2995_v58 = vld [vmem:[#allocation5 + $0x124] ss:$16 sps:$4 sm:$0xff]   ;;  %v2999_v60 = vld [vmem:[#allocation5 + $0x120] ss:$16 sps:$4 sm:$0xff]  }
  0x5f   :  { %1519 = vmatpush1.bf16.msra.mxu0 %v2957_v30  ;;  %v2997_v59 = vld [vmem:[#allocation5 + $0x324] ss:$16 sps:$4 sm:$0xff]   ;;  %v3000_v61 = vld [vmem:[#allocation5 + $0x320] ss:$16 sps:$4 sm:$0xff]  }
  0x60   :  { %1562 = vmatpush1.bf16.msra.mxu1 %v2958_v31  ;;  %1520 = vmatprep.subr.bf16.mxu0 %v2959_v32  ;;  %v3001_v62 = vld [vmem:[#allocation5 + $0x104] ss:$16 sps:$4 sm:$0xff]   ;;  %v3005_v0 = vld [vmem:[#allocation5 + $0x100] ss:$16 sps:$4 sm:$0xff]  }
  0x61   :  { %1563 = vmatprep.subr.bf16.mxu1 %v2961_v33  ;;  %v3003_v63 = vld [vmem:[#allocation5 + $0x304] ss:$16 sps:$4 sm:$0xff]   ;;  %v3006_v1 = vld [vmem:[#allocation5 + $0x300] ss:$16 sps:$4 sm:$0xff]  }
  0x62   :  { %v3015_v2 = vld [vmem:[#allocation5 + $0x4e4] ss:$16 sps:$4 sm:$0xff]   ;;  %v3010_v5 = vld [vmem:[#allocation2 + $0x8] ss:$28 sps:$4 sm:$0xff]  }
  0x63   :  { %1521 = vmatpush2.bf16.msra.mxu0 %v2963_v34  ;;  %v3018_v3 = vld [vmem:[#allocation5 + $0x6e4] ss:$16 sps:$4 sm:$0xff]   ;;  %v3013_v6 = vld [vmem:[#allocation5 + $0x4e0] ss:$16 sps:$4 sm:$0xff]  }
  0x64   :  { %1564 = vmatpush2.bf16.msra.mxu1 %v2964_v35  ;;  %1522 = vmatprep.subr.bf16.mxu0 %v2965_v36  ;;  %v3016_v7 = vld [vmem:[#allocation5 + $0x6e0] ss:$16 sps:$4 sm:$0xff]   ;;  %v3021_v8 = vld [vmem:[#allocation5 + $0x4c4] ss:$16 sps:$4 sm:$0xff]   ;;  %v3581_v35 = vld [vmem:[#allocation2 + $0x14] ss:$28 sps:$4 sm:$0xff]  }
  0x65   :  { %1565 = vmatprep.subr.bf16.mxu1 %v2967_v37  ;;  %v3024_v9 = vld [vmem:[#allocation5 + $0x6c4] ss:$16 sps:$4 sm:$0xff]   ;;  %v3019_v10 = vld [vmem:[#allocation5 + $0x4c0] ss:$16 sps:$4 sm:$0xff]  }
  0x66   :  { %v3022_v11 = vld [vmem:[#allocation5 + $0x6c0] ss:$16 sps:$4 sm:$0xff]   ;;  %v3027_v12 = vld [vmem:[#allocation5 + $0x4a4] ss:$16 sps:$4 sm:$0xff]  }
  0x67   :  { %1523 = vmatpush2.bf16.msra.mxu0 %v2969_v38  ;;  %v3030_v13 = vld [vmem:[#allocation5 + $0x6a4] ss:$16 sps:$4 sm:$0xff]   ;;  %v3025_v15 = vld [vmem:[#allocation5 + $0x4a0] ss:$16 sps:$4 sm:$0xff]  }
  0x68   :  { %1566 = vmatpush2.bf16.msra.mxu1 %v2970_v39  ;;  %1524 = vmatprep.subr.bf16.mxu0 %v2971_v40  ;;  %v3028_v16 = vld [vmem:[#allocation5 + $0x6a0] ss:$16 sps:$4 sm:$0xff]   ;;  %v3033_v17 = vld [vmem:[#allocation5 + $0x484] ss:$16 sps:$4 sm:$0xff]   ;;  %v3067_v39 = vld [vmem:[#allocation5 + $0xec] ss:$16 sps:$4 sm:$0xff]  }
  0x69   :  { %1567 = vmatprep.subr.bf16.mxu1 %v2973_v41  ;;  %v3036_v18 = vld [vmem:[#allocation5 + $0x684] ss:$16 sps:$4 sm:$0xff]   ;;  %v3031_v19 = vld [vmem:[#allocation5 + $0x480] ss:$16 sps:$4 sm:$0xff]  }
  0x6a   :  { %v3034_v20 = vld [vmem:[#allocation5 + $0x680] ss:$16 sps:$4 sm:$0xff]   ;;  %v3039_v21 = vld [vmem:[#allocation5 + $0x464] ss:$16 sps:$4 sm:$0xff]  }
  0x6b   :  { %1525 = vmatpush2.bf16.msra.mxu0 %v2975_v42  ;;  %v3042_v22 = vld [vmem:[#allocation5 + $0x664] ss:$16 sps:$4 sm:$0xff]   ;;  %v3037_v23 = vld [vmem:[#allocation5 + $0x460] ss:$16 sps:$4 sm:$0xff]   ;;  %v3065_v42 = vld [vmem:[#allocation5 + $0xe8] ss:$16 sps:$4 sm:$0xff]  }
  0x6c   :  { %1568 = vmatpush2.bf16.msra.mxu1 %v2976_v43  ;;  %1526 = vmatprep.subr.bf16.mxu0 %v2977_v44  ;;  %v3040_v24 = vld [vmem:[#allocation5 + $0x660] ss:$16 sps:$4 sm:$0xff]   ;;  %v3045_v25 = vld [vmem:[#allocation5 + $0x444] ss:$16 sps:$4 sm:$0xff]   ;;  %v3073_v44 = vld [vmem:[#allocation5 + $0xcc] ss:$16 sps:$4 sm:$0xff]  }
  0x6d   :  { %1569 = vmatprep.subr.bf16.mxu1 %v2979_v45  ;;  %v3048_v26 = vld [vmem:[#allocation5 + $0x644] ss:$16 sps:$4 sm:$0xff]   ;;  %v3043_v27 = vld [vmem:[#allocation5 + $0x440] ss:$16 sps:$4 sm:$0xff]  }
  0x6e   :  { %v3046_v28 = vld [vmem:[#allocation5 + $0x640] ss:$16 sps:$4 sm:$0xff]   ;;  %v3051_v29 = vld [vmem:[#allocation5 + $0x424] ss:$16 sps:$4 sm:$0xff]  }
  0x6f   :  { %1527 = vmatpush2.bf16.msra.mxu0 %v2981_v46  ;;  %v3054_v30 = vld [vmem:[#allocation5 + $0x624] ss:$16 sps:$4 sm:$0xff]   ;;  %v3049_v31 = vld [vmem:[#allocation5 + $0x420] ss:$16 sps:$4 sm:$0xff]   ;;  %v3071_v46 = vld [vmem:[#allocation5 + $0xc8] ss:$16 sps:$4 sm:$0xff]  }
  0x70   :  { %1570 = vmatpush2.bf16.msra.mxu1 %v2982_v47  ;;  %1528 = vmatprep.subr.bf16.mxu0 %v2983_v48  ;;  %v3052_v32 = vld [vmem:[#allocation5 + $0x620] ss:$16 sps:$4 sm:$0xff]   ;;  %v3057_v33 = vld [vmem:[#allocation5 + $0x404] ss:$16 sps:$4 sm:$0xff]   ;;  %v3079_v48 = vld [vmem:[#allocation5 + $0xac] ss:$16 sps:$4 sm:$0xff]  }
  0x71   :  { %1571 = vmatprep.subr.bf16.mxu1 %v2985_v50  ;;  %v3060_v34 = vld [vmem:[#allocation5 + $0x604] ss:$16 sps:$4 sm:$0xff]   ;;  %v3055_v36 = vld [vmem:[#allocation5 + $0x400] ss:$16 sps:$4 sm:$0xff]  }
  0x72   :  { %v3058_v37 = vld [vmem:[#allocation5 + $0x600] ss:$16 sps:$4 sm:$0xff]   ;;  %v3063_v38 = vld [vmem:[#allocation5 + $0x5e4] ss:$16 sps:$4 sm:$0xff]  }
  0x73   :  { %1529 = vmatpush2.bf16.msra.mxu0 %v2987_v52  ;;  %v3061_v40 = vld [vmem:[#allocation5 + $0x5e0] ss:$16 sps:$4 sm:$0xff]   ;;  %v3070_v43 = vld [vmem:[#allocation5 + $0x5c4] ss:$16 sps:$4 sm:$0xff]   ;;  %v3077_v52 = vld [vmem:[#allocation5 + $0xa8] ss:$16 sps:$4 sm:$0xff]  }
  0x74   :  { %1572 = vmatpush2.bf16.msra.mxu1 %v2988_v53  ;;  %1530 = vmatprep.subr.bf16.mxu0 %v2989_v54  ;;  %v3584_v41 = vld [vmem:[#allocation2 + $0x18] ss:$28 sps:$4 sm:$0xff]   ;;  %v3076_v47 = vld [vmem:[#allocation5 + $0x5a4] ss:$16 sps:$4 sm:$0xff]  }
  0x75   :  { %1573 = vmatprep.subr.bf16.mxu1 %v2991_v55  ;;  %v3068_v45 = vld [vmem:[#allocation5 + $0x5c0] ss:$16 sps:$4 sm:$0xff]   ;;  %v3082_v53 = vld [vmem:[#allocation5 + $0x584] ss:$16 sps:$4 sm:$0xff]   ;;  %v3085_v54 = vld [vmem:[#allocation5 + $0x8c] ss:$16 sps:$4 sm:$0xff]  }
  0x76   :  { %v3074_v50 = vld [vmem:[#allocation5 + $0x5a0] ss:$16 sps:$4 sm:$0xff]  }
  0x77   :  { %1531 = vmatpush2.bf16.msra.mxu0 %v2993_v56  ;;  %v3080_v55 = vld [vmem:[#allocation5 + $0x580] ss:$16 sps:$4 sm:$0xff]   ;;  %v3083_v56 = vld [vmem:[#allocation5 + $0x88] ss:$16 sps:$4 sm:$0xff]  }
  0x78   :  { %1574 = vmatpush2.bf16.msra.mxu1 %v2994_v57  ;;  %1532 = vmatprep.subr.bf16.mxu0 %v2995_v58  ;;  %v3088_v57 = vld [vmem:[#allocation5 + $0x564] ss:$16 sps:$4 sm:$0xff]   ;;  %v3091_v58 = vld [vmem:[#allocation5 + $0x6c] ss:$16 sps:$4 sm:$0xff]  }
  0x79   :  { %1575 = vmatprep.subr.bf16.mxu1 %v2997_v59  ;;  %v3086_v59 = vld [vmem:[#allocation5 + $0x560] ss:$16 sps:$4 sm:$0xff]  }
  0x7b   :  { %1533 = vmatpush2.bf16.msra.mxu0 %v2999_v60  ;;  %v3094_v60 = vld [vmem:[#allocation5 + $0x544] ss:$16 sps:$4 sm:$0xff]  }
  0x7c   :  { %1576 = vmatpush2.bf16.msra.mxu1 %v3000_v61  ;;  %1534 = vmatprep.subr.bf16.mxu0 %v3001_v62  ;;  %v3097_v61 = vld [vmem:[#allocation5 + $0x4c] ss:$16 sps:$4 sm:$0xff]   ;;  %v3092_v62 = vld [vmem:[#allocation5 + $0x540] ss:$16 sps:$4 sm:$0xff]  }
  0x7d   :  { %1577 = vmatprep.subr.bf16.mxu1 %v3003_v63  ;;  %v3095_v63 = vld [vmem:[#allocation5 + $0x48] ss:$16 sps:$4 sm:$0xff]  }
  0x7f   :  { %1535 = vmatpush2.bf16.msra.mxu0 %v3005_v0  ;;  %v3100_v0 = vld [vmem:[#allocation5 + $0x524] ss:$16 sps:$4 sm:$0xff]  }
  0x80   :  { %1578 = vmatpush2.bf16.msra.mxu1 %v3006_v1  ;;  %1590 = vmatprep.subr.bf16.mxu0 %v3015_v2  ;;  %v3103_v1 = vld [vmem:[#allocation5 + $0x2c] ss:$16 sps:$4 sm:$0xff]   ;;  %v3098_v2 = vld [vmem:[#allocation5 + $0x520] ss:$16 sps:$4 sm:$0xff]  }
  0x81   :  { %1633 = vmatprep.subr.bf16.mxu1 %v3018_v3  ;;  %v3101_v3 = vld [vmem:[#allocation5 + $0x28] ss:$16 sps:$4 sm:$0xff]  }
  0x82   :  { %1537 = vmatmul.mubr.bf16.vlgmr.msra.gmra.mxu0 %v3577_v4 }
  0x83   :  { %1580 = vmatmul.mubr.bf16.vlgmr.msra.gmra.mxu1 %v3010_v5  ;;  %1591 = vmatpush1.bf16.msra.mxu0 %v3013_v6  ;;  %v3106_v5 = vld [vmem:[#allocation5 + $0x504] ss:$16 sps:$4 sm:$0xff]   ;;  %v3109_v6 = vld [vmem:[#allocation5 + $0xc] ss:$16 sps:$4 sm:$0xff]  }
  0x84   :  { %1634 = vmatpush1.bf16.msra.mxu1 %v3016_v7  ;;  %1592 = vmatprep.subr.bf16.mxu0 %v3021_v8  ;;  %v3104_v7 = vld [vmem:[#allocation5 + $0x500] ss:$16 sps:$4 sm:$0xff]   ;;  %v3107_v8 = vld [vmem:[#allocation5 + $0x8] ss:$16 sps:$4 sm:$0xff]  }
  0x85   :  { %1635 = vmatprep.subr.bf16.mxu1 %v3024_v9  ;;  %1665 = vmatprep.mubr.bf16.mxu1 %v3511_v14  ;;  %v3115_v9 = vld [vmem:[#allocation5 + $0x1ec] ss:$16 sps:$4 sm:$0xff]  }
  0x86   :  { %1622 = vmatprep.mubr.bf16.mxu0 %v3581_v35 }
  0x87   :  { %1593 = vmatpush1.bf16.msra.mxu0 %v3019_v10  ;;  %v3118_v10 = vld [vmem:[#allocation5 + $0x2ec] ss:$16 sps:$4 sm:$0xff]  }
  0x88   :  { %1636 = vmatpush1.bf16.msra.mxu1 %v3022_v11  ;;  %1594 = vmatprep.subr.bf16.mxu0 %v3027_v12  ;;  %v3588_v11 = vld [vmem:[#allocation2 + $0x10] ss:$28 sps:$4 sm:$0xff]  }
  0x89   :  { %1637 = vmatprep.subr.bf16.mxu1 %v3030_v13  ;;  %v3113_v12 = vld [vmem:[#allocation5 + $0x1e8] ss:$16 sps:$4 sm:$0xff]  }
  0x8a   :  { %v3116_v13 = vld [vmem:[#allocation5 + $0x2e8] ss:$16 sps:$4 sm:$0xff]  }
  0x8b   :  { %1595 = vmatpush1.bf16.msra.mxu0 %v3025_v15  ;;  %v3121_v15 = vld [vmem:[#allocation5 + $0x1cc] ss:$16 sps:$4 sm:$0xff]  }
  0x8c   :  { %1638 = vmatpush1.bf16.msra.mxu1 %v3028_v16  ;;  %1596 = vmatprep.subr.bf16.mxu0 %v3033_v17  ;;  %v3124_v16 = vld [vmem:[#allocation5 + $0x2cc] ss:$16 sps:$4 sm:$0xff]   ;;  %v3119_v17 = vld [vmem:[#allocation5 + $0x1c8] ss:$16 sps:$4 sm:$0xff]  }
  0x8d   :  { %1639 = vmatprep.subr.bf16.mxu1 %v3036_v18  ;;  %v3122_v18 = vld [vmem:[#allocation5 + $0x2c8] ss:$16 sps:$4 sm:$0xff]  }
  0x8f   :  { %1597 = vmatpush1.bf16.msra.mxu0 %v3031_v19  ;;  %v3127_v19 = vld [vmem:[#allocation5 + $0x1ac] ss:$16 sps:$4 sm:$0xff]  }
  0x90   :  { %1640 = vmatpush1.bf16.msra.mxu1 %v3034_v20  ;;  %1598 = vmatprep.subr.bf16.mxu0 %v3039_v21  ;;  %v3130_v20 = vld [vmem:[#allocation5 + $0x2ac] ss:$16 sps:$4 sm:$0xff]   ;;  %v3125_v21 = vld [vmem:[#allocation5 + $0x1a8] ss:$16 sps:$4 sm:$0xff]  }
  0x91   :  { %1641 = vmatprep.subr.bf16.mxu1 %v3042_v22  ;;  %v3128_v22 = vld [vmem:[#allocation5 + $0x2a8] ss:$16 sps:$4 sm:$0xff]  }
  0x93   :  { %1599 = vmatpush1.bf16.msra.mxu0 %v3037_v23  ;;  %v3133_v23 = vld [vmem:[#allocation5 + $0x18c] ss:$16 sps:$4 sm:$0xff]  }
  0x94   :  { %1642 = vmatpush1.bf16.msra.mxu1 %v3040_v24  ;;  %1600 = vmatprep.subr.bf16.mxu0 %v3045_v25  ;;  %v3136_v24 = vld [vmem:[#allocation5 + $0x28c] ss:$16 sps:$4 sm:$0xff]   ;;  %v3131_v25 = vld [vmem:[#allocation5 + $0x188] ss:$16 sps:$4 sm:$0xff]  }
  0x95   :  { %1643 = vmatprep.subr.bf16.mxu1 %v3048_v26  ;;  %v3134_v26 = vld [vmem:[#allocation5 + $0x288] ss:$16 sps:$4 sm:$0xff]  }
  0x97   :  { %1601 = vmatpush1.bf16.msra.mxu0 %v3043_v27  ;;  %v3139_v27 = vld [vmem:[#allocation5 + $0x16c] ss:$16 sps:$4 sm:$0xff]  }
  0x98   :  { %1644 = vmatpush1.bf16.msra.mxu1 %v3046_v28  ;;  %1602 = vmatprep.subr.bf16.mxu0 %v3051_v29  ;;  %v3142_v28 = vld [vmem:[#allocation5 + $0x26c] ss:$16 sps:$4 sm:$0xff]   ;;  %v3137_v29 = vld [vmem:[#allocation5 + $0x168] ss:$16 sps:$4 sm:$0xff]  }
  0x99   :  { %1645 = vmatprep.subr.bf16.mxu1 %v3054_v30  ;;  %v3145_v30 = vld [vmem:[#allocation5 + $0x14c] ss:$16 sps:$4 sm:$0xff]  }
  0x9b   :  { %1603 = vmatpush1.bf16.msra.mxu0 %v3049_v31  ;;  %v3148_v31 = vld [vmem:[#allocation5 + $0x24c] ss:$16 sps:$4 sm:$0xff]  }
  0x9c   :  { %1646 = vmatpush1.bf16.msra.mxu1 %v3052_v32  ;;  %1604 = vmatprep.subr.bf16.mxu0 %v3057_v33  ;;  %v3143_v32 = vld [vmem:[#allocation5 + $0x148] ss:$16 sps:$4 sm:$0xff]  }
  0x9d   :  { %1647 = vmatprep.subr.bf16.mxu1 %v3060_v34  ;;  %v3146_v33 = vld [vmem:[#allocation5 + $0x248] ss:$16 sps:$4 sm:$0xff]   ;;  %v3151_v34 = vld [vmem:[#allocation5 + $0x12c] ss:$16 sps:$4 sm:$0xff]  }
  0x9f   :  { %1605 = vmatpush1.bf16.msra.mxu0 %v3055_v36  ;;  %v3154_v36 = vld [vmem:[#allocation5 + $0x22c] ss:$16 sps:$4 sm:$0xff]  }
  0xa0   :  { %1648 = vmatpush1.bf16.msra.mxu1 %v3058_v37  ;;  %1606 = vmatprep.subr.bf16.mxu0 %v3063_v38  ;;  %v3149_v37 = vld [vmem:[#allocation5 + $0x128] ss:$16 sps:$4 sm:$0xff]  }
  0xa1   :  { %1676 = vmatprep.subr.bf16.mxu1 %v3067_v39  ;;  %v3152_v38 = vld [vmem:[#allocation5 + $0x228] ss:$16 sps:$4 sm:$0xff]   ;;  %v3157_v39 = vld [vmem:[#allocation5 + $0x10c] ss:$16 sps:$4 sm:$0xff]  }
  0xa3   :  { %1666 = vmatmul.mubr.bf16.vlgmr.msra.gmra.mxu1 %v3584_v41  ;;  %1607 = vmatpush2.bf16.msra.mxu0 %v3061_v40  ;;  %v3160_v40 = vld [vmem:[#allocation5 + $0x20c] ss:$16 sps:$4 sm:$0xff]  }
  0xa4   :  { %1677 = vmatpush1.bf16.msra.mxu1 %v3065_v42  ;;  %1608 = vmatprep.subr.bf16.mxu0 %v3070_v43  ;;  %v3155_v42 = vld [vmem:[#allocation5 + $0x108] ss:$16 sps:$4 sm:$0xff]  }
  0xa5   :  { %1678 = vmatprep.subr.bf16.mxu1 %v3073_v44  ;;  %1708 = vmatprep.mubr.bf16.mxu1 %v3571_v49  ;;  %v3089_v49 = vld [vmem:[#allocation5 + $0x68] ss:$16 sps:$4 sm:$0xff]   ;;  %v3163_v44 = vld [vmem:[#allocation5 + $0x3ec] ss:$16 sps:$4 sm:$0xff]  }
  0xa6   :  { %v3158_v43 = vld [vmem:[#allocation5 + $0x208] ss:$16 sps:$4 sm:$0xff]  }
  0xa7   :  { %1609 = vmatpush2.bf16.msra.mxu0 %v3068_v45  ;;  %v3166_v45 = vld [vmem:[#allocation5 + $0x4ec] ss:$16 sps:$4 sm:$0xff]  }
  0xa8   :  { %1679 = vmatpush1.bf16.msra.mxu1 %v3071_v46  ;;  %1610 = vmatprep.subr.bf16.mxu0 %v3076_v47  ;;  %v3161_v46 = vld [vmem:[#allocation5 + $0x3e8] ss:$16 sps:$4 sm:$0xff]  }
  0xa9   :  { %1680 = vmatprep.subr.bf16.mxu1 %v3079_v48  ;;  %v3164_v47 = vld [vmem:[#allocation5 + $0x4e8] ss:$16 sps:$4 sm:$0xff]   ;;  %v3169_v48 = vld [vmem:[#allocation5 + $0x3cc] ss:$16 sps:$4 sm:$0xff]  }
  0xab   :  { %1611 = vmatpush2.bf16.msra.mxu0 %v3074_v50  ;;  %v3172_v50 = vld [vmem:[#allocation5 + $0x4cc] ss:$16 sps:$4 sm:$0xff]  }
  0xac   :  { %1681 = vmatpush1.bf16.msra.mxu1 %v3077_v52  ;;  %1612 = vmatprep.subr.bf16.mxu0 %v3082_v53  ;;  %v3167_v52 = vld [vmem:[#allocation5 + $0x3c8] ss:$16 sps:$4 sm:$0xff]  }
  0xad   :  { %1682 = vmatprep.subr.bf16.mxu1 %v3085_v54  ;;  %v3170_v53 = vld [vmem:[#allocation5 + $0x4c8] ss:$16 sps:$4 sm:$0xff]   ;;  %v3175_v54 = vld [vmem:[#allocation5 + $0x3ac] ss:$16 sps:$4 sm:$0xff]  }
  0xaf   :  { %1613 = vmatpush2.bf16.msra.mxu0 %v3080_v55  ;;  %v3178_v55 = vld [vmem:[#allocation5 + $0x4ac] ss:$16 sps:$4 sm:$0xff]  }
  0xb0   :  { %1683 = vmatpush1.bf16.msra.mxu1 %v3083_v56  ;;  %1614 = vmatprep.subr.bf16.mxu0 %v3088_v57  ;;  %v3173_v56 = vld [vmem:[#allocation5 + $0x3a8] ss:$16 sps:$4 sm:$0xff]  }
  0xb1   :  { %1684 = vmatprep.subr.bf16.mxu1 %v3091_v58  ;;  %v3176_v57 = vld [vmem:[#allocation5 + $0x4a8] ss:$16 sps:$4 sm:$0xff]   ;;  %v3181_v58 = vld [vmem:[#allocation5 + $0x38c] ss:$16 sps:$4 sm:$0xff]  }
  0xb3   :  { %1615 = vmatpush2.bf16.msra.mxu0 %v3086_v59  ;;  %v3184_v59 = vld [vmem:[#allocation5 + $0x48c] ss:$16 sps:$4 sm:$0xff]  }
  0xb4   :  { %1685 = vmatpush1.bf16.msra.mxu1 %v3089_v49  ;;  %1616 = vmatprep.subr.bf16.mxu0 %v3094_v60  ;;  %v3179_v49 = vld [vmem:[#allocation5 + $0x388] ss:$16 sps:$4 sm:$0xff]   ;;  %v3187_v60 = vld [vmem:[#allocation5 + $0x36c] ss:$16 sps:$4 sm:$0xff]  }
  0xb5   :  { %1686 = vmatprep.subr.bf16.mxu1 %v3097_v61  ;;  %v3190_v61 = vld [vmem:[#allocation5 + $0x46c] ss:$16 sps:$4 sm:$0xff]  }
  0xb7   :  { %1617 = vmatpush2.bf16.msra.mxu0 %v3092_v62  ;;  %v3185_v62 = vld [vmem:[#allocation5 + $0x368] ss:$16 sps:$4 sm:$0xff]  }
  0xb8   :  { %1687 = vmatpush1.bf16.msra.mxu1 %v3095_v63  ;;  %1618 = vmatprep.subr.bf16.mxu0 %v3100_v0  ;;  %v3188_v63 = vld [vmem:[#allocation5 + $0x468] ss:$16 sps:$4 sm:$0xff]   ;;  %v3193_v0 = vld [vmem:[#allocation5 + $0x34c] ss:$16 sps:$4 sm:$0xff]  }
  0xb9   :  { %1688 = vmatprep.subr.bf16.mxu1 %v3103_v1  ;;  %v3196_v1 = vld [vmem:[#allocation5 + $0x44c] ss:$16 sps:$4 sm:$0xff]  }
  0xbb   :  { %1619 = vmatpush2.bf16.msra.mxu0 %v3098_v2  ;;  %v3194_v2 = vld [vmem:[#allocation5 + $0x448] ss:$16 sps:$4 sm:$0xff]  }
  0xbc   :  { %1689 = vmatpush1.bf16.msra.mxu1 %v3101_v3  ;;  %1620 = vmatprep.subr.bf16.mxu0 %v3106_v5  ;;  %v3199_v3 = vld [vmem:[#allocation5 + $0x32c] ss:$16 sps:$4 sm:$0xff]  }
  0xbd   :  { %1690 = vmatprep.subr.bf16.mxu1 %v3109_v6  ;;  %v3202_v5 = vld [vmem:[#allocation5 + $0x42c] ss:$16 sps:$4 sm:$0xff]   ;;  %v3197_v6 = vld [vmem:[#allocation5 + $0x328] ss:$16 sps:$4 sm:$0xff]  }
  0xbf   :  { %1621 = vmatpush2.bf16.msra.mxu0 %v3104_v7  ;;  %v3200_v7 = vld [vmem:[#allocation5 + $0x428] ss:$16 sps:$4 sm:$0xff]  }
  0xc0   :  { %1691 = vmatpush1.bf16.msra.mxu1 %v3107_v8  ;;  %1719 = vmatprep.subr.bf16.mxu0 %v3118_v10  ;;  %v3205_v8 = vld [vmem:[#allocation5 + $0x30c] ss:$16 sps:$4 sm:$0xff]   ;;  %v3203_v10 = vld [vmem:[#allocation5 + $0x308] ss:$16 sps:$4 sm:$0xff]  }
  0xc1   :  { %1692 = vmatprep.subr.bf16.mxu1 %v3115_v9  ;;  %v3208_v9 = vld [vmem:[#allocation5 + $0x40c] ss:$16 sps:$4 sm:$0xff]  }
  0xc2   :  { %1623 = vmatmul.mubr.bf16.vlgmr.msra.gmra.mxu0 %v3588_v11 }
  0xc3   :  { %1720 = vmatpush1.bf16.msra.mxu0 %v3116_v13  ;;  %1751 = vmatprep.mubr.bf16.mxu0 %v3573_v51  ;;  %v3140_v51 = vld [vmem:[#allocation5 + $0x268] ss:$16 sps:$4 sm:$0xff]   ;;  %v3211_v13 = vld [vmem:[#allocation5 + $0x5ec] ss:$16 sps:$4 sm:$0xff]  }
  0xc4   :  { %1693 = vmatpush2.bf16.msra.mxu1 %v3113_v12  ;;  %1721 = vmatprep.subr.bf16.mxu0 %v3124_v16  ;;  %v3206_v12 = vld [vmem:[#allocation5 + $0x408] ss:$16 sps:$4 sm:$0xff]  }
  0xc5   :  { %1694 = vmatprep.subr.bf16.mxu1 %v3121_v15  ;;  %v3214_v15 = vld [vmem:[#allocation5 + $0x6ec] ss:$16 sps:$4 sm:$0xff]   ;;  %v3209_v16 = vld [vmem:[#allocation5 + $0x5e8] ss:$16 sps:$4 sm:$0xff]  }
  0xc7   :  { %1722 = vmatpush1.bf16.msra.mxu0 %v3122_v18  ;;  %v3217_v18 = vld [vmem:[#allocation5 + $0x5cc] ss:$16 sps:$4 sm:$0xff]  }
  0xc8   :  { %1695 = vmatpush2.bf16.msra.mxu1 %v3119_v17  ;;  %1723 = vmatprep.subr.bf16.mxu0 %v3130_v20  ;;  %v3212_v17 = vld [vmem:[#allocation5 + $0x6e8] ss:$16 sps:$4 sm:$0xff]   ;;  %v3369_v20 = vld [vmem:[#allocation2 + $0x8] ss:$28 sps:$4 sm:$0xff]  }
  0xc9   :  { %1696 = vmatprep.subr.bf16.mxu1 %v3127_v19  ;;  %v3220_v19 = vld [vmem:[#allocation5 + $0x6cc] ss:$16 sps:$4 sm:$0xff]  }
  0xcb   :  { %1724 = vmatpush1.bf16.msra.mxu0 %v3128_v22  ;;  %v3218_v22 = vld [vmem:[#allocation5 + $0x6c8] ss:$16 sps:$4 sm:$0xff]  }
  0xcc   :  { %1697 = vmatpush2.bf16.msra.mxu1 %v3125_v21  ;;  %1725 = vmatprep.subr.bf16.mxu0 %v3136_v24  ;;  %v3215_v21 = vld [vmem:[#allocation5 + $0x5c8] ss:$16 sps:$4 sm:$0xff]   ;;  %v3226_v24 = vld [vmem:[#allocation5 + $0x6ac] ss:$16 sps:$4 sm:$0xff]  }
  0xcd   :  { %1698 = vmatprep.subr.bf16.mxu1 %v3133_v23  ;;  %v3223_v23 = vld [vmem:[#allocation5 + $0x5ac] ss:$16 sps:$4 sm:$0xff]  }
  0xcf   :  { %1726 = vmatpush1.bf16.msra.mxu0 %v3134_v26  ;;  %v3224_v26 = vld [vmem:[#allocation5 + $0x6a8] ss:$16 sps:$4 sm:$0xff]  }
  0xd0   :  { %1699 = vmatpush2.bf16.msra.mxu1 %v3131_v25  ;;  %1727 = vmatprep.subr.bf16.mxu0 %v3142_v28  ;;  %v3221_v25 = vld [vmem:[#allocation5 + $0x5a8] ss:$16 sps:$4 sm:$0xff]   ;;  %v3232_v28 = vld [vmem:[#allocation5 + $0x68c] ss:$16 sps:$4 sm:$0xff]  }
  0xd1   :  { %1700 = vmatprep.subr.bf16.mxu1 %v3139_v27  ;;  %v3229_v27 = vld [vmem:[#allocation5 + $0x58c] ss:$16 sps:$4 sm:$0xff]  }
  0xd3   :  { %1728 = vmatpush1.bf16.msra.mxu0 %v3140_v51  ;;  %v3230_v51 = vld [vmem:[#allocation5 + $0x688] ss:$16 sps:$4 sm:$0xff]  }
  0xd4   :  { %1701 = vmatpush2.bf16.msra.mxu1 %v3137_v29  ;;  %1729 = vmatprep.subr.bf16.mxu0 %v3148_v31  ;;  %v3227_v29 = vld [vmem:[#allocation5 + $0x588] ss:$16 sps:$4 sm:$0xff]   ;;  %v3238_v31 = vld [vmem:[#allocation5 + $0x66c] ss:$16 sps:$4 sm:$0xff]  }
  0xd5   :  { %1702 = vmatprep.subr.bf16.mxu1 %v3145_v30  ;;  %v3235_v30 = vld [vmem:[#allocation5 + $0x56c] ss:$16 sps:$4 sm:$0xff]  }
  0xd7   :  { %1730 = vmatpush1.bf16.msra.mxu0 %v3146_v33  ;;  %v3241_v33 = vld [vmem:[#allocation5 + $0x54c] ss:$16 sps:$4 sm:$0xff]  }
  0xd8   :  { %1703 = vmatpush2.bf16.msra.mxu1 %v3143_v32  ;;  %1731 = vmatprep.subr.bf16.mxu0 %v3154_v36  ;;  %v3233_v32 = vld [vmem:[#allocation5 + $0x568] ss:$16 sps:$4 sm:$0xff]  }
  0xd9   :  { %1704 = vmatprep.subr.bf16.mxu1 %v3151_v34  ;;  %v3244_v34 = vld [vmem:[#allocation5 + $0x64c] ss:$16 sps:$4 sm:$0xff]   ;;  %v3239_v36 = vld [vmem:[#allocation5 + $0x548] ss:$16 sps:$4 sm:$0xff]  }
  0xdb   :  { %1732 = vmatpush1.bf16.msra.mxu0 %v3152_v38  ;;  %v3247_v38 = vld [vmem:[#allocation5 + $0x52c] ss:$16 sps:$4 sm:$0xff]  }
  0xdc   :  { %1705 = vmatpush2.bf16.msra.mxu1 %v3149_v37  ;;  %1733 = vmatprep.subr.bf16.mxu0 %v3160_v40  ;;  %v3242_v37 = vld [vmem:[#allocation5 + $0x648] ss:$16 sps:$4 sm:$0xff]  }
  0xdd   :  { %1706 = vmatprep.subr.bf16.mxu1 %v3157_v39  ;;  %v3250_v39 = vld [vmem:[#allocation5 + $0x62c] ss:$16 sps:$4 sm:$0xff]   ;;  %v3245_v40 = vld [vmem:[#allocation5 + $0x528] ss:$16 sps:$4 sm:$0xff]  }
  0xdf   :  { %1734 = vmatpush1.bf16.msra.mxu0 %v3158_v43  ;;  %v3253_v43 = vld [vmem:[#allocation5 + $0x50c] ss:$16 sps:$4 sm:$0xff]  }
  0xe0   :  { %1707 = vmatpush2.bf16.msra.mxu1 %v3155_v42  ;;  %1735 = vmatprep.subr.bf16.mxu0 %v3163_v44  ;;  %v3248_v42 = vld [vmem:[#allocation5 + $0x628] ss:$16 sps:$4 sm:$0xff]   ;;  %v3256_v44 = vld [vmem:[#allocation5 + $0x60c] ss:$16 sps:$4 sm:$0xff]  }
  0xe1   :  { %1762 = vmatprep.subr.bf16.mxu1 %v3166_v45  ;;  %v3251_v45 = vld [vmem:[#allocation5 + $0x508] ss:$16 sps:$4 sm:$0xff]  }
  0xe3   :  { %1709 = vmatmul.mubr.bf16.vlgmr.msra.gmra.mxu1 %v3577_v4  ;;  %1736 = vmatpush2.bf16.msra.mxu0 %v3161_v46  ;;  %v3182_v4 = vld [vmem:[#allocation5 + $0x488] ss:$16 sps:$4 sm:$0xff]  }
  0xe4   :  { %1763 = vmatpush1.bf16.msra.mxu1 %v3164_v47  ;;  %1737 = vmatprep.subr.bf16.mxu0 %v3169_v48  ;;  %v3254_v46 = vld [vmem:[#allocation5 + $0x608] ss:$16 sps:$4 sm:$0xff]   ;;  %v3257_v48 = vld [vmem:[#allocation8 + $0x70] ss:$8 sps:$4 sm:$0xff]  }
  0xe5   :  { %1764 = vmatprep.subr.bf16.mxu1 %v3172_v50  ;;  %1794 = vmatprep.mubr.bf16.mxu1 %v3581_v35  ;;  %v3191_v35 = vld [vmem:[#allocation5 + $0x348] ss:$16 sps:$4 sm:$0xff]  }
  0xe6   :  { %v3259_v47 = vld [vmem:[#allocation8 + $0x74] ss:$8 sps:$4 sm:$0xff]   ;;  %v3262_v50 = vld [vmem:[#allocation8 + $0x64] ss:$8 sps:$4 sm:$0xff]  }
  0xe7   :  { %1738 = vmatpush2.bf16.msra.mxu0 %v3167_v52  ;;  %v3260_v52 = vld [vmem:[#allocation8 + $0x60] ss:$8 sps:$4 sm:$0xff]  }
  0xe8   :  { %1765 = vmatpush1.bf16.msra.mxu1 %v3170_v53  ;;  %1739 = vmatprep.subr.bf16.mxu0 %v3175_v54  ;;  %v3265_v53 = vld [vmem:[#allocation8 + $0x54] ss:$8 sps:$4 sm:$0xff]   ;;  %v3263_v54 = vld [vmem:[#allocation8 + $0x50] ss:$8 sps:$4 sm:$0xff]  }
  0xe9   :  { %1766 = vmatprep.subr.bf16.mxu1 %v3178_v55  ;;  %v3268_v55 = vld [vmem:[#allocation8 + $0x44] ss:$8 sps:$4 sm:$0xff]  }
  0xeb   :  { %1740 = vmatpush2.bf16.msra.mxu0 %v3173_v56  ;;  %v3305_v56 = vld [vmem:[#allocation8 + $0x170] ss:$8 sps:$4 sm:$0xff]  }
  0xec   :  { %1767 = vmatpush1.bf16.msra.mxu1 %v3176_v57  ;;  %1741 = vmatprep.subr.bf16.mxu0 %v3181_v58  ;;  %v3307_v57 = vld [vmem:[#allocation8 + $0x174] ss:$8 sps:$4 sm:$0xff]   ;;  %v3310_v58 = vld [vmem:[#allocation8 + $0x164] ss:$8 sps:$4 sm:$0xff]  }
  0xed   :  { %1768 = vmatprep.subr.bf16.mxu1 %v3184_v59  ;;  %v3266_v59 = vld [vmem:[#allocation8 + $0x40] ss:$8 sps:$4 sm:$0xff]  }
  0xef   :  { %1742 = vmatpush2.bf16.msra.mxu0 %v3179_v49  ;;  %v3271_v49 = vld [vmem:[#allocation8 + $0x34] ss:$8 sps:$4 sm:$0xff]  }
  0xf0   :  { %1769 = vmatpush1.bf16.msra.mxu1 %v3182_v4  ;;  %1743 = vmatprep.subr.bf16.mxu0 %v3187_v60  ;;  %v3269_v4 = vld [vmem:[#allocation8 + $0x30] ss:$8 sps:$4 sm:$0xff]   ;;  %v3274_v60 = vld [vmem:[#allocation8 + $0x24] ss:$8 sps:$4 sm:$0xff]  }
  0xf1   :  { %1770 = vmatprep.subr.bf16.mxu1 %v3190_v61  ;;  %v3311_v61 = vld [vmem:[#allocation8 + $0x150] ss:$8 sps:$4 sm:$0xff]  }
  0xf3   :  { %1744 = vmatpush2.bf16.msra.mxu0 %v3185_v62  ;;  %v3316_v62 = vld [vmem:[#allocation8 + $0x144] ss:$8 sps:$4 sm:$0xff]  }
  0xf4   :  { %1771 = vmatpush1.bf16.msra.mxu1 %v3188_v63  ;;  %1745 = vmatprep.subr.bf16.mxu0 %v3193_v0  ;;  %v3272_v63 = vld [vmem:[#allocation8 + $0x20] ss:$8 sps:$4 sm:$0xff]   ;;  %v3277_v0 = vld [vmem:[#allocation8 + $0x14] ss:$8 sps:$4 sm:$0xff]  }
  0xf5   :  { %1772 = vmatprep.subr.bf16.mxu1 %v3196_v1  ;;  %v3314_v1 = vld [vmem:[#allocation8 + $0x140] ss:$8 sps:$4 sm:$0xff]  }
  0xf7   :  { %1746 = vmatpush2.bf16.msra.mxu0 %v3191_v35  ;;  %v3275_v35 = vld [vmem:[#allocation8 + $0x10] ss:$8 sps:$4 sm:$0xff]  }
  0xf8   :  { %1773 = vmatpush1.bf16.msra.mxu1 %v3194_v2  ;;  %1747 = vmatprep.subr.bf16.mxu0 %v3199_v3  ;;  %v3280_v2 = vld [vmem:[#allocation8 + $0x4] ss:$8 sps:$4 sm:$0xff]   ;;  %v3278_v3 = vld [vmem:[#allocation8] ss:$8 sps:$4 sm:$0xff]  }
  0xf9   :  { %1774 = vmatprep.subr.bf16.mxu1 %v3202_v5  ;;  %v3283_v5 = vld [vmem:[#allocation8 + $0xf4] ss:$8 sps:$4 sm:$0xff]  }
  0xfb   :  { %1748 = vmatpush2.bf16.msra.mxu0 %v3197_v6  ;;  %v3281_v6 = vld [vmem:[#allocation8 + $0xf0] ss:$8 sps:$4 sm:$0xff]  }
  0xfc   :  { %1775 = vmatpush1.bf16.msra.mxu1 %v3200_v7  ;;  %1749 = vmatprep.subr.bf16.mxu0 %v3205_v8  ;;  %v3286_v7 = vld [vmem:[#allocation8 + $0xe4] ss:$8 sps:$4 sm:$0xff]   ;;  %v3319_v8 = vld [vmem:[#allocation8 + $0x134] ss:$8 sps:$4 sm:$0xff]  }
  0xfd   :  { %1776 = vmatprep.subr.bf16.mxu1 %v3208_v9  ;;  %v3317_v9 = vld [vmem:[#allocation8 + $0x130] ss:$8 sps:$4 sm:$0xff]  }
  0xff   :  { %1750 = vmatpush2.bf16.msra.mxu0 %v3203_v10  ;;  %v3284_v10 = vld [vmem:[#allocation8 + $0xe0] ss:$8 sps:$4 sm:$0xff]  }
 0x100   :  { %1777 = vmatpush1.bf16.msra.mxu1 %v3206_v12  ;;  %1805 = vmatprep.subr.bf16.mxu0 %v3214_v15  ;;  %v3289_v12 = vld [vmem:[#allocation8 + $0xd4] ss:$8 sps:$4 sm:$0xff]   ;;  %v3320_v15 = vld [vmem:[#allocation8 + $0x120] ss:$8 sps:$4 sm:$0xff]  }
 0x101   :  { %1778 = vmatprep.subr.bf16.mxu1 %v3211_v13  ;;  %v3322_v13 = vld [vmem:[#allocation8 + $0x124] ss:$8 sps:$4 sm:$0xff]  }
 0x102   :  { %1752 = vmatmul.mubr.bf16.vlgmr.msra.gmra.mxu0 %v3369_v20  ;;  %v3328_v20 = vld [vmem:[#allocation8 + $0x104] ss:$8 sps:$4 sm:$0xff]  }
 0x103   :  { %1806 = vmatpush1.bf16.msra.mxu0 %v3212_v17  ;;  %1837 = vmatprep.mubr.bf16.mxu0 %v3511_v14  ;;  %v3236_v14 = vld [vmem:[#allocation5 + $0x668] ss:$16 sps:$4 sm:$0xff]  }
 0x104   :  { %1779 = vmatpush2.bf16.msra.mxu1 %v3209_v16  ;;  %1807 = vmatprep.subr.bf16.mxu0 %v3220_v19  ;;  %v3287_v16 = vld [vmem:[#allocation8 + $0xd0] ss:$8 sps:$4 sm:$0xff]   ;;  %v3292_v17 = vld [vmem:[#allocation8 + $0xc4] ss:$8 sps:$4 sm:$0xff]  }
 0x105   :  { %1780 = vmatprep.subr.bf16.mxu1 %v3217_v18  ;;  %v3325_v18 = vld [vmem:[#allocation8 + $0x114] ss:$8 sps:$4 sm:$0xff]   ;;  %v3323_v19 = vld [vmem:[#allocation8 + $0x110] ss:$8 sps:$4 sm:$0xff]  }
 0x107   :  { %1808 = vmatpush1.bf16.msra.mxu0 %v3218_v22  ;;  %v3326_v22 = vld [vmem:[#allocation8 + $0x100] ss:$8 sps:$4 sm:$0xff]  }
 0x108   :  { %1781 = vmatpush2.bf16.msra.mxu1 %v3215_v21  ;;  %1809 = vmatprep.subr.bf16.mxu0 %v3226_v24  ;;  %v3290_v21 = vld [vmem:[#allocation8 + $0xc0] ss:$8 sps:$4 sm:$0xff]   ;;  %v3331_v24 = vld [vmem:[#allocation8 + $0x1f4] ss:$8 sps:$4 sm:$0xff]  }
 0x109   :  { %1782 = vmatprep.subr.bf16.mxu1 %v3223_v23  ;;  %v3295_v23 = vld [vmem:[#allocation8 + $0xb4] ss:$8 sps:$4 sm:$0xff]  }
 0x10b   :  { %1810 = vmatpush1.bf16.msra.mxu0 %v3224_v26  ;;  %v3329_v26 = vld [vmem:[#allocation8 + $0x1f0] ss:$8 sps:$4 sm:$0xff]  }
 0x10c   :  { %1783 = vmatpush2.bf16.msra.mxu1 %v3221_v25  ;;  %1811 = vmatprep.subr.bf16.mxu0 %v3232_v28  ;;  %v3293_v25 = vld [vmem:[#allocation8 + $0xb0] ss:$8 sps:$4 sm:$0xff]   ;;  %v3334_v28 = vld [vmem:[#allocation8 + $0x1e4] ss:$8 sps:$4 sm:$0xff]  }
 0x10d   :  { %1784 = vmatprep.subr.bf16.mxu1 %v3229_v27  ;;  %v3298_v27 = vld [vmem:[#allocation8 + $0xa4] ss:$8 sps:$4 sm:$0xff]  }
 0x10f   :  { %1812 = vmatpush1.bf16.msra.mxu0 %v3230_v51  ;;  %v3332_v51 = vld [vmem:[#allocation8 + $0x1e0] ss:$8 sps:$4 sm:$0xff]  }
 0x110   :  { %1785 = vmatpush2.bf16.msra.mxu1 %v3227_v29  ;;  %1813 = vmatprep.subr.bf16.mxu0 %v3238_v31  ;;  %v3296_v29 = vld [vmem:[#allocation8 + $0xa0] ss:$8 sps:$4 sm:$0xff]   ;;  %v3337_v31 = vld [vmem:[#allocation8 + $0x1d4] ss:$8 sps:$4 sm:$0xff]  }
 0x111   :  { %1786 = vmatprep.subr.bf16.mxu1 %v3235_v30  ;;  %v3301_v30 = vld [vmem:[#allocation8 + $0x94] ss:$8 sps:$4 sm:$0xff]  }
 0x113   :  { %1814 = vmatpush1.bf16.msra.mxu0 %v3236_v14  ;;  %v3335_v14 = vld [vmem:[#allocation8 + $0x1d0] ss:$8 sps:$4 sm:$0xff]  }
 0x114   :  { %1787 = vmatpush2.bf16.msra.mxu1 %v3233_v32  ;;  %1815 = vmatprep.subr.bf16.mxu0 %v3244_v34  ;;  %v3299_v32 = vld [vmem:[#allocation8 + $0x90] ss:$8 sps:$4 sm:$0xff]   ;;  %v3340_v34 = vld [vmem:[#allocation8 + $0x1c4] ss:$8 sps:$4 sm:$0xff]  }
 0x115   :  { %1788 = vmatprep.subr.bf16.mxu1 %v3241_v33  ;;  %v3304_v33 = vld [vmem:[#allocation8 + $0x84] ss:$8 sps:$4 sm:$0xff]  }
 0x117   :  { %1816 = vmatpush1.bf16.msra.mxu0 %v3242_v37  ;;  %v3338_v37 = vld [vmem:[#allocation8 + $0x1c0] ss:$8 sps:$4 sm:$0xff]  }
 0x118   :  { %1789 = vmatpush2.bf16.msra.mxu1 %v3239_v36  ;;  %1817 = vmatprep.subr.bf16.mxu0 %v3250_v39  ;;  %v3302_v36 = vld [vmem:[#allocation8 + $0x80] ss:$8 sps:$4 sm:$0xff]   ;;  %v3341_v39 = vld [vmem:[#allocation8 + $0x1b0] ss:$8 sps:$4 sm:$0xff]  }
 0x119   :  { %1790 = vmatprep.subr.bf16.mxu1 %v3247_v38  ;;  %v3343_v38 = vld [vmem:[#allocation8 + $0x1b4] ss:$8 sps:$4 sm:$0xff]  }
 0x11b   :  { %1818 = vmatpush1.bf16.msra.mxu0 %v3248_v42  ;;  %v3344_v42 = vld [vmem:[#allocation8 + $0x1a0] ss:$8 sps:$4 sm:$0xff]  }
 0x11c   :  { %1791 = vmatpush2.bf16.msra.mxu1 %v3245_v40  ;;  %1819 = vmatprep.subr.bf16.mxu0 %v3256_v44  ;;  %v3346_v40 = vld [vmem:[#allocation8 + $0x1a4] ss:$8 sps:$4 sm:$0xff]   ;;  %v3347_v44 = vld [vmem:[#allocation8 + $0x190] ss:$8 sps:$4 sm:$0xff]  }
 0x11d   :  { %1792 = vmatprep.subr.bf16.mxu1 %v3253_v43  ;;  %v3349_v43 = vld [vmem:[#allocation8 + $0x194] ss:$8 sps:$4 sm:$0xff]  }
 0x11f   :  { %1820 = vmatpush1.bf16.msra.mxu0 %v3254_v46  ;;  %v3350_v46 = vld [vmem:[#allocation8 + $0x180] ss:$8 sps:$4 sm:$0xff]  }
 0x120   :  { %1793 = vmatpush2.bf16.msra.mxu1 %v3251_v45  ;;  %2256 = vmatprep.subr.bf16.mxu0 %v3259_v47  ;;  %v3352_v45 = vld [vmem:[#allocation8 + $0x184] ss:$8 sps:$4 sm:$0xff]   ;;  %v328_v47 = vlaneseq }
 0x121   :  { %2299 = vmatprep.subr.bf16.mxu1 %v3307_v57 }
 0x122   :  { %1838 = vmatmul.mubr.bf16.vlgmr.msra.gmra.mxu0 %v3584_v41  ;;  %v3313_v41 = vld [vmem:[#allocation8 + $0x154] ss:$8 sps:$4 sm:$0xff]  }
 0x123   :  { %1795 = vmatmul.mubr.bf16.vlgmr.msra.gmra.mxu1 %v3588_v11  ;;  %2257 = vmatpush1.bf16.msra.mxu0 %v3257_v48  ;;  %v3308_v11 = vld [vmem:[#allocation8 + $0x160] ss:$8 sps:$4 sm:$0xff]  }
 0x124   :  { %2258 = vmatprep.subr.bf16.mxu0 %v3262_v50  ;;  %2300 = vmatpush1.bf16.msra.mxu1 %v3305_v56  ;;  %v3597_v50 = vshrl.u32 %v328_v47, 7  ;;  %v3359_v47 = vld [vmem:[#allocation10 + $0x60] sm:$0xff]  }
 0x125   :  { %2301 = vmatprep.subr.bf16.mxu1 %v3310_v58  ;;  %v326_v58 = vld [vmem:[#allocation7] sm:$0xf] }
 0x127   :  { %2259 = vmatpush1.bf16.msra.mxu0 %v3260_v52 }
 0x128   :  { %2260 = vmatprep.subr.bf16.mxu0 %v3265_v53  ;;  %2302 = vmatpush1.bf16.msra.mxu1 %v3308_v11 }
 0x129   :  { %2303 = vmatprep.subr.bf16.mxu1 %v3313_v41 }
 0x12b   :  { %2261 = vmatpush1.bf16.msra.mxu0 %v3263_v54  ;;  %v334_v54 = vsub.s32 1, %v3597_v50 }
 0x12c   :  { %2262 = vmatprep.subr.bf16.mxu0 %v3268_v55  ;;  %2304 = vmatpush1.bf16.msra.mxu1 %v3311_v61  ;;  %v330_v55 = vsub.s32 0, %v3597_v50 }
 0x12d   :  { %2305 = vmatprep.subr.bf16.mxu1 %v3316_v62 }
 0x12f   :  { %2263 = vmatpush1.bf16.msra.mxu0 %v3266_v59  ;;  %v335_v59 = vrot.slane %v326_v58, %v334_v54 }
 0x130   :  { %2264 = vmatprep.subr.bf16.mxu0 %v3271_v49  ;;  %2306 = vmatpush1.bf16.msra.mxu1 %v3314_v1  ;;  %v331_v49 = vrot.slane %v326_v58, %v330_v55 }
 0x131   :  { %2307 = vmatprep.subr.bf16.mxu1 %v3319_v8 }
 0x133   :  { %2265 = vmatpush1.bf16.msra.mxu0 %v3269_v4 }
 0x134   :  { %2266 = vmatprep.subr.bf16.mxu0 %v3274_v60  ;;  %2308 = vmatpush1.bf16.msra.mxu1 %v3317_v9 }
 0x135   :  { %2309 = vmatprep.subr.bf16.mxu1 %v3322_v13 }
 0x137   :  { %2267 = vmatpush1.bf16.msra.mxu0 %v3272_v63 }
 0x138   :  { %2268 = vmatprep.subr.bf16.mxu0 %v3277_v0  ;;  %2310 = vmatpush1.bf16.msra.mxu1 %v3320_v15 }
 0x139   :  { %2311 = vmatprep.subr.bf16.mxu1 %v3325_v18 }
 0x13b   :  { %2269 = vmatpush1.bf16.msra.mxu0 %v3275_v35 }
 0x13c   :  { %2270 = vmatprep.subr.bf16.mxu0 %v3280_v2  ;;  %2312 = vmatpush1.bf16.msra.mxu1 %v3323_v19 }
 0x13d   :  { %2313 = vmatprep.subr.bf16.mxu1 %v3328_v20 }
 0x13f   :  { %2271 = vmatpush1.bf16.msra.mxu0 %v3278_v3 }
 0x140   :  { %2272 = vmatprep.subr.bf16.mxu0 %v3283_v5  ;;  %2314 = vmatpush1.bf16.msra.mxu1 %v3326_v22 }
 0x141   :  { %2315 = vmatprep.subr.bf16.mxu1 %v3331_v24 }
 0x142   :  { %v1538_v52 = vpop.f32.mrf.mxu0 }
 0x143   :  { %2273 = vmatpush2.bf16.msra.mxu0 %v3281_v6  ;;  %v1581_v48 = vpop.f32.mrf.mxu1  ;;  %v1539_v61 = vadd.f32 %v1538_v52, %v331_v49 }
 0x144   :  { %2274 = vmatprep.subr.bf16.mxu0 %v3286_v7  ;;  %2316 = vmatpush2.bf16.msra.mxu1 %v3329_v26  ;;  %v1540_v56 = vpop.f32.mrf.mxu0 }
 0x145   :  { %2317 = vmatprep.subr.bf16.mxu1 %v3334_v28  ;;  %v1583_v53 = vpop.f32.mrf.mxu1  ;;  %v1541_v60 = vadd.f32 %v1540_v56, %v335_v59  ;;  %v1582_v3 = vadd.f32 %v1581_v48, %v1539_v61  ;;  %v3361_v61 = vld [vmem:[#allocation10 + $0x58] sm:$0xff]  }
 0x146   :  { %v1542_v11 = vpop.f32.mrf.mxu0 }
 0x147   :  { %2275 = vmatpush2.bf16.msra.mxu0 %v3284_v10  ;;  %v1585_v57 = vpop.f32.mrf.mxu1  ;;  %v1543_v63 = vadd.f32 %v1542_v11, %v331_v49  ;;  %v1584_v35 = vadd.f32 %v1583_v53, %v1541_v60 }
 0x148   :  { %2276 = vmatprep.subr.bf16.mxu0 %v3289_v12  ;;  %2318 = vmatpush2.bf16.msra.mxu1 %v3332_v51  ;;  %v1544_v62 = vpop.f32.mrf.mxu0 }
 0x149   :  { %2319 = vmatprep.subr.bf16.mxu1 %v3337_v31  ;;  %v1587_v41 = vpop.f32.mrf.mxu1  ;;  %v1545_v2 = vadd.f32 %v1544_v62, %v335_v59  ;;  %v1586_v6 = vadd.f32 %v1585_v57, %v1543_v63  ;;  %v342_v31 = vsub.s32 3, %v3597_v50 }
 0x14b   :  { %2277 = vmatpush2.bf16.msra.mxu0 %v3287_v16  ;;  %v1588_v12 = vadd.f32 %v1587_v41, %v1545_v2  ;;  %v3360_v41 = vld [vmem:[#allocation10 + $0x20] sm:$0xff]  }
 0x14c   :  { %2278 = vmatprep.subr.bf16.mxu0 %v3292_v17  ;;  %2320 = vmatpush2.bf16.msra.mxu1 %v3335_v14  ;;  %v3354_v14 = vld [vmem:[#allocation10 + $0x38] sm:$0xff]  }
 0x14d   :  { %2321 = vmatprep.subr.bf16.mxu1 %v3340_v34  ;;  %v338_v34 = vsub.s32 2, %v3597_v50 }
 0x14f   :  { %2279 = vmatpush2.bf16.msra.mxu0 %v3290_v21 }
 0x150   :  { %2280 = vmatprep.subr.bf16.mxu0 %v3295_v23  ;;  %2322 = vmatpush2.bf16.msra.mxu1 %v3338_v37 }
 0x151   :  { %2323 = vmatprep.subr.bf16.mxu1 %v3343_v38  ;;  %v3356_v38 = vld [vmem:[#allocation10 + $0x30] sm:$0xff]  }
 0x153   :  { %2281 = vmatpush2.bf16.msra.mxu0 %v3293_v25 }
 0x154   :  { %2282 = vmatprep.subr.bf16.mxu0 %v3298_v27  ;;  %2324 = vmatpush2.bf16.msra.mxu1 %v3341_v39  ;;  %v343_v39 = vrot.slane %v326_v58, %v342_v31 }
 0x155   :  { %2325 = vmatprep.subr.bf16.mxu1 %v3346_v40  ;;  %v3357_v40 = vld [vmem:[#allocation10 + $0x68] sm:$0xff]  }
 0x157   :  { %2283 = vmatpush2.bf16.msra.mxu0 %v3296_v29 }
 0x158   :  { %2284 = vmatprep.subr.bf16.mxu0 %v3301_v30  ;;  %2326 = vmatpush2.bf16.msra.mxu1 %v3344_v42  ;;  %v339_v42 = vrot.slane %v326_v58, %v338_v34 }
 0x159   :  { %2327 = vmatprep.subr.bf16.mxu1 %v3349_v43 }
 0x15b   :  { %2285 = vmatpush2.bf16.msra.mxu0 %v3299_v32  ;;  %v3353_v32 = vld [vmem:[#allocation10 + $0x78] sm:$0xff]  }
 0x15c   :  { %2286 = vmatprep.subr.bf16.mxu0 %v3304_v33  ;;  %2328 = vmatpush2.bf16.msra.mxu1 %v3347_v44  ;;  %v3355_v33 = vld [vmem:[#allocation10 + $0x70] sm:$0xff]  }
 0x15d   :  { %2329 = vmatprep.subr.bf16.mxu1 %v3352_v45  ;;  %v3358_v45 = vld [vmem:[#allocation10 + $0x28] sm:$0xff]  }
 0x15f   :  { %2287 = vmatpush2.bf16.msra.mxu0 %v3302_v36 }
 0x160   :  { %2330 = vmatpush2.bf16.msra.mxu1 %v3350_v46  ;;  %2874 = vmatprep.subr.bf16.mxu0 %v3353_v32 }
 0x163   :  { %v1667_v4 = vpop.f32.mrf.mxu1 }
 0x165   :  { %v1669_v0 = vpop.f32.mrf.mxu1 }
 0x167   :  { %v1671_v8 = vpop.f32.mrf.mxu1 }
 0x169   :  { %v1673_v19 = vpop.f32.mrf.mxu1 }
 0x182   :  { %v1624_v1 = vpop.f32.mrf.mxu0 }
 0x183   :  { %v1625_v9 = vadd.f32 %v1624_v1, %v1582_v3  ;;  %v3362_v3 = vld [vmem:[#allocation10 + $0x18] sm:$0xff]  }
 0x184   :  { %v1626_v5 = vpop.f32.mrf.mxu0 }
 0x185   :  { %v1627_v7 = vadd.f32 %v1626_v5, %v1584_v35  ;;  %v1668_v20 = vadd.f32 %v1667_v4, %v1625_v9 }
 0x186   :  { %v1628_v10 = vpop.f32.mrf.mxu0 }
 0x187   :  { %v1629_v13 = vadd.f32 %v1628_v10, %v1586_v6  ;;  %v1670_v16 = vadd.f32 %v1669_v0, %v1627_v7  ;;  %v1848_v25 = vmax.f32 %v1668_v20, 0.0  ;;  %v3364_v20 = vld [vmem:[#allocation10 + $0x10] sm:$0xff]  }
 0x188   :  { %v1630_v15 = vpop.f32.mrf.mxu0 }
 0x189   :  { %v1672_v17 = vadd.f32 %v1671_v8, %v1629_v13  ;;  %v1631_v18 = vadd.f32 %v1630_v15, %v1588_v12  ;;  %v1849_v23 = vmax.f32 %v1670_v16, 0.0 }
 0x18b   :  { %v1674_v21 = vadd.f32 %v1673_v19, %v1631_v18  ;;  %v1852_v22 = vmax.f32 %v1672_v17, 0.0  ;;  %v3363_v19 = vld [vmem:[#allocation10 + $0x50] sm:$0xff]  }
 0x18d   :  { %v1853_v24 = vmax.f32 %v1674_v21, 0.0  ;;  %v1856_v27 = vpack.c.bf16 %v1852_v22, %v1848_v25  ;;  %v3365_v21 = vld [vmem:[#allocation10 + $0x48] sm:$0xff]  }
 0x18e   :  { %v3366_v22 = vld [vmem:[#allocation10 + $0x8] sm:$0xff]  }
 0x18f   :  { %v1857_v26 = vpack.c.bf16 %v1853_v24, %v1849_v23  ;;  %v3367_v23 = vld [vmem:[#allocation10 + $0x40] sm:$0xff]  }
 0x190   :  { %v3368_v24 = vld [vmem:[#allocation10] sm:$0xff]  }
 0x191   :  { %2288 = vmatprep.mubr.bf16.mxu0 %v1857_v26 }
 0x192   :  { %2289 = vmatmul.mubr.bf16.vlgmr.msra.gmra.mxu0 %v1856_v27  ;;  %v1924_v27 = vld [vmem:[%s3627_s4] sm:$0x3] }
 0x193   :  { %2875 = vmatpush3.bf16.msra.mxu0 %v3354_v14 }
 0x194   :  { %2876 = vmatprep.subr.bf16.mxu0 %v3355_v33 }
 0x197   :  { %2877 = vmatpush3.bf16.msra.mxu0 %v3356_v38 }
 0x198   :  { %2878 = vmatprep.subr.bf16.mxu0 %v3357_v40 }
 0x19b   :  { %2879 = vmatpush3.bf16.msra.mxu0 %v3358_v45 }
 0x19c   :  { %2880 = vmatprep.subr.bf16.mxu0 %v3359_v47 }
 0x19f   :  { %2881 = vmatpush3.bf16.msra.mxu0 %v3360_v41 }
 0x1a0   :  { %2882 = vmatprep.subr.bf16.mxu0 %v3361_v61 }
 0x1a3   :  { %v1710_v28 = vpop.f32.mrf.mxu1  ;;  %2883 = vmatpush3.bf16.msra.mxu0 %v3362_v3 }
 0x1a4   :  { %v1711_v48 = vadd.f32 %v1710_v28, %v339_v42  ;;  %2884 = vmatprep.subr.bf16.mxu0 %v3363_v19 }
 0x1a5   :  { %v1712_v51 = vpop.f32.mrf.mxu1 }
 0x1a6   :  { %v1713_v46 = vadd.f32 %v1712_v51, %v343_v39  ;;  %v1929_v51 = vrot.slane %v1924_v27, %v330_v55 }
 0x1a7   :  { %v1714_v36 = vpop.f32.mrf.mxu1  ;;  %2885 = vmatpush3.bf16.msra.mxu0 %v3364_v20 }
 0x1a8   :  { %v1715_v56 = vadd.f32 %v1714_v36, %v339_v42  ;;  %2886 = vmatprep.subr.bf16.mxu0 %v3365_v21 }
 0x1a9   :  { %v1716_v43 = vpop.f32.mrf.mxu1 }
 0x1aa   :  { %v1717_v4 = vadd.f32 %v1716_v43, %v343_v39 }
 0x1ab   :  { %2887 = vmatpush3.bf16.msra.mxu0 %v3366_v22 }
 0x1ac   :  { %2888 = vmatprep.subr.bf16.mxu0 %v3367_v23 }
 0x1af   :  { %2889 = vmatpush3.bf16.msra.mxu0 %v3368_v24 }
 0x1c2   :  { %v1753_v29 = vpop.f32.mrf.mxu0 }
 0x1c3   :  { %v1754_v59 = vadd.f32 %v1753_v29, %v1711_v48  ;;  %v1933_v29 = vrot.slane %v1924_v27, %v334_v54 }
 0x1c4   :  { %v1755_v30 = vpop.f32.mrf.mxu0 }
 0x1c5   :  { %v1756_v57 = vadd.f32 %v1755_v30, %v1713_v46 }
 0x1c6   :  { %v1757_v37 = vpop.f32.mrf.mxu0 }
 0x1c7   :  { %v1758_v60 = vadd.f32 %v1757_v37, %v1715_v56  ;;  %v2848_v56 = vld [vmem:[%s3629_s6] ss:$0 sm:$0xff] }
 0x1c8   :  { %v1759_v44 = vpop.f32.mrf.mxu0 }
 0x1c9   :  { %v1760_v1 = vadd.f32 %v1759_v44, %v1717_v4 }
 0x1e2   :  { %v1839_v53 = vpop.f32.mrf.mxu0 }
 0x1e3   :  { %v1796_v52 = vpop.f32.mrf.mxu1 }
 0x1e4   :  { %v1841_v11 = vpop.f32.mrf.mxu0  ;;  %v1797_v62 = vadd.f32 %v1796_v52, %v1754_v59 }
 0x1e5   :  { %v1798_v49 = vpop.f32.mrf.mxu1 }
 0x1e6   :  { %v1799_v58 = vadd.f32 %v1798_v49, %v1756_v57  ;;  %v1843_v0 = vpop.f32.mrf.mxu0  ;;  %v1840_v8 = vadd.f32 %v1839_v53, %v1797_v62 }
 0x1e7   :  { %v1800_v63 = vpop.f32.mrf.mxu1 }
 0x1e8   :  { %v1801_v35 = vadd.f32 %v1800_v63, %v1758_v60  ;;  %v1842_v5 = vadd.f32 %v1841_v11, %v1799_v58  ;;  %v1845_v9 = vpop.f32.mrf.mxu0  ;;  %v1850_v16 = vmax.f32 %v1840_v8, 0.0 }
 0x1e9   :  { %v1802_v2 = vpop.f32.mrf.mxu1 }
 0x1ea   :  { %v1844_v6 = vadd.f32 %v1843_v0, %v1801_v35  ;;  %v1803_v7 = vadd.f32 %v1802_v2, %v1760_v1  ;;  %v1851_v13 = vmax.f32 %v1842_v5, 0.0 }
 0x1ec   :  { %v1846_v10 = vadd.f32 %v1845_v9, %v1803_v7  ;;  %v1854_v12 = vmax.f32 %v1844_v6, 0.0 }
 0x1ee   :  { %v1855_v15 = vmax.f32 %v1846_v10, 0.0  ;;  %v1858_v18 = vpack.c.bf16 %v1854_v12, %v1850_v16 }
 0x1f0   :  { %v1859_v17 = vpack.c.bf16 %v1855_v15, %v1851_v13 }
 0x1f2   :  { %2331 = vmatprep.mubr.bf16.mxu1 %v1859_v17 }
 0x1f3   :  { %2332 = vmatmul.mubr.bf16.vlgmr.msra.gmra.mxu1 %v1858_v18 }
 0x252   :  { %v2290_v25 = vpop.f32.mrf.mxu0 }
 0x253   :  { %v2291_v34 = vadd.f32 %v2290_v25, %v1929_v51 }
 0x254   :  { %v2292_v26 = vpop.f32.mrf.mxu0 }
 0x255   :  { %v2293_v14 = vadd.f32 %v2292_v26, %v1933_v29 }
 0x256   :  { %v2294_v28 = vpop.f32.mrf.mxu0 }
 0x257   :  { %v2295_v33 = vadd.f32 %v2294_v28, %v1929_v51 }
 0x258   :  { %v2296_v31 = vpop.f32.mrf.mxu0 }
 0x259   :  { %v2297_v37 = vadd.f32 %v2296_v31, %v1933_v29 }
 0x2b3   :  { %v2333_v30 = vpop.f32.mrf.mxu1 }
 0x2b4   :  { %v2334_v40 = vadd.f32 %v2333_v30, %v2291_v34 }
 0x2b5   :  { %v2335_v32 = vpop.f32.mrf.mxu1 }
 0x2b6   :  { %v2336_v38 = vadd.f32 %v2335_v32, %v2293_v14  ;;  %v2342_v54 = vmax.f32 %v2334_v40, 0.0 }
 0x2b7   :  { %v2337_v36 = vpop.f32.mrf.mxu1 }
 0x2b8   :  { %v2338_v39 = vadd.f32 %v2337_v36, %v2295_v33  ;;  %v2343_v45 = vmax.f32 %v2336_v38, 0.0 }
 0x2b9   :  { %v2339_v42 = vpop.f32.mrf.mxu1 }
 0x2ba   :  { %v2340_v43 = vadd.f32 %v2339_v42, %v2297_v37  ;;  %v2344_v44 = vmax.f32 %v2338_v39, 0.0 }
 0x2bc   :  { %v2345_v46 = vmax.f32 %v2340_v43, 0.0  ;;  %v2346_v50 = vpack.c.bf16 %v2344_v44, %v2342_v54 }
 0x2be   :  { %v2347_v47 = vpack.c.bf16 %v2345_v46, %v2343_v45 }
 0x2c0   :  { %2515 = vmatprep.mubr.bf16.mxu0 %v2347_v47 }
 0x2c1   :  { %2516 = vmatmul.mubr.bf16.vlgmr.msra.gmra.mxu0 %v2346_v50 }
 0x381   :  { %v2890_v55 = vpop.f32.mrf.mxu0 }
 0x383   :  { %v2891_v48 = vpop.f32.mrf.mxu0 }
 0x384   :  { %v2892_v53 = vadd.f32 %v2891_v48, %v2890_v55 }
 0x385   :  { %v2893_v52 = vpop.f32.mrf.mxu0 }
 0x386   :  { %v2518_v49 = vadd.f32 %v2892_v53, %v2848_v56 }
 0x387   :  { %v2894_v57 = vpop.f32.mrf.mxu0 }
 0x388   :  { %v2895_v59 = vadd.f32 %v2894_v57, %v2893_v52 }
 0x38a   :  { %v2521_v11 = vadd.f32 %v2895_v59, %v2848_v56 }
 0x38c   :  { %v2872_v41 = vpack.c.bf16 %v2521_v11, %v2518_v49 }
 0x38e   :  { %2873 = vst [vmem:[#allocation11] sm:$0xff] %v2872_v41  }
 0x38f   :  { %3481 = shalt.err (!%p3478_p1)
}
 0x390   :  { %2545 = dma.vmem_to_hbm [thread:$0]  %s2540_s10, 128, %s3630_s7, [#allocation4], %s3509_s0, %s3509_s0, %s3510_s28  }
 0x391   :  { %3496 = dma.done.wait [#allocation4], 128  }
 0x392   :  { %3497 = vsyncadd [#allocation4], 4294967168 }
 0x393   :  { %2549 = vsyncpa [#allocation3], 1 }
 0x394   :  { %2550 = vsyncpa [#allocation6], 1 }
 0x395   :  { %2551 = vsyncpa [#allocation9], 1 }
 0x396   :  { %2552 = vsyncpa [#allocation4], 1 }

// kernel: tpu_custom_call.1
= control target key start
LH: loop header
LB: loop body
LE: loop exit
PB: predicated region body
PF: predicated region fallthrough
CT: control target
= control target key end

     0   :  { %12 = vsyncpa [#allocation3], 0  ;;  %s3623_s0 = inlined_call_operand.hbm [shape: bf16[16,896], index: 0, kind: input, shape index: {}]   ;;  %s3624_s1 = inlined_call_operand.hbm [shape: bf16[896,512], index: 1, kind: input, shape index: {}]   ;;  %s3625_s2 = inlined_call_operand.hbm [shape: f32[1,512], index: 2, kind: input, shape index: {}]   ;;  %s3626_s3 = inlined_call_operand.hbm [shape: bf16[512,256], index: 3, kind: input, shape index: {}]   ;;  %s3627_s4 = inlined_call_operand.vmem [shape: f32[1,256], index: 4, kind: input, shape index: {}]   ;;  %s3628_s5 = inlined_call_operand.hbm [shape: bf16[256,128], index: 5, kind: input, shape index: {}]   ;;  %s3629_s6 = inlined_call_operand.vmem [shape: f32[1,128], index: 6, kind: input, shape index: {}]   ;;  %s3630_s7 = inlined_call_operand.hbm [shape: bf16[16,128], index: 7, kind: output, shape index: {}]  }
   0x1   :  { %13 = vsyncpa [#allocation6], 0 }
   0x2   :  { %14 = vsyncpa [#allocation9], 0 }
   0x3   :  { %15 = vsyncpa [#allocation4], 0  ;;  %s3498_s24 = smov [#allocation5]  }
   0x4   :  { %s33_s25 = sshll.u32 %s3498_s24, 4  ;;  %s34_s25 = int_to_ptr.vmem [resolvable:$true] %s33_s25 }
   0x5   :  { %s3378_s26 = scalar_lea.vmem %s34_s25, 28672  ;;  %p3383_p1 = scmp.lt.s32.totalorder %s34_s25, %s34_s25 }
   0x6   :  { %p3379_p0 = scmp.ne.s32.totalorder %s34_s25, %s3378_s26  ;;  %p3384_p2 = scmp.lt.s32.totalorder %s3378_s26, %s3378_s26 }
   0x8   :  { %p3385_p3 = por %p3384_p2, %p3383_p1 }
   0xa   :  { %p3386_p4 = pnand %p3385_p3, %p3379_p0 }
   0xc   :  { %3389 = shalt.err (!%p3386_p4)
}
   0xd   :  { %s3499_s27 = smov 256   ;;  %s3500_s28 = smov 16  }
   0xe   :  { %39 = dma.hbm_to_vmem [thread:$0]  %s3624_s1, 28672, %s34_s25, [#allocation6], %s3499_s27, %s3499_s27, %s3500_s28  }
   0xf   :  { %s3501_s8 = smov [#allocation8]  }
  0x10   :  { %s55_s9 = sshll.u32 %s3501_s8, 4  ;;  %s56_s9 = int_to_ptr.vmem [resolvable:$true] %s55_s9 }
  0x11   :  { %s3398_s10 = scalar_lea.vmem %s56_s9, 8192  ;;  %p3403_p6 = scmp.lt.s32.totalorder %s56_s9, %s56_s9 }
  0x12   :  { %p3399_p5 = scmp.ne.s32.totalorder %s56_s9, %s3398_s10  ;;  %p3404_p7 = scmp.lt.s32.totalorder %s3398_s10, %s3398_s10 }
  0x14   :  { %p3405_p8 = por %p3404_p7, %p3403_p6 }
  0x16   :  { %p3406_p9 = pnand %p3405_p8, %p3399_p5 }
  0x18   :  { %3409 = shalt.err (!%p3406_p9)
}
  0x19   :  { %s3502_s11 = smov 128   ;;  %s3503_s12 = smov 8  }
  0x1a   :  { %61 = dma.hbm_to_vmem [thread:$0]  %s3626_s3, 8192, %s56_s9, [#allocation9], %s3502_s11, %s3502_s11, %s3503_s12  }
  0x1b   :  { %s3504_s15 = smov [#allocation2]  }
  0x1c   :  { %s21_s16 = sshll.u32 %s3504_s15, 4  ;;  %s22_s16 = int_to_ptr.vmem [resolvable:$true] %s21_s16 }
  0x1d   :  { %s3418_s1 = scalar_lea.vmem %s22_s16, 896  ;;  %p3423_p11 = scmp.lt.s32.totalorder %s22_s16, %s22_s16 }
  0x1e   :  { %p3419_p10 = scmp.ne.s32.totalorder %s22_s16, %s3418_s1  ;;  %p3424_p12 = scmp.lt.s32.totalorder %s3418_s1, %s3418_s1 }
  0x20   :  { %p3425_p13 = por %p3424_p12, %p3423_p11 }
  0x22   :  { %p3426_p0 = pnand %p3425_p13, %p3419_p10 }
  0x24   :  { %3429 = shalt.err (!%p3426_p0)
}
  0x25   :  { %s3505_s17 = smov 448   ;;  %s3506_s18 = smov 28  }
  0x26   :  { %27 = dma.hbm_to_vmem [thread:$0]  %s3623_s0, 896, %s22_s16, [#allocation3], %s3505_s17, %s3505_s17, %s3506_s18  }
  0x27   :  { %s3507_s21 = smov [#allocation7]   ;;  %s3508_s3 = smov [#allocation10]  }
  0x28   :  { %s46_s22 = sshll.u32 %s3507_s21, 4  ;;  %s69_s23 = sshll.u32 %s3508_s3, 4  ;;  %s47_s22 = int_to_ptr.vmem [resolvable:$true] %s46_s22  ;;  %s70_s23 = int_to_ptr.vmem [resolvable:$true] %s69_s23 }
  0x29   :  { %s3438_s24 = scalar_lea.vmem %s47_s22, 64  ;;  %p3443_p2 = scmp.lt.s32.totalorder %s47_s22, %s47_s22 }
  0x2a   :  { %p3439_p1 = scmp.ne.s32.totalorder %s47_s22, %s3438_s24  ;;  %p3444_p3 = scmp.lt.s32.totalorder %s3438_s24, %s3438_s24 }
  0x2c   :  { %p3445_p4 = por %p3444_p3, %p3443_p2 }
  0x2e   :  { %p3446_p5 = pnand %p3445_p4, %p3439_p1 }
  0x30   :  { %3449 = shalt.err (!%p3446_p5)
}
  0x31   :  { %49 = dma.hbm_to_vmem [thread:$0]  %s3625_s2, 64, %s47_s22, [#allocation6]  }
  0x32   :  { %s3458_s27 = scalar_lea.vmem %s70_s23, 2048  ;;  %p3463_p7 = scmp.lt.s32.totalorder %s70_s23, %s70_s23 }
  0x33   :  { %p3459_p6 = scmp.ne.s32.totalorder %s70_s23, %s3458_s27  ;;  %p3464_p8 = scmp.lt.s32.totalorder %s3458_s27, %s3458_s27 }
  0x35   :  { %p3465_p9 = por %p3464_p8, %p3463_p7 }
  0x37   :  { %p3466_p10 = pnand %p3465_p9, %p3459_p6 }
  0x39   :  { %3469 = shalt.err (!%p3466_p10)
}
  0x3a   :  { %s3509_s0 = smov 64   ;;  %s3510_s28 = smov 4  }
  0x3b   :  { %75 = dma.hbm_to_vmem [thread:$0]  %s3628_s5, 2048, %s70_s23, [#allocation9], %s3509_s0, %s3509_s0, %s3510_s28  }
  0x3c   :  { %3490 = dma.done.wait [#allocation3], 896  }
  0x3d   :  { %3491 = vsyncadd [#allocation3], 4294966400 }
  0x3e   :  { %3492 = dma.done.wait [#allocation6], 28736  }
  0x3f   :  { %3493 = vsyncadd [#allocation6], 4294938560 }
  0x40   :  { %3494 = dma.done.wait [#allocation9], 10240  }
  0x41   :  { %3495 = vsyncadd [#allocation9], 4294957056  ;;  %v2911_v0 = vld [vmem:[#allocation5 + $0xe4] ss:$16 sps:$4 sm:$0xff]   ;;  %v2915_v2 = vld [vmem:[#allocation5 + $0xe0] ss:$16 sps:$4 sm:$0xff]  }
  0x42   :  { %v2913_v1 = vld [vmem:[#allocation5 + $0x2e4] ss:$16 sps:$4 sm:$0xff]   ;;  %1504 = vmatprep.subr.bf16.mxu0 %v2911_v0  ;;  %v2916_v3 = vld [vmem:[#allocation5 + $0x2e0] ss:$16 sps:$4 sm:$0xff]   ;;  %v3571_v49 = vld [vmem:[#allocation2 + $0x4] ss:$28 sps:$4 sm:$0xff]  }
  0x43   :  { %1547 = vmatprep.subr.bf16.mxu1 %v2913_v1  ;;  %v2917_v4 = vld [vmem:[#allocation5 + $0xc4] ss:$16 sps:$4 sm:$0xff]   ;;  %1505 = vmatpush1.bf16.msra.mxu0 %v2915_v2  ;;  %v2921_v6 = vld [vmem:[#allocation5 + $0xc0] ss:$16 sps:$4 sm:$0xff]   ;;  %s3512_s9 = smov [#allocation11]  }
  0x44   :  { %1548 = vmatpush1.bf16.msra.mxu1 %v2916_v3  ;;  %v2919_v5 = vld [vmem:[#allocation5 + $0x2c4] ss:$16 sps:$4 sm:$0xff]   ;;  %1506 = vmatprep.subr.bf16.mxu0 %v2917_v4  ;;  %v2922_v7 = vld [vmem:[#allocation5 + $0x2c0] ss:$16 sps:$4 sm:$0xff]   ;;  %s2539_s10 = sshll.u32 %s3512_s9, 4  ;;  %s2540_s10 = int_to_ptr.vmem [resolvable:$true] %s2539_s10 }
  0x45   :  { %1549 = vmatprep.subr.bf16.mxu1 %v2919_v5  ;;  %v2923_v8 = vld [vmem:[#allocation5 + $0xa4] ss:$16 sps:$4 sm:$0xff]   ;;  %v2927_v10 = vld [vmem:[#allocation5 + $0xa0] ss:$16 sps:$4 sm:$0xff]   ;;  %1536 = vmatprep.mubr.bf16.mxu0 %v3571_v49  ;;  %s3470_s11 = scalar_lea.vmem %s2540_s10, 128  ;;  %p3475_p12 = scmp.lt.s32.totalorder %s2540_s10, %s2540_s10 }
  0x46   :  { %v2925_v9 = vld [vmem:[#allocation5 + $0x2a4] ss:$16 sps:$4 sm:$0xff]   ;;  %v2928_v11 = vld [vmem:[#allocation5 + $0x2a0] ss:$16 sps:$4 sm:$0xff]   ;;  %p3471_p11 = scmp.ne.s32.totalorder %s2540_s10, %s3470_s11  ;;  %p3476_p13 = scmp.lt.s32.totalorder %s3470_s11, %s3470_s11 }
  0x47   :  { %1507 = vmatpush1.bf16.msra.mxu0 %v2921_v6  ;;  %v2929_v12 = vld [vmem:[#allocation5 + $0x84] ss:$16 sps:$4 sm:$0xff]   ;;  %v2933_v14 = vld [vmem:[#allocation5 + $0x80] ss:$16 sps:$4 sm:$0xff]  }
  0x48   :  { %1550 = vmatpush1.bf16.msra.mxu1 %v2922_v7  ;;  %1508 = vmatprep.subr.bf16.mxu0 %v2923_v8  ;;  %v2931_v13 = vld [vmem:[#allocation5 + $0x284] ss:$16 sps:$4 sm:$0xff]   ;;  %v2934_v15 = vld [vmem:[#allocation5 + $0x280] ss:$16 sps:$4 sm:$0xff]   ;;  %p3477_p0 = por %p3476_p13, %p3475_p12 }
  0x49   :  { %1551 = vmatprep.subr.bf16.mxu1 %v2925_v9  ;;  %v2935_v16 = vld [vmem:[#allocation5 + $0x64] ss:$16 sps:$4 sm:$0xff]   ;;  %v2939_v18 = vld [vmem:[#allocation5 + $0x60] ss:$16 sps:$4 sm:$0xff]  }
  0x4a   :  { %v2937_v17 = vld [vmem:[#allocation5 + $0x264] ss:$16 sps:$4 sm:$0xff]   ;;  %v2940_v19 = vld [vmem:[#allocation5 + $0x260] ss:$16 sps:$4 sm:$0xff]   ;;  %p3478_p1 = pnand %p3477_p0, %p3471_p11 }
  0x4b   :  { %1509 = vmatpush1.bf16.msra.mxu0 %v2927_v10  ;;  %v2941_v20 = vld [vmem:[#allocation5 + $0x44] ss:$16 sps:$4 sm:$0xff]   ;;  %v2945_v22 = vld [vmem:[#allocation5 + $0x40] ss:$16 sps:$4 sm:$0xff]  }
  0x4c   :  { %1552 = vmatpush1.bf16.msra.mxu1 %v2928_v11  ;;  %1510 = vmatprep.subr.bf16.mxu0 %v2929_v12  ;;  %v2943_v21 = vld [vmem:[#allocation5 + $0x244] ss:$16 sps:$4 sm:$0xff]   ;;  %v2946_v23 = vld [vmem:[#allocation5 + $0x240] ss:$16 sps:$4 sm:$0xff]  }
  0x4d   :  { %1553 = vmatprep.subr.bf16.mxu1 %v2931_v13  ;;  %v2947_v24 = vld [vmem:[#allocation5 + $0x24] ss:$16 sps:$4 sm:$0xff]   ;;  %v2951_v26 = vld [vmem:[#allocation5 + $0x20] ss:$16 sps:$4 sm:$0xff]  }
  0x4e   :  { %v2949_v25 = vld [vmem:[#allocation5 + $0x224] ss:$16 sps:$4 sm:$0xff]   ;;  %v2952_v27 = vld [vmem:[#allocation5 + $0x220] ss:$16 sps:$4 sm:$0xff]  }
  0x4f   :  { %1511 = vmatpush1.bf16.msra.mxu0 %v2933_v14  ;;  %v2953_v28 = vld [vmem:[#allocation5 + $0x4] ss:$16 sps:$4 sm:$0xff]   ;;  %v2957_v30 = vld [vmem:[#allocation5] ss:$16 sps:$4 sm:$0xff]   ;;  %v3511_v14 = vmov 0  }
  0x50   :  { %1554 = vmatpush1.bf16.msra.mxu1 %v2934_v15  ;;  %1512 = vmatprep.subr.bf16.mxu0 %v2935_v16  ;;  %v2955_v29 = vld [vmem:[#allocation5 + $0x204] ss:$16 sps:$4 sm:$0xff]   ;;  %v2958_v31 = vld [vmem:[#allocation5 + $0x200] ss:$16 sps:$4 sm:$0xff]  }
  0x51   :  { %1555 = vmatprep.subr.bf16.mxu1 %v2937_v17  ;;  %v2959_v32 = vld [vmem:[#allocation5 + $0x1e4] ss:$16 sps:$4 sm:$0xff]   ;;  %v2963_v34 = vld [vmem:[#allocation5 + $0x1e0] ss:$16 sps:$4 sm:$0xff]  }
  0x52   :  { %v2961_v33 = vld [vmem:[#allocation5 + $0x3e4] ss:$16 sps:$4 sm:$0xff]   ;;  %v2964_v35 = vld [vmem:[#allocation5 + $0x3e0] ss:$16 sps:$4 sm:$0xff]  }
  0x53   :  { %1513 = vmatpush1.bf16.msra.mxu0 %v2939_v18  ;;  %v2965_v36 = vld [vmem:[#allocation5 + $0x1c4] ss:$16 sps:$4 sm:$0xff]   ;;  %v2969_v38 = vld [vmem:[#allocation5 + $0x1c0] ss:$16 sps:$4 sm:$0xff]  }
  0x54   :  { %1556 = vmatpush1.bf16.msra.mxu1 %v2940_v19  ;;  %1514 = vmatprep.subr.bf16.mxu0 %v2941_v20  ;;  %v2967_v37 = vld [vmem:[#allocation5 + $0x3c4] ss:$16 sps:$4 sm:$0xff]   ;;  %v2970_v39 = vld [vmem:[#allocation5 + $0x3c0] ss:$16 sps:$4 sm:$0xff]  }
  0x55   :  { %1557 = vmatprep.subr.bf16.mxu1 %v2943_v21  ;;  %v2971_v40 = vld [vmem:[#allocation5 + $0x1a4] ss:$16 sps:$4 sm:$0xff]   ;;  %v2975_v42 = vld [vmem:[#allocation5 + $0x1a0] ss:$16 sps:$4 sm:$0xff]  }
  0x56   :  { %v2973_v41 = vld [vmem:[#allocation5 + $0x3a4] ss:$16 sps:$4 sm:$0xff]   ;;  %v2976_v43 = vld [vmem:[#allocation5 + $0x3a0] ss:$16 sps:$4 sm:$0xff]  }
  0x57   :  { %1515 = vmatpush1.bf16.msra.mxu0 %v2945_v22  ;;  %v2977_v44 = vld [vmem:[#allocation5 + $0x184] ss:$16 sps:$4 sm:$0xff]   ;;  %v2981_v46 = vld [vmem:[#allocation5 + $0x180] ss:$16 sps:$4 sm:$0xff]  }
  0x58   :  { %1558 = vmatpush1.bf16.msra.mxu1 %v2946_v23  ;;  %1516 = vmatprep.subr.bf16.mxu0 %v2947_v24  ;;  %v2979_v45 = vld [vmem:[#allocation5 + $0x384] ss:$16 sps:$4 sm:$0xff]   ;;  %v2982_v47 = vld [vmem:[#allocation5 + $0x380] ss:$16 sps:$4 sm:$0xff]  }
  0x59   :  { %1559 = vmatprep.subr.bf16.mxu1 %v2949_v25  ;;  %v2983_v48 = vld [vmem:[#allocation5 + $0x164] ss:$16 sps:$4 sm:$0xff]   ;;  %v2987_v52 = vld [vmem:[#allocation5 + $0x160] ss:$16 sps:$4 sm:$0xff]  }
  0x5a   :  { %v2985_v50 = vld [vmem:[#allocation5 + $0x364] ss:$16 sps:$4 sm:$0xff]   ;;  %v2988_v53 = vld [vmem:[#allocation5 + $0x360] ss:$16 sps:$4 sm:$0xff]  }
  0x5b   :  { %1517 = vmatpush1.bf16.msra.mxu0 %v2951_v26  ;;  %v3573_v51 = vld [vmem:[#allocation2 + $0xc] ss:$28 sps:$4 sm:$0xff]   ;;  %v3577_v4 = vld [vmem:[#allocation2] ss:$28 sps:$4 sm:$0xff]  }
  0x5c   :  { %1560 = vmatpush1.bf16.msra.mxu1 %v2952_v27  ;;  %1518 = vmatprep.subr.bf16.mxu0 %v2953_v28  ;;  %v2989_v54 = vld [vmem:[#allocation5 + $0x144] ss:$16 sps:$4 sm:$0xff]   ;;  %v2993_v56 = vld [vmem:[#allocation5 + $0x140] ss:$16 sps:$4 sm:$0xff]  }
  0x5d   :  { %1561 = vmatprep.subr.bf16.mxu1 %v2955_v29  ;;  %1579 = vmatprep.mubr.bf16.mxu1 %v3573_v51  ;;  %v2991_v55 = vld [vmem:[#allocation5 + $0x344] ss:$16 sps:$4 sm:$0xff]   ;;  %v2994_v57 = vld [vmem:[#allocation5 + $0x340] ss:$16 sps:$4 sm:$0xff]  }
  0x5e   :  { %v2995_v58 = vld [vmem:[#allocation5 + $0x124] ss:$16 sps:$4 sm:$0xff]   ;;  %v2999_v60 = vld [vmem:[#allocation5 + $0x120] ss:$16 sps:$4 sm:$0xff]  }
  0x5f   :  { %1519 = vmatpush1.bf16.msra.mxu0 %v2957_v30  ;;  %v2997_v59 = vld [vmem:[#allocation5 + $0x324] ss:$16 sps:$4 sm:$0xff]   ;;  %v3000_v61 = vld [vmem:[#allocation5 + $0x320] ss:$16 sps:$4 sm:$0xff]  }
  0x60   :  { %1562 = vmatpush1.bf16.msra.mxu1 %v2958_v31  ;;  %1520 = vmatprep.subr.bf16.mxu0 %v2959_v32  ;;  %v3001_v62 = vld [vmem:[#allocation5 + $0x104] ss:$16 sps:$4 sm:$0xff]   ;;  %v3005_v0 = vld [vmem:[#allocation5 + $0x100] ss:$16 sps:$4 sm:$0xff]  }
  0x61   :  { %1563 = vmatprep.subr.bf16.mxu1 %v2961_v33  ;;  %v3003_v63 = vld [vmem:[#allocation5 + $0x304] ss:$16 sps:$4 sm:$0xff]   ;;  %v3006_v1 = vld [vmem:[#allocation5 + $0x300] ss:$16 sps:$4 sm:$0xff]  }
  0x62   :  { %v3015_v2 = vld [vmem:[#allocation5 + $0x4e4] ss:$16 sps:$4 sm:$0xff]   ;;  %v3010_v5 = vld [vmem:[#allocation2 + $0x8] ss:$28 sps:$4 sm:$0xff]  }
  0x63   :  { %1521 = vmatpush2.bf16.msra.mxu0 %v2963_v34  ;;  %v3018_v3 = vld [vmem:[#allocation5 + $0x6e4] ss:$16 sps:$4 sm:$0xff]   ;;  %v3013_v6 = vld [vmem:[#allocation5 + $0x4e0] ss:$16 sps:$4 sm:$0xff]  }
  0x64   :  { %1564 = vmatpush2.bf16.msra.mxu1 %v2964_v35  ;;  %1522 = vmatprep.subr.bf16.mxu0 %v2965_v36  ;;  %v3016_v7 = vld [vmem:[#allocation5 + $0x6e0] ss:$16 sps:$4 sm:$0xff]   ;;  %v3021_v8 = vld [vmem:[#allocation5 + $0x4c4] ss:$16 sps:$4 sm:$0xff]   ;;  %v3581_v35 = vld [vmem:[#allocation2 + $0x14] ss:$28 sps:$4 sm:$0xff]  }
  0x65   :  { %1565 = vmatprep.subr.bf16.mxu1 %v2967_v37  ;;  %v3024_v9 = vld [vmem:[#allocation5 + $0x6c4] ss:$16 sps:$4 sm:$0xff]   ;;  %v3019_v10 = vld [vmem:[#allocation5 + $0x4c0] ss:$16 sps:$4 sm:$0xff]  }
  0x66   :  { %v3022_v11 = vld [vmem:[#allocation5 + $0x6c0] ss:$16 sps:$4 sm:$0xff]   ;;  %v3027_v12 = vld [vmem:[#allocation5 + $0x4a4] ss:$16 sps:$4 sm:$0xff]  }
  0x67   :  { %1523 = vmatpush2.bf16.msra.mxu0 %v2969_v38  ;;  %v3030_v13 = vld [vmem:[#allocation5 + $0x6a4] ss:$16 sps:$4 sm:$0xff]   ;;  %v3025_v15 = vld [vmem:[#allocation5 + $0x4a0] ss:$16 sps:$4 sm:$0xff]  }
  0x68   :  { %1566 = vmatpush2.bf16.msra.mxu1 %v2970_v39  ;;  %1524 = vmatprep.subr.bf16.mxu0 %v2971_v40  ;;  %v3028_v16 = vld [vmem:[#allocation5 + $0x6a0] ss:$16 sps:$4 sm:$0xff]   ;;  %v3033_v17 = vld [vmem:[#allocation5 + $0x484] ss:$16 sps:$4 sm:$0xff]   ;;  %v3067_v39 = vld [vmem:[#allocation5 + $0xec] ss:$16 sps:$4 sm:$0xff]  }
  0x69   :  { %1567 = vmatprep.subr.bf16.mxu1 %v2973_v41  ;;  %v3036_v18 = vld [vmem:[#allocation5 + $0x684] ss:$16 sps:$4 sm:$0xff]   ;;  %v3031_v19 = vld [vmem:[#allocation5 + $0x480] ss:$16 sps:$4 sm:$0xff]  }
  0x6a   :  { %v3034_v20 = vld [vmem:[#allocation5 + $0x680] ss:$16 sps:$4 sm:$0xff]   ;;  %v3039_v21 = vld [vmem:[#allocation5 + $0x464] ss:$16 sps:$4 sm:$0xff]  }
  0x6b   :  { %1525 = vmatpush2.bf16.msra.mxu0 %v2975_v42  ;;  %v3042_v22 = vld [vmem:[#allocation5 + $0x664] ss:$16 sps:$4 sm:$0xff]   ;;  %v3037_v23 = vld [vmem:[#allocation5 + $0x460] ss:$16 sps:$4 sm:$0xff]   ;;  %v3065_v42 = vld [vmem:[#allocation5 + $0xe8] ss:$16 sps:$4 sm:$0xff]  }
  0x6c   :  { %1568 = vmatpush2.bf16.msra.mxu1 %v2976_v43  ;;  %1526 = vmatprep.subr.bf16.mxu0 %v2977_v44  ;;  %v3040_v24 = vld [vmem:[#allocation5 + $0x660] ss:$16 sps:$4 sm:$0xff]   ;;  %v3045_v25 = vld [vmem:[#allocation5 + $0x444] ss:$16 sps:$4 sm:$0xff]   ;;  %v3073_v44 = vld [vmem:[#allocation5 + $0xcc] ss:$16 sps:$4 sm:$0xff]  }
  0x6d   :  { %1569 = vmatprep.subr.bf16.mxu1 %v2979_v45  ;;  %v3048_v26 = vld [vmem:[#allocation5 + $0x644] ss:$16 sps:$4 sm:$0xff]   ;;  %v3043_v27 = vld [vmem:[#allocation5 + $0x440] ss:$16 sps:$4 sm:$0xff]  }
  0x6e   :  { %v3046_v28 = vld [vmem:[#allocation5 + $0x640] ss:$16 sps:$4 sm:$0xff]   ;;  %v3051_v29 = vld [vmem:[#allocation5 + $0x424] ss:$16 sps:$4 sm:$0xff]  }
  0x6f   :  { %1527 = vmatpush2.bf16.msra.mxu0 %v2981_v46  ;;  %v3054_v30 = vld [vmem:[#allocation5 + $0x624] ss:$16 sps:$4 sm:$0xff]   ;;  %v3049_v31 = vld [vmem:[#allocation5 + $0x420] ss:$16 sps:$4 sm:$0xff]   ;;  %v3071_v46 = vld [vmem:[#allocation5 + $0xc8] ss:$16 sps:$4 sm:$0xff]  }
  0x70   :  { %1570 = vmatpush2.bf16.msra.mxu1 %v2982_v47  ;;  %1528 = vmatprep.subr.bf16.mxu0 %v2983_v48  ;;  %v3052_v32 = vld [vmem:[#allocation5 + $0x620] ss:$16 sps:$4 sm:$0xff]   ;;  %v3057_v33 = vld [vmem:[#allocation5 + $0x404] ss:$16 sps:$4 sm:$0xff]   ;;  %v3079_v48 = vld [vmem:[#allocation5 + $0xac] ss:$16 sps:$4 sm:$0xff]  }
  0x71   :  { %1571 = vmatprep.subr.bf16.mxu1 %v2985_v50  ;;  %v3060_v34 = vld [vmem:[#allocation5 + $0x604] ss:$16 sps:$4 sm:$0xff]   ;;  %v3055_v36 = vld [vmem:[#allocation5 + $0x400] ss:$16 sps:$4 sm:$0xff]  }
  0x72   :  { %v3058_v37 = vld [vmem:[#allocation5 + $0x600] ss:$16 sps:$4 sm:$0xff]   ;;  %v3063_v38 = vld [vmem:[#allocation5 + $0x5e4] ss:$16 sps:$4 sm:$0xff]  }
  0x73   :  { %1529 = vmatpush2.bf16.msra.mxu0 %v2987_v52  ;;  %v3061_v40 = vld [vmem:[#allocation5 + $0x5e0] ss:$16 sps:$4 sm:$0xff]   ;;  %v3070_v43 = vld [vmem:[#allocation5 + $0x5c4] ss:$16 sps:$4 sm:$0xff]   ;;  %v3077_v52 = vld [vmem:[#allocation5 + $0xa8] ss:$16 sps:$4 sm:$0xff]  }
  0x74   :  { %1572 = vmatpush2.bf16.msra.mxu1 %v2988_v53  ;;  %1530 = vmatprep.subr.bf16.mxu0 %v2989_v54  ;;  %v3584_v41 = vld [vmem:[#allocation2 + $0x18] ss:$28 sps:$4 sm:$0xff]   ;;  %v3076_v47 = vld [vmem:[#allocation5 + $0x5a4] ss:$16 sps:$4 sm:$0xff]  }
  0x75   :  { %1573 = vmatprep.subr.bf16.mxu1 %v2991_v55  ;;  %v3068_v45 = vld [vmem:[#allocation5 + $0x5c0] ss:$16 sps:$4 sm:$0xff]   ;;  %v3082_v53 = vld [vmem:[#allocation5 + $0x584] ss:$16 sps:$4 sm:$0xff]   ;;  %v3085_v54 = vld [vmem:[#allocation5 + $0x8c] ss:$16 sps:$4 sm:$0xff]  }
  0x76   :  { %v3074_v50 = vld [vmem:[#allocation5 + $0x5a0] ss:$16 sps:$4 sm:$0xff]  }
  0x77   :  { %1531 = vmatpush2.bf16.msra.mxu0 %v2993_v56  ;;  %v3080_v55 = vld [vmem:[#allocation5 + $0x580] ss:$16 sps:$4 sm:$0xff]   ;;  %v3083_v56 = vld [vmem:[#allocation5 + $0x88] ss:$16 sps:$4 sm:$0xff]  }
  0x78   :  { %1574 = vmatpush2.bf16.msra.mxu1 %v2994_v57  ;;  %1532 = vmatprep.subr.bf16.mxu0 %v2995_v58  ;;  %v3088_v57 = vld [vmem:[#allocation5 + $0x564] ss:$16 sps:$4 sm:$0xff]   ;;  %v3091_v58 = vld [vmem:[#allocation5 + $0x6c] ss:$16 sps:$4 sm:$0xff]  }
  0x79   :  { %1575 = vmatprep.subr.bf16.mxu1 %v2997_v59  ;;  %v3086_v59 = vld [vmem:[#allocation5 + $0x560] ss:$16 sps:$4 sm:$0xff]  }
  0x7b   :  { %1533 = vmatpush2.bf16.msra.mxu0 %v2999_v60  ;;  %v3094_v60 = vld [vmem:[#allocation5 + $0x544] ss:$16 sps:$4 sm:$0xff]  }
  0x7c   :  { %1576 = vmatpush2.bf16.msra.mxu1 %v3000_v61  ;;  %1534 = vmatprep.subr.bf16.mxu0 %v3001_v62  ;;  %v3097_v61 = vld [vmem:[#allocation5 + $0x4c] ss:$16 sps:$4 sm:$0xff]   ;;  %v3092_v62 = vld [vmem:[#allocation5 + $0x540] ss:$16 sps:$4 sm:$0xff]  }
  0x7d   :  { %1577 = vmatprep.subr.bf16.mxu1 %v3003_v63  ;;  %v3095_v63 = vld [vmem:[#allocation5 + $0x48] ss:$16 sps:$4 sm:$0xff]  }
  0x7f   :  { %1535 = vmatpush2.bf16.msra.mxu0 %v3005_v0  ;;  %v3100_v0 = vld [vmem:[#allocation5 + $0x524] ss:$16 sps:$4 sm:$0xff]  }
  0x80   :  { %1578 = vmatpush2.bf16.msra.mxu1 %v3006_v1  ;;  %1590 = vmatprep.subr.bf16.mxu0 %v3015_v2  ;;  %v3103_v1 = vld [vmem:[#allocation5 + $0x2c] ss:$16 sps:$4 sm:$0xff]   ;;  %v3098_v2 = vld [vmem:[#allocation5 + $0x520] ss:$16 sps:$4 sm:$0xff]  }
  0x81   :  { %1633 = vmatprep.subr.bf16.mxu1 %v3018_v3  ;;  %v3101_v3 = vld [vmem:[#allocation5 + $0x28] ss:$16 sps:$4 sm:$0xff]  }
  0x82   :  { %1537 = vmatmul.mubr.bf16.vlgmr.msra.gmra.mxu0 %v3577_v4 }
  0x83   :  { %1580 = vmatmul.mubr.bf16.vlgmr.msra.gmra.mxu1 %v3010_v5  ;;  %1591 = vmatpush1.bf16.msra.mxu0 %v3013_v6  ;;  %v3106_v5 = vld [vmem:[#allocation5 + $0x504] ss:$16 sps:$4 sm:$0xff]   ;;  %v3109_v6 = vld [vmem:[#allocation5 + $0xc] ss:$16 sps:$4 sm:$0xff]  }
  0x84   :  { %1634 = vmatpush1.bf16.msra.mxu1 %v3016_v7  ;;  %1592 = vmatprep.subr.bf16.mxu0 %v3021_v8  ;;  %v3104_v7 = vld [vmem:[#allocation5 + $0x500] ss:$16 sps:$4 sm:$0xff]   ;;  %v3107_v8 = vld [vmem:[#allocation5 + $0x8] ss:$16 sps:$4 sm:$0xff]  }
  0x85   :  { %1635 = vmatprep.subr.bf16.mxu1 %v3024_v9  ;;  %1665 = vmatprep.mubr.bf16.mxu1 %v3511_v14  ;;  %v3115_v9 = vld [vmem:[#allocation5 + $0x1ec] ss:$16 sps:$4 sm:$0xff]  }
  0x86   :  { %1622 = vmatprep.mubr.bf16.mxu0 %v3581_v35 }
  0x87   :  { %1593 = vmatpush1.bf16.msra.mxu0 %v3019_v10  ;;  %v3118_v10 = vld [vmem:[#allocation5 + $0x2ec] ss:$16 sps:$4 sm:$0xff]  }
  0x88   :  { %1636 = vmatpush1.bf16.msra.mxu1 %v3022_v11  ;;  %1594 = vmatprep.subr.bf16.mxu0 %v3027_v12  ;;  %v3588_v11 = vld [vmem:[#allocation2 + $0x10] ss:$28 sps:$4 sm:$0xff]  }
  0x89   :  { %1637 = vmatprep.subr.bf16.mxu1 %v3030_v13  ;;  %v3113_v12 = vld [vmem:[#allocation5 + $0x1e8] ss:$16 sps:$4 sm:$0xff]  }
  0x8a   :  { %v3116_v13 = vld [vmem:[#allocation5 + $0x2e8] ss:$16 sps:$4 sm:$0xff]  }
  0x8b   :  { %1595 = vmatpush1.bf16.msra.mxu0 %v3025_v15  ;;  %v3121_v15 = vld [vmem:[#allocation5 + $0x1cc] ss:$16 sps:$4 sm:$0xff]  }
  0x8c   :  { %1638 = vmatpush1.bf16.msra.mxu1 %v3028_v16  ;;  %1596 = vmatprep.subr.bf16.mxu0 %v3033_v17  ;;  %v3124_v16 = vld [vmem:[#allocation5 + $0x2cc] ss:$16 sps:$4 sm:$0xff]   ;;  %v3119_v17 = vld [vmem:[#allocation5 + $0x1c8] ss:$16 sps:$4 sm:$0xff]  }
  0x8d   :  { %1639 = vmatprep.subr.bf16.mxu1 %v3036_v18  ;;  %v3122_v18 = vld [vmem:[#allocation5 + $0x2c8] ss:$16 sps:$4 sm:$0xff]  }
  0x8f   :  { %1597 = vmatpush1.bf16.msra.mxu0 %v3031_v19  ;;  %v3127_v19 = vld [vmem:[#allocation5 + $0x1ac] ss:$16 sps:$4 sm:$0xff]  }
  0x90   :  { %1640 = vmatpush1.bf16.msra.mxu1 %v3034_v20  ;;  %1598 = vmatprep.subr.bf16.mxu0 %v3039_v21  ;;  %v3130_v20 = vld [vmem:[#allocation5 + $0x2ac] ss:$16 sps:$4 sm:$0xff]   ;;  %v3125_v21 = vld [vmem:[#allocation5 + $0x1a8] ss:$16 sps:$4 sm:$0xff]  }
  0x91   :  { %1641 = vmatprep.subr.bf16.mxu1 %v3042_v22  ;;  %v3128_v22 = vld [vmem:[#allocation5 + $0x2a8] ss:$16 sps:$4 sm:$0xff]  }
  0x93   :  { %1599 = vmatpush1.bf16.msra.mxu0 %v3037_v23  ;;  %v3133_v23 = vld [vmem:[#allocation5 + $0x18c] ss:$16 sps:$4 sm:$0xff]  }
  0x94   :  { %1642 = vmatpush1.bf16.msra.mxu1 %v3040_v24  ;;  %1600 = vmatprep.subr.bf16.mxu0 %v3045_v25  ;;  %v3136_v24 = vld [vmem:[#allocation5 + $0x28c] ss:$16 sps:$4 sm:$0xff]   ;;  %v3131_v25 = vld [vmem:[#allocation5 + $0x188] ss:$16 sps:$4 sm:$0xff]  }
  0x95   :  { %1643 = vmatprep.subr.bf16.mxu1 %v3048_v26  ;;  %v3134_v26 = vld [vmem:[#allocation5 + $0x288] ss:$16 sps:$4 sm:$0xff]  }
  0x97   :  { %1601 = vmatpush1.bf16.msra.mxu0 %v3043_v27  ;;  %v3139_v27 = vld [vmem:[#allocation5 + $0x16c] ss:$16 sps:$4 sm:$0xff]  }
  0x98   :  { %1644 = vmatpush1.bf16.msra.mxu1 %v3046_v28  ;;  %1602 = vmatprep.subr.bf16.mxu0 %v3051_v29  ;;  %v3142_v28 = vld [vmem:[#allocation5 + $0x26c] ss:$16 sps:$4 sm:$0xff]   ;;  %v3137_v29 = vld [vmem:[#allocation5 + $0x168] ss:$16 sps:$4 sm:$0xff]  }
  0x99   :  { %1645 = vmatprep.subr.bf16.mxu1 %v3054_v30  ;;  %v3145_v30 = vld [vmem:[#allocation5 + $0x14c] ss:$16 sps:$4 sm:$0xff]  }
  0x9b   :  { %1603 = vmatpush1.bf16.msra.mxu0 %v3049_v31  ;;  %v3148_v31 = vld [vmem:[#allocation5 + $0x24c] ss:$16 sps:$4 sm:$0xff]  }
  0x9c   :  { %1646 = vmatpush1.bf16.msra.mxu1 %v3052_v32  ;;  %1604 = vmatprep.subr.bf16.mxu0 %v3057_v33  ;;  %v3143_v32 = vld [vmem:[#allocation5 + $0x148] ss:$16 sps:$4 sm:$0xff]  }
  0x9d   :  { %1647 = vmatprep.subr.bf16.mxu1 %v3060_v34  ;;  %v3146_v33 = vld [vmem:[#allocation5 + $0x248] ss:$16 sps:$4 sm:$0xff]   ;;  %v3151_v34 = vld [vmem:[#allocation5 + $0x12c] ss:$16 sps:$4 sm:$0xff]  }
  0x9f   :  { %1605 = vmatpush1.bf16.msra.mxu0 %v3055_v36  ;;  %v3154_v36 = vld [vmem:[#allocation5 + $0x22c] ss:$16 sps:$4 sm:$0xff]  }
  0xa0   :  { %1648 = vmatpush1.bf16.msra.mxu1 %v3058_v37  ;;  %1606 = vmatprep.subr.bf16.mxu0 %v3063_v38  ;;  %v3149_v37 = vld [vmem:[#allocation5 + $0x128] ss:$16 sps:$4 sm:$0xff]  }
  0xa1   :  { %1676 = vmatprep.subr.bf16.mxu1 %v3067_v39  ;;  %v3152_v38 = vld [vmem:[#allocation5 + $0x228] ss:$16 sps:$4 sm:$0xff]   ;;  %v3157_v39 = vld [vmem:[#allocation5 + $0x10c] ss:$16 sps:$4 sm:$0xff]  }
  0xa3   :  { %1666 = vmatmul.mubr.bf16.vlgmr.msra.gmra.mxu1 %v3584_v41  ;;  %1607 = vmatpush2.bf16.msra.mxu0 %v3061_v40  ;;  %v3160_v40 = vld [vmem:[#allocation5 + $0x20c] ss:$16 sps:$4 sm:$0xff]  }
  0xa4   :  { %1677 = vmatpush1.bf16.msra.mxu1 %v3065_v42  ;;  %1608 = vmatprep.subr.bf16.mxu0 %v3070_v43  ;;  %v3155_v42 = vld [vmem:[#allocation5 + $0x108] ss:$16 sps:$4 sm:$0xff]  }
  0xa5   :  { %1678 = vmatprep.subr.bf16.mxu1 %v3073_v44  ;;  %1708 = vmatprep.mubr.bf16.mxu1 %v3571_v49  ;;  %v3089_v49 = vld [vmem:[#allocation5 + $0x68] ss:$16 sps:$4 sm:$0xff]   ;;  %v3163_v44 = vld [vmem:[#allocation5 + $0x3ec] ss:$16 sps:$4 sm:$0xff]  }
  0xa6   :  { %v3158_v43 = vld [vmem:[#allocation5 + $0x208] ss:$16 sps:$4 sm:$0xff]  }
  0xa7   :  { %1609 = vmatpush2.bf16.msra.mxu0 %v3068_v45  ;;  %v3166_v45 = vld [vmem:[#allocation5 + $0x4ec] ss:$16 sps:$4 sm:$0xff]  }
  0xa8   :  { %1679 = vmatpush1.bf16.msra.mxu1 %v3071_v46  ;;  %1610 = vmatprep.subr.bf16.mxu0 %v3076_v47  ;;  %v3161_v46 = vld [vmem:[#allocation5 + $0x3e8] ss:$16 sps:$4 sm:$0xff]  }
  0xa9   :  { %1680 = vmatprep.subr.bf16.mxu1 %v3079_v48  ;;  %v3164_v47 = vld [vmem:[#allocation5 + $0x4e8] ss:$16 sps:$4 sm:$0xff]   ;;  %v3169_v48 = vld [vmem:[#allocation5 + $0x3cc] ss:$16 sps:$4 sm:$0xff]  }
  0xab   :  { %1611 = vmatpush2.bf16.msra.mxu0 %v3074_v50  ;;  %v3172_v50 = vld [vmem:[#allocation5 + $0x4cc] ss:$16 sps:$4 sm:$0xff]  }
  0xac   :  { %1681 = vmatpush1.bf16.msra.mxu1 %v3077_v52  ;;  %1612 = vmatprep.subr.bf16.mxu0 %v3082_v53  ;;  %v3167_v52 = vld [vmem:[#allocation5 + $0x3c8] ss:$16 sps:$4 sm:$0xff]  }
  0xad   :  { %1682 = vmatprep.subr.bf16.mxu1 %v3085_v54  ;;  %v3170_v53 = vld [vmem:[#allocation5 + $0x4c8] ss:$16 sps:$4 sm:$0xff]   ;;  %v3175_v54 = vld [vmem:[#allocation5 + $0x3ac] ss:$16 sps:$4 sm:$0xff]  }
  0xaf   :  { %1613 = vmatpush2.bf16.msra.mxu0 %v3080_v55  ;;  %v3178_v55 = vld [vmem:[#allocation5 + $0x4ac] ss:$16 sps:$4 sm:$0xff]  }
  0xb0   :  { %1683 = vmatpush1.bf16.msra.mxu1 %v3083_v56  ;;  %1614 = vmatprep.subr.bf16.mxu0 %v3088_v57  ;;  %v3173_v56 = vld [vmem:[#allocation5 + $0x3a8] ss:$16 sps:$4 sm:$0xff]  }
  0xb1   :  { %1684 = vmatprep.subr.bf16.mxu1 %v3091_v58  ;;  %v3176_v57 = vld [vmem:[#allocation5 + $0x4a8] ss:$16 sps:$4 sm:$0xff]   ;;  %v3181_v58 = vld [vmem:[#allocation5 + $0x38c] ss:$16 sps:$4 sm:$0xff]  }
  0xb3   :  { %1615 = vmatpush2.bf16.msra.mxu0 %v3086_v59  ;;  %v3184_v59 = vld [vmem:[#allocation5 + $0x48c] ss:$16 sps:$4 sm:$0xff]  }
  0xb4   :  { %1685 = vmatpush1.bf16.msra.mxu1 %v3089_v49  ;;  %1616 = vmatprep.subr.bf16.mxu0 %v3094_v60  ;;  %v3179_v49 = vld [vmem:[#allocation5 + $0x388] ss:$16 sps:$4 sm:$0xff]   ;;  %v3187_v60 = vld [vmem:[#allocation5 + $0x36c] ss:$16 sps:$4 sm:$0xff]  }
  0xb5   :  { %1686 = vmatprep.subr.bf16.mxu1 %v3097_v61  ;;  %v3190_v61 = vld [vmem:[#allocation5 + $0x46c] ss:$16 sps:$4 sm:$0xff]  }
  0xb7   :  { %1617 = vmatpush2.bf16.msra.mxu0 %v3092_v62  ;;  %v3185_v62 = vld [vmem:[#allocation5 + $0x368] ss:$16 sps:$4 sm:$0xff]  }
  0xb8   :  { %1687 = vmatpush1.bf16.msra.mxu1 %v3095_v63  ;;  %1618 = vmatprep.subr.bf16.mxu0 %v3100_v0  ;;  %v3188_v63 = vld [vmem:[#allocation5 + $0x468] ss:$16 sps:$4 sm:$0xff]   ;;  %v3193_v0 = vld [vmem:[#allocation5 + $0x34c] ss:$16 sps:$4 sm:$0xff]  }
  0xb9   :  { %1688 = vmatprep.subr.bf16.mxu1 %v3103_v1  ;;  %v3196_v1 = vld [vmem:[#allocation5 + $0x44c] ss:$16 sps:$4 sm:$0xff]  }
  0xbb   :  { %1619 = vmatpush2.bf16.msra.mxu0 %v3098_v2  ;;  %v3194_v2 = vld [vmem:[#allocation5 + $0x448] ss:$16 sps:$4 sm:$0xff]  }
  0xbc   :  { %1689 = vmatpush1.bf16.msra.mxu1 %v3101_v3  ;;  %1620 = vmatprep.subr.bf16.mxu0 %v3106_v5  ;;  %v3199_v3 = vld [vmem:[#allocation5 + $0x32c] ss:$16 sps:$4 sm:$0xff]  }
  0xbd   :  { %1690 = vmatprep.subr.bf16.mxu1 %v3109_v6  ;;  %v3202_v5 = vld [vmem:[#allocation5 + $0x42c] ss:$16 sps:$4 sm:$0xff]   ;;  %v3197_v6 = vld [vmem:[#allocation5 + $0x328] ss:$16 sps:$4 sm:$0xff]  }
  0xbf   :  { %1621 = vmatpush2.bf16.msra.mxu0 %v3104_v7  ;;  %v3200_v7 = vld [vmem:[#allocation5 + $0x428] ss:$16 sps:$4 sm:$0xff]  }
  0xc0   :  { %1691 = vmatpush1.bf16.msra.mxu1 %v3107_v8  ;;  %1719 = vmatprep.subr.bf16.mxu0 %v3118_v10  ;;  %v3205_v8 = vld [vmem:[#allocation5 + $0x30c] ss:$16 sps:$4 sm:$0xff]   ;;  %v3203_v10 = vld [vmem:[#allocation5 + $0x308] ss:$16 sps:$4 sm:$0xff]  }
  0xc1   :  { %1692 = vmatprep.subr.bf16.mxu1 %v3115_v9  ;;  %v3208_v9 = vld [vmem:[#allocation5 + $0x40c] ss:$16 sps:$4 sm:$0xff]  }
  0xc2   :  { %1623 = vmatmul.mubr.bf16.vlgmr.msra.gmra.mxu0 %v3588_v11 }
  0xc3   :  { %1720 = vmatpush1.bf16.msra.mxu0 %v3116_v13  ;;  %1751 = vmatprep.mubr.bf16.mxu0 %v3573_v51  ;;  %v3140_v51 = vld [vmem:[#allocation5 + $0x268] ss:$16 sps:$4 sm:$0xff]   ;;  %v3211_v13 = vld [vmem:[#allocation5 + $0x5ec] ss:$16 sps:$4 sm:$0xff]  }
  0xc4   :  { %1693 = vmatpush2.bf16.msra.mxu1 %v3113_v12  ;;  %1721 = vmatprep.subr.bf16.mxu0 %v3124_v16  ;;  %v3206_v12 = vld [vmem:[#allocation5 + $0x408] ss:$16 sps:$4 sm:$0xff]  }
  0xc5   :  { %1694 = vmatprep.subr.bf16.mxu1 %v3121_v15  ;;  %v3214_v15 = vld [vmem:[#allocation5 + $0x6ec] ss:$16 sps:$4 sm:$0xff]   ;;  %v3209_v16 = vld [vmem:[#allocation5 + $0x5e8] ss:$16 sps:$4 sm:$0xff]  }
  0xc7   :  { %1722 = vmatpush1.bf16.msra.mxu0 %v3122_v18  ;;  %v3217_v18 = vld [vmem:[#allocation5 + $0x5cc] ss:$16 sps:$4 sm:$0xff]  }
  0xc8   :  { %1695 = vmatpush2.bf16.msra.mxu1 %v3119_v17  ;;  %1723 = vmatprep.subr.bf16.mxu0 %v3130_v20  ;;  %v3212_v17 = vld [vmem:[#allocation5 + $0x6e8] ss:$16 sps:$4 sm:$0xff]   ;;  %v3369_v20 = vld [vmem:[#allocation2 + $0x8] ss:$28 sps:$4 sm:$0xff]  }
  0xc9   :  { %1696 = vmatprep.subr.bf16.mxu1 %v3127_v19  ;;  %v3220_v19 = vld [vmem:[#allocation5 + $0x6cc] ss:$16 sps:$4 sm:$0xff]  }
  0xcb   :  { %1724 = vmatpush1.bf16.msra.mxu0 %v3128_v22  ;;  %v3218_v22 = vld [vmem:[#allocation5 + $0x6c8] ss:$16 sps:$4 sm:$0xff]  }
  0xcc   :  { %1697 = vmatpush2.bf16.msra.mxu1 %v3125_v21  ;;  %1725 = vmatprep.subr.bf16.mxu0 %v3136_v24  ;;  %v3215_v21 = vld [vmem:[#allocation5 + $0x5c8] ss:$16 sps:$4 sm:$0xff]   ;;  %v3226_v24 = vld [vmem:[#allocation5 + $0x6ac] ss:$16 sps:$4 sm:$0xff]  }
  0xcd   :  { %1698 = vmatprep.subr.bf16.mxu1 %v3133_v23  ;;  %v3223_v23 = vld [vmem:[#allocation5 + $0x5ac] ss:$16 sps:$4 sm:$0xff]  }
  0xcf   :  { %1726 = vmatpush1.bf16.msra.mxu0 %v3134_v26  ;;  %v3224_v26 = vld [vmem:[#allocation5 + $0x6a8] ss:$16 sps:$4 sm:$0xff]  }
  0xd0   :  { %1699 = vmatpush2.bf16.msra.mxu1 %v3131_v25  ;;  %1727 = vmatprep.subr.bf16.mxu0 %v3142_v28  ;;  %v3221_v25 = vld [vmem:[#allocation5 + $0x5a8] ss:$16 sps:$4 sm:$0xff]   ;;  %v3232_v28 = vld [vmem:[#allocation5 + $0x68c] ss:$16 sps:$4 sm:$0xff]  }
  0xd1   :  { %1700 = vmatprep.subr.bf16.mxu1 %v3139_v27  ;;  %v3229_v27 = vld [vmem:[#allocation5 + $0x58c] ss:$16 sps:$4 sm:$0xff]  }
  0xd3   :  { %1728 = vmatpush1.bf16.msra.mxu0 %v3140_v51  ;;  %v3230_v51 = vld [vmem:[#allocation5 + $0x688] ss:$16 sps:$4 sm:$0xff]  }
  0xd4   :  { %1701 = vmatpush2.bf16.msra.mxu1 %v3137_v29  ;;  %1729 = vmatprep.subr.bf16.mxu0 %v3148_v31  ;;  %v3227_v29 = vld [vmem:[#allocation5 + $0x588] ss:$16 sps:$4 sm:$0xff]   ;;  %v3238_v31 = vld [vmem:[#allocation5 + $0x66c] ss:$16 sps:$4 sm:$0xff]  }
  0xd5   :  { %1702 = vmatprep.subr.bf16.mxu1 %v3145_v30  ;;  %v3235_v30 = vld [vmem:[#allocation5 + $0x56c] ss:$16 sps:$4 sm:$0xff]  }
  0xd7   :  { %1730 = vmatpush1.bf16.msra.mxu0 %v3146_v33  ;;  %v3241_v33 = vld [vmem:[#allocation5 + $0x54c] ss:$16 sps:$4 sm:$0xff]  }
  0xd8   :  { %1703 = vmatpush2.bf16.msra.mxu1 %v3143_v32  ;;  %1731 = vmatprep.subr.bf16.mxu0 %v3154_v36  ;;  %v3233_v32 = vld [vmem:[#allocation5 + $0x568] ss:$16 sps:$4 sm:$0xff]  }
  0xd9   :  { %1704 = vmatprep.subr.bf16.mxu1 %v3151_v34  ;;  %v3244_v34 = vld [vmem:[#allocation5 + $0x64c] ss:$16 sps:$4 sm:$0xff]   ;;  %v3239_v36 = vld [vmem:[#allocation5 + $0x548] ss:$16 sps:$4 sm:$0xff]  }
  0xdb   :  { %1732 = vmatpush1.bf16.msra.mxu0 %v3152_v38  ;;  %v3247_v38 = vld [vmem:[#allocation5 + $0x52c] ss:$16 sps:$4 sm:$0xff]  }
  0xdc   :  { %1705 = vmatpush2.bf16.msra.mxu1 %v3149_v37  ;;  %1733 = vmatprep.subr.bf16.mxu0 %v3160_v40  ;;  %v3242_v37 = vld [vmem:[#allocation5 + $0x648] ss:$16 sps:$4 sm:$0xff]  }
  0xdd   :  { %1706 = vmatprep.subr.bf16.mxu1 %v3157_v39  ;;  %v3250_v39 = vld [vmem:[#allocation5 + $0x62c] ss:$16 sps:$4 sm:$0xff]   ;;  %v3245_v40 = vld [vmem:[#allocation5 + $0x528] ss:$16 sps:$4 sm:$0xff]  }
  0xdf   :  { %1734 = vmatpush1.bf16.msra.mxu0 %v3158_v43  ;;  %v3253_v43 = vld [vmem:[#allocation5 + $0x50c] ss:$16 sps:$4 sm:$0xff]  }
  0xe0   :  { %1707 = vmatpush2.bf16.msra.mxu1 %v3155_v42  ;;  %1735 = vmatprep.subr.bf16.mxu0 %v3163_v44  ;;  %v3248_v42 = vld [vmem:[#allocation5 + $0x628] ss:$16 sps:$4 sm:$0xff]   ;;  %v3256_v44 = vld [vmem:[#allocation5 + $0x60c] ss:$16 sps:$4 sm:$0xff]  }
  0xe1   :  { %1762 = vmatprep.subr.bf16.mxu1 %v3166_v45  ;;  %v3251_v45 = vld [vmem:[#allocation5 + $0x508] ss:$16 sps:$4 sm:$0xff]  }
  0xe3   :  { %1709 = vmatmul.mubr.bf16.vlgmr.msra.gmra.mxu1 %v3577_v4  ;;  %1736 = vmatpush2.bf16.msra.mxu0 %v3161_v46  ;;  %v3182_v4 = vld [vmem:[#allocation5 + $0x488] ss:$16 sps:$4 sm:$0xff]  }
  0xe4   :  { %1763 = vmatpush1.bf16.msra.mxu1 %v3164_v47  ;;  %1737 = vmatprep.subr.bf16.mxu0 %v3169_v48  ;;  %v3254_v46 = vld [vmem:[#allocation5 + $0x608] ss:$16 sps:$4 sm:$0xff]   ;;  %v3257_v48 = vld [vmem:[#allocation8 + $0x70] ss:$8 sps:$4 sm:$0xff]  }
  0xe5   :  { %1764 = vmatprep.subr.bf16.mxu1 %v3172_v50  ;;  %1794 = vmatprep.mubr.bf16.mxu1 %v3581_v35  ;;  %v3191_v35 = vld [vmem:[#allocation5 + $0x348] ss:$16 sps:$4 sm:$0xff]  }
  0xe6   :  { %v3259_v47 = vld [vmem:[#allocation8 + $0x74] ss:$8 sps:$4 sm:$0xff]   ;;  %v3262_v50 = vld [vmem:[#allocation8 + $0x64] ss:$8 sps:$4 sm:$0xff]  }
  0xe7   :  { %1738 = vmatpush2.bf16.msra.mxu0 %v3167_v52  ;;  %v3260_v52 = vld [vmem:[#allocation8 + $0x60] ss:$8 sps:$4 sm:$0xff]  }
  0xe8   :  { %1765 = vmatpush1.bf16.msra.mxu1 %v3170_v53  ;;  %1739 = vmatprep.subr.bf16.mxu0 %v3175_v54  ;;  %v3265_v53 = vld [vmem:[#allocation8 + $0x54] ss:$8 sps:$4 sm:$0xff]   ;;  %v3263_v54 = vld [vmem:[#allocation8 + $0x50] ss:$8 sps:$4 sm:$0xff]  }
  0xe9   :  { %1766 = vmatprep.subr.bf16.mxu1 %v3178_v55  ;;  %v3268_v55 = vld [vmem:[#allocation8 + $0x44] ss:$8 sps:$4 sm:$0xff]  }
  0xeb   :  { %1740 = vmatpush2.bf16.msra.mxu0 %v3173_v56  ;;  %v3305_v56 = vld [vmem:[#allocation8 + $0x170] ss:$8 sps:$4 sm:$0xff]  }
  0xec   :  { %1767 = vmatpush1.bf16.msra.mxu1 %v3176_v57  ;;  %1741 = vmatprep.subr.bf16.mxu0 %v3181_v58  ;;  %v3307_v57 = vld [vmem:[#allocation8 + $0x174] ss:$8 sps:$4 sm:$0xff]   ;;  %v3310_v58 = vld [vmem:[#allocation8 + $0x164] ss:$8 sps:$4 sm:$0xff]  }
  0xed   :  { %1768 = vmatprep.subr.bf16.mxu1 %v3184_v59  ;;  %v3266_v59 = vld [vmem:[#allocation8 + $0x40] ss:$8 sps:$4 sm:$0xff]  }
  0xef   :  { %1742 = vmatpush2.bf16.msra.mxu0 %v3179_v49  ;;  %v3271_v49 = vld [vmem:[#allocation8 + $0x34] ss:$8 sps:$4 sm:$0xff]  }
  0xf0   :  { %1769 = vmatpush1.bf16.msra.mxu1 %v3182_v4  ;;  %1743 = vmatprep.subr.bf16.mxu0 %v3187_v60  ;;  %v3269_v4 = vld [vmem:[#allocation8 + $0x30] ss:$8 sps:$4 sm:$0xff]   ;;  %v3274_v60 = vld [vmem:[#allocation8 + $0x24] ss:$8 sps:$4 sm:$0xff]  }
  0xf1   :  { %1770 = vmatprep.subr.bf16.mxu1 %v3190_v61  ;;  %v3311_v61 = vld [vmem:[#allocation8 + $0x150] ss:$8 sps:$4 sm:$0xff]  }
  0xf3   :  { %1744 = vmatpush2.bf16.msra.mxu0 %v3185_v62  ;;  %v3316_v62 = vld [vmem:[#allocation8 + $0x144] ss:$8 sps:$4 sm:$0xff]  }
  0xf4   :  { %1771 = vmatpush1.bf16.msra.mxu1 %v3188_v63  ;;  %1745 = vmatprep.subr.bf16.mxu0 %v3193_v0  ;;  %v3272_v63 = vld [vmem:[#allocation8 + $0x20] ss:$8 sps:$4 sm:$0xff]   ;;  %v3277_v0 = vld [vmem:[#allocation8 + $0x14] ss:$8 sps:$4 sm:$0xff]  }
  0xf5   :  { %1772 = vmatprep.subr.bf16.mxu1 %v3196_v1  ;;  %v3314_v1 = vld [vmem:[#allocation8 + $0x140] ss:$8 sps:$4 sm:$0xff]  }
  0xf7   :  { %1746 = vmatpush2.bf16.msra.mxu0 %v3191_v35  ;;  %v3275_v35 = vld [vmem:[#allocation8 + $0x10] ss:$8 sps:$4 sm:$0xff]  }
  0xf8   :  { %1773 = vmatpush1.bf16.msra.mxu1 %v3194_v2  ;;  %1747 = vmatprep.subr.bf16.mxu0 %v3199_v3  ;;  %v3280_v2 = vld [vmem:[#allocation8 + $0x4] ss:$8 sps:$4 sm:$0xff]   ;;  %v3278_v3 = vld [vmem:[#allocation8] ss:$8 sps:$4 sm:$0xff]  }
  0xf9   :  { %1774 = vmatprep.subr.bf16.mxu1 %v3202_v5  ;;  %v3283_v5 = vld [vmem:[#allocation8 + $0xf4] ss:$8 sps:$4 sm:$0xff]  }
  0xfb   :  { %1748 = vmatpush2.bf16.msra.mxu0 %v3197_v6  ;;  %v3281_v6 = vld [vmem:[#allocation8 + $0xf0] ss:$8 sps:$4 sm:$0xff]  }
  0xfc   :  { %1775 = vmatpush1.bf16.msra.mxu1 %v3200_v7  ;;  %1749 = vmatprep.subr.bf16.mxu0 %v3205_v8  ;;  %v3286_v7 = vld [vmem:[#allocation8 + $0xe4] ss:$8 sps:$4 sm:$0xff]   ;;  %v3319_v8 = vld [vmem:[#allocation8 + $0x134] ss:$8 sps:$4 sm:$0xff]  }
  0xfd   :  { %1776 = vmatprep.subr.bf16.mxu1 %v3208_v9  ;;  %v3317_v9 = vld [vmem:[#allocation8 + $0x130] ss:$8 sps:$4 sm:$0xff]  }
  0xff   :  { %1750 = vmatpush2.bf16.msra.mxu0 %v3203_v10  ;;  %v3284_v10 = vld [vmem:[#allocation8 + $0xe0] ss:$8 sps:$4 sm:$0xff]  }
 0x100   :  { %1777 = vmatpush1.bf16.msra.mxu1 %v3206_v12  ;;  %1805 = vmatprep.subr.bf16.mxu0 %v3214_v15  ;;  %v3289_v12 = vld [vmem:[#allocation8 + $0xd4] ss:$8 sps:$4 sm:$0xff]   ;;  %v3320_v15 = vld [vmem:[#allocation8 + $0x120] ss:$8 sps:$4 sm:$0xff]  }
 0x101   :  { %1778 = vmatprep.subr.bf16.mxu1 %v3211_v13  ;;  %v3322_v13 = vld [vmem:[#allocation8 + $0x124] ss:$8 sps:$4 sm:$0xff]  }
 0x102   :  { %1752 = vmatmul.mubr.bf16.vlgmr.msra.gmra.mxu0 %v3369_v20  ;;  %v3328_v20 = vld [vmem:[#allocation8 + $0x104] ss:$8 sps:$4 sm:$0xff]  }
 0x103   :  { %1806 = vmatpush1.bf16.msra.mxu0 %v3212_v17  ;;  %1837 = vmatprep.mubr.bf16.mxu0 %v3511_v14  ;;  %v3236_v14 = vld [vmem:[#allocation5 + $0x668] ss:$16 sps:$4 sm:$0xff]  }
 0x104   :  { %1779 = vmatpush2.bf16.msra.mxu1 %v3209_v16  ;;  %1807 = vmatprep.subr.bf16.mxu0 %v3220_v19  ;;  %v3287_v16 = vld [vmem:[#allocation8 + $0xd0] ss:$8 sps:$4 sm:$0xff]   ;;  %v3292_v17 = vld [vmem:[#allocation8 + $0xc4] ss:$8 sps:$4 sm:$0xff]  }
 0x105   :  { %1780 = vmatprep.subr.bf16.mxu1 %v3217_v18  ;;  %v3325_v18 = vld [vmem:[#allocation8 + $0x114] ss:$8 sps:$4 sm:$0xff]   ;;  %v3323_v19 = vld [vmem:[#allocation8 + $0x110] ss:$8 sps:$4 sm:$0xff]  }
 0x107   :  { %1808 = vmatpush1.bf16.msra.mxu0 %v3218_v22  ;;  %v3326_v22 = vld [vmem:[#allocation8 + $0x100] ss:$8 sps:$4 sm:$0xff]  }
 0x108   :  { %1781 = vmatpush2.bf16.msra.mxu1 %v3215_v21  ;;  %1809 = vmatprep.subr.bf16.mxu0 %v3226_v24  ;;  %v3290_v21 = vld [vmem:[#allocation8 + $0xc0] ss:$8 sps:$4 sm:$0xff]   ;;  %v3331_v24 = vld [vmem:[#allocation8 + $0x1f4] ss:$8 sps:$4 sm:$0xff]  }
 0x109   :  { %1782 = vmatprep.subr.bf16.mxu1 %v3223_v23  ;;  %v3295_v23 = vld [vmem:[#allocation8 + $0xb4] ss:$8 sps:$4 sm:$0xff]  }
 0x10b   :  { %1810 = vmatpush1.bf16.msra.mxu0 %v3224_v26  ;;  %v3329_v26 = vld [vmem:[#allocation8 + $0x1f0] ss:$8 sps:$4 sm:$0xff]  }
 0x10c   :  { %1783 = vmatpush2.bf16.msra.mxu1 %v3221_v25  ;;  %1811 = vmatprep.subr.bf16.mxu0 %v3232_v28  ;;  %v3293_v25 = vld [vmem:[#allocation8 + $0xb0] ss:$8 sps:$4 sm:$0xff]   ;;  %v3334_v28 = vld [vmem:[#allocation8 + $0x1e4] ss:$8 sps:$4 sm:$0xff]  }
 0x10d   :  { %1784 = vmatprep.subr.bf16.mxu1 %v3229_v27  ;;  %v3298_v27 = vld [vmem:[#allocation8 + $0xa4] ss:$8 sps:$4 sm:$0xff]  }
 0x10f   :  { %1812 = vmatpush1.bf16.msra.mxu0 %v3230_v51  ;;  %v3332_v51 = vld [vmem:[#allocation8 + $0x1e0] ss:$8 sps:$4 sm:$0xff]  }
 0x110   :  { %1785 = vmatpush2.bf16.msra.mxu1 %v3227_v29  ;;  %1813 = vmatprep.subr.bf16.mxu0 %v3238_v31  ;;  %v3296_v29 = vld [vmem:[#allocation8 + $0xa0] ss:$8 sps:$4 sm:$0xff]   ;;  %v3337_v31 = vld [vmem:[#allocation8 + $0x1d4] ss:$8 sps:$4 sm:$0xff]  }
 0x111   :  { %1786 = vmatprep.subr.bf16.mxu1 %v3235_v30  ;;  %v3301_v30 = vld [vmem:[#allocation8 + $0x94] ss:$8 sps:$4 sm:$0xff]  }
 0x113   :  { %1814 = vmatpush1.bf16.msra.mxu0 %v3236_v14  ;;  %v3335_v14 = vld [vmem:[#allocation8 + $0x1d0] ss:$8 sps:$4 sm:$0xff]  }
 0x114   :  { %1787 = vmatpush2.bf16.msra.mxu1 %v3233_v32  ;;  %1815 = vmatprep.subr.bf16.mxu0 %v3244_v34  ;;  %v3299_v32 = vld [vmem:[#allocation8 + $0x90] ss:$8 sps:$4 sm:$0xff]   ;;  %v3340_v34 = vld [vmem:[#allocation8 + $0x1c4] ss:$8 sps:$4 sm:$0xff]  }
 0x115   :  { %1788 = vmatprep.subr.bf16.mxu1 %v3241_v33  ;;  %v3304_v33 = vld [vmem:[#allocation8 + $0x84] ss:$8 sps:$4 sm:$0xff]  }
 0x117   :  { %1816 = vmatpush1.bf16.msra.mxu0 %v3242_v37  ;;  %v3338_v37 = vld [vmem:[#allocation8 + $0x1c0] ss:$8 sps:$4 sm:$0xff]  }
 0x118   :  { %1789 = vmatpush2.bf16.msra.mxu1 %v3239_v36  ;;  %1817 = vmatprep.subr.bf16.mxu0 %v3250_v39  ;;  %v3302_v36 = vld [vmem:[#allocation8 + $0x80] ss:$8 sps:$4 sm:$0xff]   ;;  %v3341_v39 = vld [vmem:[#allocation8 + $0x1b0] ss:$8 sps:$4 sm:$0xff]  }
 0x119   :  { %1790 = vmatprep.subr.bf16.mxu1 %v3247_v38  ;;  %v3343_v38 = vld [vmem:[#allocation8 + $0x1b4] ss:$8 sps:$4 sm:$0xff]  }
 0x11b   :  { %1818 = vmatpush1.bf16.msra.mxu0 %v3248_v42  ;;  %v3344_v42 = vld [vmem:[#allocation8 + $0x1a0] ss:$8 sps:$4 sm:$0xff]  }
 0x11c   :  { %1791 = vmatpush2.bf16.msra.mxu1 %v3245_v40  ;;  %1819 = vmatprep.subr.bf16.mxu0 %v3256_v44  ;;  %v3346_v40 = vld [vmem:[#allocation8 + $0x1a4] ss:$8 sps:$4 sm:$0xff]   ;;  %v3347_v44 = vld [vmem:[#allocation8 + $0x190] ss:$8 sps:$4 sm:$0xff]  }
 0x11d   :  { %1792 = vmatprep.subr.bf16.mxu1 %v3253_v43  ;;  %v3349_v43 = vld [vmem:[#allocation8 + $0x194] ss:$8 sps:$4 sm:$0xff]  }
 0x11f   :  { %1820 = vmatpush1.bf16.msra.mxu0 %v3254_v46  ;;  %v3350_v46 = vld [vmem:[#allocation8 + $0x180] ss:$8 sps:$4 sm:$0xff]  }
 0x120   :  { %1793 = vmatpush2.bf16.msra.mxu1 %v3251_v45  ;;  %2256 = vmatprep.subr.bf16.mxu0 %v3259_v47  ;;  %v3352_v45 = vld [vmem:[#allocation8 + $0x184] ss:$8 sps:$4 sm:$0xff]   ;;  %v328_v47 = vlaneseq }
 0x121   :  { %2299 = vmatprep.subr.bf16.mxu1 %v3307_v57 }
 0x122   :  { %1838 = vmatmul.mubr.bf16.vlgmr.msra.gmra.mxu0 %v3584_v41  ;;  %v3313_v41 = vld [vmem:[#allocation8 + $0x154] ss:$8 sps:$4 sm:$0xff]  }
 0x123   :  { %1795 = vmatmul.mubr.bf16.vlgmr.msra.gmra.mxu1 %v3588_v11  ;;  %2257 = vmatpush1.bf16.msra.mxu0 %v3257_v48  ;;  %v3308_v11 = vld [vmem:[#allocation8 + $0x160] ss:$8 sps:$4 sm:$0xff]  }
 0x124   :  { %2258 = vmatprep.subr.bf16.mxu0 %v3262_v50  ;;  %2300 = vmatpush1.bf16.msra.mxu1 %v3305_v56  ;;  %v3597_v50 = vshrl.u32 %v328_v47, 7  ;;  %v3359_v47 = vld [vmem:[#allocation10 + $0x60] sm:$0xff]  }
 0x125   :  { %2301 = vmatprep.subr.bf16.mxu1 %v3310_v58  ;;  %v326_v58 = vld [vmem:[#allocation7] sm:$0xf] }
 0x127   :  { %2259 = vmatpush1.bf16.msra.mxu0 %v3260_v52 }
 0x128   :  { %2260 = vmatprep.subr.bf16.mxu0 %v3265_v53  ;;  %2302 = vmatpush1.bf16.msra.mxu1 %v3308_v11 }
 0x129   :  { %2303 = vmatprep.subr.bf16.mxu1 %v3313_v41 }
 0x12b   :  { %2261 = vmatpush1.bf16.msra.mxu0 %v3263_v54  ;;  %v334_v54 = vsub.s32 1, %v3597_v50 }
 0x12c   :  { %2262 = vmatprep.subr.bf16.mxu0 %v3268_v55  ;;  %2304 = vmatpush1.bf16.msra.mxu1 %v3311_v61  ;;  %v330_v55 = vsub.s32 0, %v3597_v50 }
 0x12d   :  { %2305 = vmatprep.subr.bf16.mxu1 %v3316_v62 }
 0x12f   :  { %2263 = vmatpush1.bf16.msra.mxu0 %v3266_v59  ;;  %v335_v59 = vrot.slane %v326_v58, %v334_v54 }
 0x130   :  { %2264 = vmatprep.subr.bf16.mxu0 %v3271_v49  ;;  %2306 = vmatpush1.bf16.msra.mxu1 %v3314_v1  ;;  %v331_v49 = vrot.slane %v326_v58, %v330_v55 }
 0x131   :  { %2307 = vmatprep.subr.bf16.mxu1 %v3319_v8 }
 0x133   :  { %2265 = vmatpush1.bf16.msra.mxu0 %v3269_v4 }
 0x134   :  { %2266 = vmatprep.subr.bf16.mxu0 %v3274_v60  ;;  %2308 = vmatpush1.bf16.msra.mxu1 %v3317_v9 }
 0x135   :  { %2309 = vmatprep.subr.bf16.mxu1 %v3322_v13 }
 0x137   :  { %2267 = vmatpush1.bf16.msra.mxu0 %v3272_v63 }
 0x138   :  { %2268 = vmatprep.subr.bf16.mxu0 %v3277_v0  ;;  %2310 = vmatpush1.bf16.msra.mxu1 %v3320_v15 }
 0x139   :  { %2311 = vmatprep.subr.bf16.mxu1 %v3325_v18 }
 0x13b   :  { %2269 = vmatpush1.bf16.msra.mxu0 %v3275_v35 }
 0x13c   :  { %2270 = vmatprep.subr.bf16.mxu0 %v3280_v2  ;;  %2312 = vmatpush1.bf16.msra.mxu1 %v3323_v19 }
 0x13d   :  { %2313 = vmatprep.subr.bf16.mxu1 %v3328_v20 }
 0x13f   :  { %2271 = vmatpush1.bf16.msra.mxu0 %v3278_v3 }
 0x140   :  { %2272 = vmatprep.subr.bf16.mxu0 %v3283_v5  ;;  %2314 = vmatpush1.bf16.msra.mxu1 %v3326_v22 }
 0x141   :  { %2315 = vmatprep.subr.bf16.mxu1 %v3331_v24 }
 0x142   :  { %v1538_v52 = vpop.f32.mrf.mxu0 }
 0x143   :  { %2273 = vmatpush2.bf16.msra.mxu0 %v3281_v6  ;;  %v1581_v48 = vpop.f32.mrf.mxu1  ;;  %v1539_v61 = vadd.f32 %v1538_v52, %v331_v49 }
 0x144   :  { %2274 = vmatprep.subr.bf16.mxu0 %v3286_v7  ;;  %2316 = vmatpush2.bf16.msra.mxu1 %v3329_v26  ;;  %v1540_v56 = vpop.f32.mrf.mxu0 }
 0x145   :  { %2317 = vmatprep.subr.bf16.mxu1 %v3334_v28  ;;  %v1583_v53 = vpop.f32.mrf.mxu1  ;;  %v1541_v60 = vadd.f32 %v1540_v56, %v335_v59  ;;  %v1582_v3 = vadd.f32 %v1581_v48, %v1539_v61  ;;  %v3361_v61 = vld [vmem:[#allocation10 + $0x58] sm:$0xff]  }
 0x146   :  { %v1542_v11 = vpop.f32.mrf.mxu0 }
 0x147   :  { %2275 = vmatpush2.bf16.msra.mxu0 %v3284_v10  ;;  %v1585_v57 = vpop.f32.mrf.mxu1  ;;  %v1543_v63 = vadd.f32 %v1542_v11, %v331_v49  ;;  %v1584_v35 = vadd.f32 %v1583_v53, %v1541_v60 }
 0x148   :  { %2276 = vmatprep.subr.bf16.mxu0 %v3289_v12  ;;  %2318 = vmatpush2.bf16.msra.mxu1 %v3332_v51  ;;  %v1544_v62 = vpop.f32.mrf.mxu0 }
 0x149   :  { %2319 = vmatprep.subr.bf16.mxu1 %v3337_v31  ;;  %v1587_v41 = vpop.f32.mrf.mxu1  ;;  %v1545_v2 = vadd.f32 %v1544_v62, %v335_v59  ;;  %v1586_v6 = vadd.f32 %v1585_v57, %v1543_v63  ;;  %v342_v31 = vsub.s32 3, %v3597_v50 }
 0x14b   :  { %2277 = vmatpush2.bf16.msra.mxu0 %v3287_v16  ;;  %v1588_v12 = vadd.f32 %v1587_v41, %v1545_v2  ;;  %v3360_v41 = vld [vmem:[#allocation10 + $0x20] sm:$0xff]  }
 0x14c   :  { %2278 = vmatprep.subr.bf16.mxu0 %v3292_v17  ;;  %2320 = vmatpush2.bf16.msra.mxu1 %v3335_v14  ;;  %v3354_v14 = vld [vmem:[#allocation10 + $0x38] sm:$0xff]  }
 0x14d   :  { %2321 = vmatprep.subr.bf16.mxu1 %v3340_v34  ;;  %v338_v34 = vsub.s32 2, %v3597_v50 }
 0x14f   :  { %2279 = vmatpush2.bf16.msra.mxu0 %v3290_v21 }
 0x150   :  { %2280 = vmatprep.subr.bf16.mxu0 %v3295_v23  ;;  %2322 = vmatpush2.bf16.msra.mxu1 %v3338_v37 }
 0x151   :  { %2323 = vmatprep.subr.bf16.mxu1 %v3343_v38  ;;  %v3356_v38 = vld [vmem:[#allocation10 + $0x30] sm:$0xff]  }
 0x153   :  { %2281 = vmatpush2.bf16.msra.mxu0 %v3293_v25 }
 0x154   :  { %2282 = vmatprep.subr.bf16.mxu0 %v3298_v27  ;;  %2324 = vmatpush2.bf16.msra.mxu1 %v3341_v39  ;;  %v343_v39 = vrot.slane %v326_v58, %v342_v31 }
 0x155   :  { %2325 = vmatprep.subr.bf16.mxu1 %v3346_v40  ;;  %v3357_v40 = vld [vmem:[#allocation10 + $0x68] sm:$0xff]  }
 0x157   :  { %2283 = vmatpush2.bf16.msra.mxu0 %v3296_v29 }
 0x158   :  { %2284 = vmatprep.subr.bf16.mxu0 %v3301_v30  ;;  %2326 = vmatpush2.bf16.msra.mxu1 %v3344_v42  ;;  %v339_v42 = vrot.slane %v326_v58, %v338_v34 }
 0x159   :  { %2327 = vmatprep.subr.bf16.mxu1 %v3349_v43 }
 0x15b   :  { %2285 = vmatpush2.bf16.msra.mxu0 %v3299_v32  ;;  %v3353_v32 = vld [vmem:[#allocation10 + $0x78] sm:$0xff]  }
 0x15c   :  { %2286 = vmatprep.subr.bf16.mxu0 %v3304_v33  ;;  %2328 = vmatpush2.bf16.msra.mxu1 %v3347_v44  ;;  %v3355_v33 = vld [vmem:[#allocation10 + $0x70] sm:$0xff]  }
 0x15d   :  { %2329 = vmatprep.subr.bf16.mxu1 %v3352_v45  ;;  %v3358_v45 = vld [vmem:[#allocation10 + $0x28] sm:$0xff]  }
 0x15f   :  { %2287 = vmatpush2.bf16.msra.mxu0 %v3302_v36 }
 0x160   :  { %2330 = vmatpush2.bf16.msra.mxu1 %v3350_v46  ;;  %2874 = vmatprep.subr.bf16.mxu0 %v3353_v32 }
 0x163   :  { %v1667_v4 = vpop.f32.mrf.mxu1 }
 0x165   :  { %v1669_v0 = vpop.f32.mrf.mxu1 }
 0x167   :  { %v1671_v8 = vpop.f32.mrf.mxu1 }
 0x169   :  { %v1673_v19 = vpop.f32.mrf.mxu1 }
 0x182   :  { %v1624_v1 = vpop.f32.mrf.mxu0 }
 0x183   :  { %v1625_v9 = vadd.f32 %v1624_v1, %v1582_v3  ;;  %v3362_v3 = vld [vmem:[#allocation10 + $0x18] sm:$0xff]  }
 0x184   :  { %v1626_v5 = vpop.f32.mrf.mxu0 }
 0x185   :  { %v1627_v7 = vadd.f32 %v1626_v5, %v1584_v35  ;;  %v1668_v20 = vadd.f32 %v1667_v4, %v1625_v9 }
 0x186   :  { %v1628_v10 = vpop.f32.mrf.mxu0 }
 0x187   :  { %v1629_v13 = vadd.f32 %v1628_v10, %v1586_v6  ;;  %v1670_v16 = vadd.f32 %v1669_v0, %v1627_v7  ;;  %v1848_v25 = vmax.f32 %v1668_v20, 0.0  ;;  %v3364_v20 = vld [vmem:[#allocation10 + $0x10] sm:$0xff]  }
 0x188   :  { %v1630_v15 = vpop.f32.mrf.mxu0 }
 0x189   :  { %v1672_v17 = vadd.f32 %v1671_v8, %v1629_v13  ;;  %v1631_v18 = vadd.f32 %v1630_v15, %v1588_v12  ;;  %v1849_v23 = vmax.f32 %v1670_v16, 0.0 }
 0x18b   :  { %v1674_v21 = vadd.f32 %v1673_v19, %v1631_v18  ;;  %v1852_v22 = vmax.f32 %v1672_v17, 0.0  ;;  %v3363_v19 = vld [vmem:[#allocation10 + $0x50] sm:$0xff]  }
 0x18d   :  { %v1853_v24 = vmax.f32 %v1674_v21, 0.0  ;;  %v1856_v27 = vpack.c.bf16 %v1852_v22, %v1848_v25  ;;  %v3365_v21 = vld [vmem:[#allocation10 + $0x48] sm:$0xff]  }
 0x18e   :  { %v3366_v22 = vld [vmem:[#allocation10 + $0x8] sm:$0xff]  }
 0x18f   :  { %v1857_v26 = vpack.c.bf16 %v1853_v24, %v1849_v23  ;;  %v3367_v23 = vld [vmem:[#allocation10 + $0x40] sm:$0xff]  }
 0x190   :  { %v3368_v24 = vld [vmem:[#allocation10] sm:$0xff]  }
 0x191   :  { %2288 = vmatprep.mubr.bf16.mxu0 %v1857_v26 }
 0x192   :  { %2289 = vmatmul.mubr.bf16.vlgmr.msra.gmra.mxu0 %v1856_v27  ;;  %v1924_v27 = vld [vmem:[%s3627_s4] sm:$0x3] }
 0x193   :  { %2875 = vmatpush3.bf16.msra.mxu0 %v3354_v14 }
 0x194   :  { %2876 = vmatprep.subr.bf16.mxu0 %v3355_v33 }
 0x197   :  { %2877 = vmatpush3.bf16.msra.mxu0 %v3356_v38 }
 0x198   :  { %2878 = vmatprep.subr.bf16.mxu0 %v3357_v40 }
 0x19b   :  { %2879 = vmatpush3.bf16.msra.mxu0 %v3358_v45 }
 0x19c   :  { %2880 = vmatprep.subr.bf16.mxu0 %v3359_v47 }
 0x19f   :  { %2881 = vmatpush3.bf16.msra.mxu0 %v3360_v41 }
 0x1a0   :  { %2882 = vmatprep.subr.bf16.mxu0 %v3361_v61 }
 0x1a3   :  { %v1710_v28 = vpop.f32.mrf.mxu1  ;;  %2883 = vmatpush3.bf16.msra.mxu0 %v3362_v3 }
 0x1a4   :  { %v1711_v48 = vadd.f32 %v1710_v28, %v339_v42  ;;  %2884 = vmatprep.subr.bf16.mxu0 %v3363_v19 }
 0x1a5   :  { %v1712_v51 = vpop.f32.mrf.mxu1 }
 0x1a6   :  { %v1713_v46 = vadd.f32 %v1712_v51, %v343_v39  ;;  %v1929_v51 = vrot.slane %v1924_v27, %v330_v55 }
 0x1a7   :  { %v1714_v36 = vpop.f32.mrf.mxu1  ;;  %2885 = vmatpush3.bf16.msra.mxu0 %v3364_v20 }
 0x1a8   :  { %v1715_v56 = vadd.f32 %v1714_v36, %v339_v42  ;;  %2886 = vmatprep.subr.bf16.mxu0 %v3365_v21 }
 0x1a9   :  { %v1716_v43 = vpop.f32.mrf.mxu1 }
 0x1aa   :  { %v1717_v4 = vadd.f32 %v1716_v43, %v343_v39 }
 0x1ab   :  { %2887 = vmatpush3.bf16.msra.mxu0 %v3366_v22 }
 0x1ac   :  { %2888 = vmatprep.subr.bf16.mxu0 %v3367_v23 }
 0x1af   :  { %2889 = vmatpush3.bf16.msra.mxu0 %v3368_v24 }
 0x1c2   :  { %v1753_v29 = vpop.f32.mrf.mxu0 }
 0x1c3   :  { %v1754_v59 = vadd.f32 %v1753_v29, %v1711_v48  ;;  %v1933_v29 = vrot.slane %v1924_v27, %v334_v54 }
 0x1c4   :  { %v1755_v30 = vpop.f32.mrf.mxu0 }
 0x1c5   :  { %v1756_v57 = vadd.f32 %v1755_v30, %v1713_v46 }
 0x1c6   :  { %v1757_v37 = vpop.f32.mrf.mxu0 }
 0x1c7   :  { %v1758_v60 = vadd.f32 %v1757_v37, %v1715_v56  ;;  %v2848_v56 = vld [vmem:[%s3629_s6] ss:$0 sm:$0xff] }
 0x1c8   :  { %v1759_v44 = vpop.f32.mrf.mxu0 }
 0x1c9   :  { %v1760_v1 = vadd.f32 %v1759_v44, %v1717_v4 }
 0x1e2   :  { %v1839_v53 = vpop.f32.mrf.mxu0 }
 0x1e3   :  { %v1796_v52 = vpop.f32.mrf.mxu1 }
 0x1e4   :  { %v1841_v11 = vpop.f32.mrf.mxu0  ;;  %v1797_v62 = vadd.f32 %v1796_v52, %v1754_v59 }
 0x1e5   :  { %v1798_v49 = vpop.f32.mrf.mxu1 }
 0x1e6   :  { %v1799_v58 = vadd.f32 %v1798_v49, %v1756_v57  ;;  %v1843_v0 = vpop.f32.mrf.mxu0  ;;  %v1840_v8 = vadd.f32 %v1839_v53, %v1797_v62 }
 0x1e7   :  { %v1800_v63 = vpop.f32.mrf.mxu1 }
 0x1e8   :  { %v1801_v35 = vadd.f32 %v1800_v63, %v1758_v60  ;;  %v1842_v5 = vadd.f32 %v1841_v11, %v1799_v58  ;;  %v1845_v9 = vpop.f32.mrf.mxu0  ;;  %v1850_v16 = vmax.f32 %v1840_v8, 0.0 }
 0x1e9   :  { %v1802_v2 = vpop.f32.mrf.mxu1 }
 0x1ea   :  { %v1844_v6 = vadd.f32 %v1843_v0, %v1801_v35  ;;  %v1803_v7 = vadd.f32 %v1802_v2, %v1760_v1  ;;  %v1851_v13 = vmax.f32 %v1842_v5, 0.0 }
 0x1ec   :  { %v1846_v10 = vadd.f32 %v1845_v9, %v1803_v7  ;;  %v1854_v12 = vmax.f32 %v1844_v6, 0.0 }
 0x1ee   :  { %v1855_v15 = vmax.f32 %v1846_v10, 0.0  ;;  %v1858_v18 = vpack.c.bf16 %v1854_v12, %v1850_v16 }
 0x1f0   :  { %v1859_v17 = vpack.c.bf16 %v1855_v15, %v1851_v13 }
 0x1f2   :  { %2331 = vmatprep.mubr.bf16.mxu1 %v1859_v17 }
 0x1f3   :  { %2332 = vmatmul.mubr.bf16.vlgmr.msra.gmra.mxu1 %v1858_v18 }
 0x252   :  { %v2290_v25 = vpop.f32.mrf.mxu0 }
 0x253   :  { %v2291_v34 = vadd.f32 %v2290_v25, %v1929_v51 }
 0x254   :  { %v2292_v26 = vpop.f32.mrf.mxu0 }
 0x255   :  { %v2293_v14 = vadd.f32 %v2292_v26, %v1933_v29 }
 0x256   :  { %v2294_v28 = vpop.f32.mrf.mxu0 }
 0x257   :  { %v2295_v33 = vadd.f32 %v2294_v28, %v1929_v51 }
 0x258   :  { %v2296_v31 = vpop.f32.mrf.mxu0 }
 0x259   :  { %v2297_v37 = vadd.f32 %v2296_v31, %v1933_v29 }
 0x2b3   :  { %v2333_v30 = vpop.f32.mrf.mxu1 }
 0x2b4   :  { %v2334_v40 = vadd.f32 %v2333_v30, %v2291_v34 }
 0x2b5   :  { %v2335_v32 = vpop.f32.mrf.mxu1 }
 0x2b6   :  { %v2336_v38 = vadd.f32 %v2335_v32, %v2293_v14  ;;  %v2342_v54 = vmax.f32 %v2334_v40, 0.0 }
 0x2b7   :  { %v2337_v36 = vpop.f32.mrf.mxu1 }
 0x2b8   :  { %v2338_v39 = vadd.f32 %v2337_v36, %v2295_v33  ;;  %v2343_v45 = vmax.f32 %v2336_v38, 0.0 }
 0x2b9   :  { %v2339_v42 = vpop.f32.mrf.mxu1 }
 0x2ba   :  { %v2340_v43 = vadd.f32 %v2339_v42, %v2297_v37  ;;  %v2344_v44 = vmax.f32 %v2338_v39, 0.0 }
 0x2bc   :  { %v2345_v46 = vmax.f32 %v2340_v43, 0.0  ;;  %v2346_v50 = vpack.c.bf16 %v2344_v44, %v2342_v54 }
 0x2be   :  { %v2347_v47 = vpack.c.bf16 %v2345_v46, %v2343_v45 }
 0x2c0   :  { %2515 = vmatprep.mubr.bf16.mxu0 %v2347_v47 }
 0x2c1   :  { %2516 = vmatmul.mubr.bf16.vlgmr.msra.gmra.mxu0 %v2346_v50 }
 0x381   :  { %v2890_v55 = vpop.f32.mrf.mxu0 }
 0x383   :  { %v2891_v48 = vpop.f32.mrf.mxu0 }
 0x384   :  { %v2892_v53 = vadd.f32 %v2891_v48, %v2890_v55 }
 0x385   :  { %v2893_v52 = vpop.f32.mrf.mxu0 }
 0x386   :  { %v2518_v49 = vadd.f32 %v2892_v53, %v2848_v56 }
 0x387   :  { %v2894_v57 = vpop.f32.mrf.mxu0 }
 0x388   :  { %v2895_v59 = vadd.f32 %v2894_v57, %v2893_v52 }
 0x38a   :  { %v2521_v11 = vadd.f32 %v2895_v59, %v2848_v56 }
 0x38c   :  { %v2872_v41 = vpack.c.bf16 %v2521_v11, %v2518_v49 }
 0x38e   :  { %2873 = vst [vmem:[#allocation11] sm:$0xff] %v2872_v41  }
 0x38f   :  { %3481 = shalt.err (!%p3478_p1)
}
 0x390   :  { %2545 = dma.vmem_to_hbm [thread:$0]  %s2540_s10, 128, %s3630_s7, [#allocation4], %s3509_s0, %s3509_s0, %s3510_s28  }
 0x391   :  { %3496 = dma.done.wait [#allocation4], 128  }
 0x392   :  { %3497 = vsyncadd [#allocation4], 4294967168 }
 0x393   :  { %2549 = vsyncpa [#allocation3], 1 }
 0x394   :  { %2550 = vsyncpa [#allocation6], 1 }
 0x395   :  { %2551 = vsyncpa [#allocation9], 1 }
 0x396   :  { %2552 = vsyncpa [#allocation4], 1 }

</bundles_post_ra>
